<compile_context>
chip_gen: v7x
topology: tpu7x:2x2x1
jax: 0.10.0
libtpu: 0.0.40
codegen_flags: <defaults>
</compile_context>

<pallas_src>
import jax
import jax.numpy as jnp
from jax.experimental import pallas as pl
from jax.experimental.pallas import tpu as pltpu

LANE = 128
SUBLANE = 8


def _round_up(x, m):
    return ((x + m - 1) // m) * m


def _pick_time_block(seq_len, max_block):
    for cand in range(min(max_block, seq_len), 0, -1):
        if seq_len % cand == 0:
            return cand
    return 1


def _vmem_limit_bytes():
    # ~7/8 of physical VMEM: ~112 MiB on v5e/v6e, ~56 MiB on v7x.
    try:
        return int(pltpu.get_tpu_info().vmem_capacity_bytes * 7 // 8)
    except Exception:
        return 64 * 1024 * 1024


# ------------------------------------------------------------------ kernel ---
def _make_slstm_kernel(num_layers, hidden_pad, in_pad, time_block, batch_block,
                       matmul_dtype):
    L, Hp, InP, TB, Bt = num_layers, hidden_pad, in_pad, time_block, batch_block

    def kernel(x_ref, *rest):
        param_refs = rest[:3 * L]                       # (w_ih, w_hh, bias) * L
        out_ref, hn_ref, cn_ref, nn_ref = rest[3 * L:3 * L + 4]
        pre_sc = rest[3 * L + 4]                        # (TB, Bt, 4*Hp) f32

        # init_hidden(): zeros at the first time chunk of each batch tile.
        # hn/cn/nn have a time-constant index_map -> VMEM-resident running state.
        @pl.when(pl.program_id(1) == 0)
        def _init():
            hn_ref[...] = jnp.zeros_like(hn_ref)
            cn_ref[...] = jnp.zeros_like(cn_ref)
            nn_ref[...] = jnp.zeros_like(nn_ref)

        # Layer-major schedule over the chunk.
        for l in range(L):
            w_ih = param_refs[3 * l][...]               # (K, 4*Hp) bf16
            w_hh = param_refs[3 * l + 1][...]           # (Hp, 4*Hp) bf16
            bias = param_refs[3 * l + 2][...]           # (1, 4*Hp) f32

            if l == 0:
                lhs = x_ref[...].reshape(TB * Bt, InP)   # already matmul_dtype
            else:
                # out_ref holds layer l-1's hiddens for every step of the chunk.
                lhs = out_ref[...].reshape(TB * Bt, Hp).astype(matmul_dtype)

            # One full-utilization MXU matmul per layer per chunk; bias added
            # once (hoisted out of the time loop).
            pre = jnp.dot(lhs, w_ih, preferred_element_type=jnp.float32) + bias
            pre_sc[...] = pre.reshape(TB, Bt, 4 * Hp)

            h = hn_ref[l]                               # (Bt, Hp) f32
            c = cn_ref[l]
            n = nn_ref[l]
            for tl in range(TB):                        # static unroll (TB small)
                gates = pre_sc[tl] + jnp.dot(
                    h.astype(matmul_dtype), w_hh,
                    preferred_element_type=jnp.float32)  # (Bt, 4*Hp)

                # Hp is a multiple of 128 -> lane-aligned gate slices.
                i_g = jnp.exp(gates[:, 0 * Hp:1 * Hp])   # exponential gate
                f_g = jax.nn.sigmoid(gates[:, 1 * Hp:2 * Hp])
                g_g = jnp.tanh(gates[:, 2 * Hp:3 * Hp])
                o_g = jax.nn.sigmoid(gates[:, 3 * Hp:4 * Hp])

                n = f_g * n + i_g
                c = f_g * c + i_g * g_g
                d = n + 1e-8
                r = pl.reciprocal(d, approx=True)
                r = r * (2.0 - d * r)                    # one Newton step
                h = o_g * c * r
                out_ref[tl] = h                          # chunk hidden buffer

            hn_ref[l] = h
            cn_ref[l] = c
            nn_ref[l] = n

    return kernel


# ----------------------------------------------------------------- wrapper ---
def slstm_forward(input_seq, params, hidden_size, num_layers, *,
                  max_time_block=8, batch_block=None,
                  matmul_dtype=jnp.bfloat16):
    """input_seq: (seq_len, batch, input_size) float32.
    params: list of (w_ih (4H,in_l), w_hh (4H,H), bias (4H,)) per layer.
    Returns (output_seq, (hn, cn, nn)) matching the PyTorch module."""
    seq_len, batch, input_size = input_seq.shape
    H, L = hidden_size, num_layers
    Hp = _round_up(H, LANE)
    InP = _round_up(input_size, LANE)
    Bp = _round_up(batch, SUBLANE)
    Bt = Bp if batch_block is None else batch_block
    assert Bp % Bt == 0 and Bt % SUBLANE == 0
    n_btiles = Bp // Bt
    TB = _pick_time_block(seq_len, max_time_block)
    n_chunks = seq_len // TB

    def pack_w(w, in_dim, in_pad):
        # (4H, in_dim) torch layout -> (in_pad, 4*Hp), zero-padded, gate-blocked.
        w = jnp.asarray(w, jnp.float32).reshape(4, H, in_dim)
        w = jnp.pad(w, ((0, 0), (0, Hp - H), (0, in_pad - in_dim)))
        return w.reshape(4 * Hp, in_pad).T.astype(matmul_dtype)

    def pack_b(b):
        b = jnp.asarray(b, jnp.float32).reshape(4, H)
        b = jnp.pad(b, ((0, 0), (0, Hp - H)))
        return b.reshape(1, 4 * Hp)                      # stays f32

    # Stream the raw (padded, bf16) input; layer-0 projection happens in-kernel.
    x = jnp.asarray(input_seq, jnp.float32)
    x = jnp.pad(x, ((0, 0), (0, Bp - batch), (0, InP - input_size)))
    x = x.astype(matmul_dtype)

    flat_inputs = [x]
    in_specs = [pl.BlockSpec((TB, Bt, InP), lambda bt, s: (s, bt, 0))]
    for l in range(L):
        w_ih, w_hh, bias = params[l]
        in_l = input_size if l == 0 else H
        in_pad_l = InP if l == 0 else Hp
        flat_inputs += [pack_w(w_ih, in_l, in_pad_l), pack_w(w_hh, H, Hp),
                        pack_b(bias)]
        # Weights/biases: whole-array single-copy VMEM residency (no pipelining).
        in_specs += [pl.BlockSpec(memory_space=pltpu.MemorySpace.VMEM)] * 3

    out_shapes = (
        jax.ShapeDtypeStruct((seq_len, Bp, Hp), jnp.float32),   # output_seq
        jax.ShapeDtypeStruct((L, Bp, Hp), jnp.float32),         # hn
        jax.ShapeDtypeStruct((L, Bp, Hp), jnp.float32),         # cn
        jax.ShapeDtypeStruct((L, Bp, Hp), jnp.float32),         # nn
    )
    out_specs = (
        pl.BlockSpec((TB, Bt, Hp), lambda bt, s: (s, bt, 0)),
        pl.BlockSpec((L, Bt, Hp), lambda bt, s: (0, bt, 0)),
        pl.BlockSpec((L, Bt, Hp), lambda bt, s: (0, bt, 0)),
        pl.BlockSpec((L, Bt, Hp), lambda bt, s: (0, bt, 0)),
    )

    kernel = _make_slstm_kernel(L, Hp, InP, TB, Bt, matmul_dtype)

    out_seq, hn, cn, nn_ = pl.pallas_call(
        kernel,
        out_shape=out_shapes,
        grid_spec=pltpu.PrefetchScalarGridSpec(
            num_scalar_prefetch=0,
            grid=(n_btiles, n_chunks),               # (batch tiles, time chunks)
            in_specs=in_specs,
            out_specs=out_specs,
            scratch_shapes=[pltpu.VMEM((TB, Bt, 4 * Hp), jnp.float32)],
        ),
        compiler_params=pltpu.CompilerParams(
            dimension_semantics=("parallel", "arbitrary"),
            vmem_limit_bytes=_vmem_limit_bytes(),
        ),
    )(*flat_inputs)

    # Strip batch/lane padding back to logical sizes.
    return (out_seq[:, :batch, :H],
            (hn[:, :batch, :H], cn[:, :batch, :H], nn_[:, :batch, :H]))


# ------------------------------------------------------ deterministic init ---
def xavier_uniform(key, shape):
    fan_out, fan_in = shape
    a = (6.0 / (fan_in + fan_out)) ** 0.5
    return jax.random.uniform(key, shape, jnp.float32, -a, a)


def init_slstm_params(key, input_size, hidden_size, num_layers):
    params = []
    for l in range(num_layers):
        in_l = input_size if l == 0 else hidden_size
        key, k1, k2 = jax.random.split(key, 3)
        w_ih = xavier_uniform(k1, (4 * hidden_size, in_l))
        w_hh = xavier_uniform(k2, (4 * hidden_size, hidden_size))
        bias = jnp.zeros((4 * hidden_size,), jnp.float32)
        params.append((w_ih, w_hh, bias))
    return params


# --------------------------------------------------------- pure-JAX check ---
def slstm_reference(input_seq, params, hidden_size, num_layers):
    seq_len, batch, _ = input_seq.shape
    H = hidden_size
    h = [jnp.zeros((batch, H)) for _ in range(num_layers)]
    c = [jnp.zeros((batch, H)) for _ in range(num_layers)]
    n = [jnp.zeros((batch, H)) for _ in range(num_layers)]
    outs = []
    for t in range(seq_len):
        x = input_seq[t]
        for l, (w_ih, w_hh, bias) in enumerate(params):
            gates = x @ w_ih.T + bias + h[l] @ w_hh.T
            i, f, g, o = jnp.split(gates, 4, axis=1)
            i = jnp.exp(i)
            f = jax.nn.sigmoid(f)
            g = jnp.tanh(g)
            o = jax.nn.sigmoid(o)
            n[l] = f * n[l] + i
            c[l] = f * c[l] + i * g
            h[l] = o * (c[l] / (n[l] + 1e-8))
            x = h[l]
        outs.append(x)
    return (jnp.stack(outs, 0),
            (jnp.stack(h, 0), jnp.stack(c, 0), jnp.stack(n, 0)))


# -------------------------------------------------------------------- main ---
if __name__ == "__main__":
    seq_len, batch = 8, 2
    input_size, hidden_size, num_layers = 16, 32, 2

    key = jax.random.PRNGKey(0)
    key, kx = jax.random.split(key)
    input_seq = jax.random.normal(kx, (seq_len, batch, input_size), jnp.float32)
    params = init_slstm_params(key, input_size, hidden_size, num_layers)

    out_seq, (hn, cn, nn_) = slstm_forward(input_seq, params, hidden_size,
                                           num_layers)
    jax.block_until_ready((out_seq, hn, cn, nn_))

    ref_out, (ref_h, ref_c, ref_n) = slstm_reference(
        input_seq, params, hidden_size, num_layers)

    # Tolerance accommodates the bf16 matmul precision of the kernel path
    # (reference runs the matmuls in f32).
    tol = dict(atol=3e-2, rtol=3e-2)
    assert jnp.allclose(out_seq, ref_out, **tol)
    assert jnp.allclose(hn, ref_h, **tol)
    assert jnp.allclose(cn, ref_c, **tol)
    assert jnp.allclose(nn_, ref_n, **tol)

    print("KERNEL_OK")
</pallas_src>

<mosaic_0001>
module attributes {stable_mosaic.version = 11 : i64} {
  func.func @kernel(%arg0: i32, %arg1: i32, %arg2: memref<8x8x128xbf16, #tpu.memory_space<vmem>>, %arg3: memref<128x512xbf16, #tpu.memory_space<vmem>>, %arg4: memref<128x512xbf16, #tpu.memory_space<vmem>>, %arg5: memref<1x512xf32, #tpu.memory_space<vmem>>, %arg6: memref<128x512xbf16, #tpu.memory_space<vmem>>, %arg7: memref<128x512xbf16, #tpu.memory_space<vmem>>, %arg8: memref<1x512xf32, #tpu.memory_space<vmem>>, %arg9: memref<8x8x128xf32, #tpu.memory_space<vmem>>, %arg10: memref<2x8x128xf32, #tpu.memory_space<vmem>>, %arg11: memref<2x8x128xf32, #tpu.memory_space<vmem>>, %arg12: memref<2x8x128xf32, #tpu.memory_space<vmem>>, %arg13: memref<8x8x512xf32, #tpu.memory_space<vmem>>) attributes {dimension_semantics = [#tpu.dimension_semantics<parallel>, #tpu.dimension_semantics<arbitrary>], iteration_bounds = array<i64: 1, 1>, scalar_prefetch = 0 : i64, scratch_operands = 1 : i64, tpu.core_type = #tpu.core_type<tc>, window_params = [{transform_indices = @transform_0, window_bounds = array<i64: 8, 8, 128>}, {pipeline_mode = #tpu.pipeline_mode<synchronous>, transform_indices = @transform_1, window_bounds = array<i64: 128, 512>}, {pipeline_mode = #tpu.pipeline_mode<synchronous>, transform_indices = @transform_2, window_bounds = array<i64: 128, 512>}, {pipeline_mode = #tpu.pipeline_mode<synchronous>, transform_indices = @transform_3, window_bounds = array<i64: 1, 512>}, {pipeline_mode = #tpu.pipeline_mode<synchronous>, transform_indices = @transform_4, window_bounds = array<i64: 128, 512>}, {pipeline_mode = #tpu.pipeline_mode<synchronous>, transform_indices = @transform_5, window_bounds = array<i64: 128, 512>}, {pipeline_mode = #tpu.pipeline_mode<synchronous>, transform_indices = @transform_6, window_bounds = array<i64: 1, 512>}, {transform_indices = @transform_7, window_bounds = array<i64: 8, 8, 128>}, {transform_indices = @transform_8, window_bounds = array<i64: 2, 8, 128>}, {transform_indices = @transform_9, window_bounds = array<i64: 2, 8, 128>}, {transform_indices = @transform_10, window_bounds = array<i64: 2, 8, 128>}]} {
    %c0_i32 = arith.constant 0 : i32
    %0 = arith.cmpi eq, %arg1, %c0_i32 : i32
    %1 = arith.extui %0 : i1 to i32
    %c0_i32_0 = arith.constant 0 : i32
    %2 = arith.cmpi ne, %1, %c0_i32_0 : i32
    scf.if %2 {
      %cst_230 = arith.constant 0.000000e+00 : f32
      %662 = vector.broadcast %cst_230 : f32 to vector<2x8x128xf32>
      %c0_231 = arith.constant 0 : index
      %c0_232 = arith.constant 0 : index
      %c0_233 = arith.constant 0 : index
      %663 = vector.load %arg10[%c0_231, %c0_232, %c0_233] : memref<2x8x128xf32, #tpu.memory_space<vmem>>, vector<2x8x128xf32>
      tpu.vector_store %arg10[%c0_231, %c0_232, %c0_233], %662 {strides = array<i32>} : memref<2x8x128xf32, #tpu.memory_space<vmem>>, vector<2x8x128xf32>,
      %cst_234 = arith.constant 0.000000e+00 : f32
      %664 = vector.broadcast %cst_234 : f32 to vector<2x8x128xf32>
      %c0_235 = arith.constant 0 : index
      %c0_236 = arith.constant 0 : index
      %c0_237 = arith.constant 0 : index
      %665 = vector.load %arg11[%c0_235, %c0_236, %c0_237] : memref<2x8x128xf32, #tpu.memory_space<vmem>>, vector<2x8x128xf32>
      tpu.vector_store %arg11[%c0_235, %c0_236, %c0_237], %664 {strides = array<i32>} : memref<2x8x128xf32, #tpu.memory_space<vmem>>, vector<2x8x128xf32>,
      %cst_238 = arith.constant 0.000000e+00 : f32
      %666 = vector.broadcast %cst_238 : f32 to vector<2x8x128xf32>
      %c0_239 = arith.constant 0 : index
      %c0_240 = arith.constant 0 : index
      %c0_241 = arith.constant 0 : index
      %667 = vector.load %arg12[%c0_239, %c0_240, %c0_241] : memref<2x8x128xf32, #tpu.memory_space<vmem>>, vector<2x8x128xf32>
      tpu.vector_store %arg12[%c0_239, %c0_240, %c0_241], %666 {strides = array<i32>} : memref<2x8x128xf32, #tpu.memory_space<vmem>>, vector<2x8x128xf32>,
    } else {
    }
    %c0 = arith.constant 0 : index
    %c0_1 = arith.constant 0 : index
    %3 = vector.load %arg3[%c0, %c0_1] : memref<128x512xbf16, #tpu.memory_space<vmem>>, vector<128x512xbf16>
    %c0_2 = arith.constant 0 : index
    %c0_3 = arith.constant 0 : index
    %4 = vector.load %arg4[%c0_2, %c0_3] : memref<128x512xbf16, #tpu.memory_space<vmem>>, vector<128x512xbf16>
    %c0_4 = arith.constant 0 : index
    %c0_5 = arith.constant 0 : index
    %5 = vector.load %arg5[%c0_4, %c0_5] : memref<1x512xf32, #tpu.memory_space<vmem>>, vector<1x512xf32>
    %c0_6 = arith.constant 0 : index
    %c0_7 = arith.constant 0 : index
    %c0_8 = arith.constant 0 : index
    %6 = vector.load %arg2[%c0_6, %c0_7, %c0_8] : memref<8x8x128xbf16, #tpu.memory_space<vmem>>, vector<8x8x128xbf16>
    %7 = vector.shape_cast %6 : vector<8x8x128xbf16> to vector<64x128xbf16>
    %cst = arith.constant dense<0.000000e+00> : vector<64x512xf32>
    %8 = tpu.matmul %7, %3, %cst {dimension_numbers = #tpu.dot_dimension_numbers<[1], [0], [0], [1], [0, 0, 1, 1], [], []>} : vector<64x128xbf16>, vector<128x512xbf16>, vector<64x512xf32> -> vector<64x512xf32>
    %9 = vector.broadcast %5 : vector<1x512xf32> to vector<64x512xf32>
    %10 = arith.addf %8, %9 : vector<64x512xf32>
    %11 = vector.shape_cast %10 : vector<64x512xf32> to vector<8x8x512xf32>
    %c0_9 = arith.constant 0 : index
    %c0_10 = arith.constant 0 : index
    %c0_11 = arith.constant 0 : index
    %12 = vector.load %arg13[%c0_9, %c0_10, %c0_11] : memref<8x8x512xf32, #tpu.memory_space<vmem>>, vector<8x8x512xf32>
    tpu.vector_store %arg13[%c0_9, %c0_10, %c0_11], %11 {strides = array<i32>} : memref<8x8x512xf32, #tpu.memory_space<vmem>>, vector<8x8x512xf32>,
    %c0_12 = arith.constant 0 : index
    %c0_13 = arith.constant 0 : index
    %c0_14 = arith.constant 0 : index
    %13 = vector.load %arg10[%c0_12, %c0_13, %c0_14] : memref<2x8x128xf32, #tpu.memory_space<vmem>>, vector<1x8x128xf32>
    %14 = vector.shape_cast %13 : vector<1x8x128xf32> to vector<8x128xf32>
    %c0_15 = arith.constant 0 : index
    %c0_16 = arith.constant 0 : index
    %c0_17 = arith.constant 0 : index
    %15 = vector.load %arg11[%c0_15, %c0_16, %c0_17] : memref<2x8x128xf32, #tpu.memory_space<vmem>>, vector<1x8x128xf32>
    %16 = vector.shape_cast %15 : vector<1x8x128xf32> to vector<8x128xf32>
    %c0_18 = arith.constant 0 : index
    %c0_19 = arith.constant 0 : index
    %c0_20 = arith.constant 0 : index
    %17 = vector.load %arg12[%c0_18, %c0_19, %c0_20] : memref<2x8x128xf32, #tpu.memory_space<vmem>>, vector<1x8x128xf32>
    %18 = vector.shape_cast %17 : vector<1x8x128xf32> to vector<8x128xf32>
    %c0_21 = arith.constant 0 : index
    %c0_22 = arith.constant 0 : index
    %c0_23 = arith.constant 0 : index
    %19 = vector.load %arg13[%c0_21, %c0_22, %c0_23] : memref<8x8x512xf32, #tpu.memory_space<vmem>>, vector<1x8x512xf32>
    %20 = vector.shape_cast %19 : vector<1x8x512xf32> to vector<8x512xf32>
    %21 = arith.truncf %14 : vector<8x128xf32> to vector<8x128xbf16>
    %cst_24 = arith.constant dense<0.000000e+00> : vector<8x512xf32>
    %22 = tpu.matmul %21, %4, %cst_24 {dimension_numbers = #tpu.dot_dimension_numbers<[1], [0], [0], [1], [0, 0, 1, 1], [], []>} : vector<8x128xbf16>, vector<128x512xbf16>, vector<8x512xf32> -> vector<8x512xf32>
    %23 = arith.addf %20, %22 : vector<8x512xf32>
    %24 = vector.extract_strided_slice %23 {offsets = [0, 0], sizes = [8, 128], strides = [1, 1]} : vector<8x512xf32> to vector<8x128xf32>
    %25 = math.exp %24 : vector<8x128xf32>
    %26 = vector.extract_strided_slice %23 {offsets = [0, 128], sizes = [8, 128], strides = [1, 1]} : vector<8x512xf32> to vector<8x128xf32>
    %27 = arith.negf %26 : vector<8x128xf32>
    %28 = math.exp %27 : vector<8x128xf32>
    %cst_25 = arith.constant 1.000000e+00 : f32
    %29 = vector.broadcast %cst_25 : f32 to vector<8x128xf32>
    %30 = arith.addf %29, %28 : vector<8x128xf32>
    %31 = arith.divf %29, %30 : vector<8x128xf32>
    %32 = vector.extract_strided_slice %23 {offsets = [0, 256], sizes = [8, 128], strides = [1, 1]} : vector<8x512xf32> to vector<8x128xf32>
    %33 = math.tanh %32 : vector<8x128xf32>
    %34 = vector.extract_strided_slice %23 {offsets = [0, 384], sizes = [8, 128], strides = [1, 1]} : vector<8x512xf32> to vector<8x128xf32>
    %35 = arith.negf %34 : vector<8x128xf32>
    %36 = math.exp %35 : vector<8x128xf32>
    %cst_26 = arith.constant 1.000000e+00 : f32
    %37 = vector.broadcast %cst_26 : f32 to vector<8x128xf32>
    %38 = arith.addf %37, %36 : vector<8x128xf32>
    %39 = arith.divf %37, %38 : vector<8x128xf32>
    %40 = arith.mulf %31, %18 : vector<8x128xf32>
    %41 = arith.addf %40, %25 : vector<8x128xf32>
    %42 = arith.mulf %31, %16 : vector<8x128xf32>
    %43 = arith.mulf %25, %33 : vector<8x128xf32>
    %44 = arith.addf %42, %43 : vector<8x128xf32>
    %cst_27 = arith.constant 9.99999993E-9 : f32
    %45 = vector.broadcast %cst_27 : f32 to vector<8x128xf32>
    %46 = arith.addf %41, %45 : vector<8x128xf32>
    %47 = tpu.reciprocal %46 {approx = true} : vector<8x128xf32> -> vector<8x128xf32>
    %48 = arith.mulf %46, %47 : vector<8x128xf32>
    %cst_28 = arith.constant 2.000000e+00 : f32
    %49 = vector.broadcast %cst_28 : f32 to vector<8x128xf32>
    %50 = arith.subf %49, %48 : vector<8x128xf32>
    %51 = arith.mulf %47, %50 : vector<8x128xf32>
    %52 = arith.mulf %39, %44 : vector<8x128xf32>
    %53 = arith.mulf %52, %51 : vector<8x128xf32>
    %c0_29 = arith.constant 0 : index
    %c0_30 = arith.constant 0 : index
    %c0_31 = arith.constant 0 : index
    %54 = vector.load %arg9[%c0_29, %c0_30, %c0_31] : memref<8x8x128xf32, #tpu.memory_space<vmem>>, vector<1x8x128xf32>
    %55 = vector.shape_cast %54 : vector<1x8x128xf32> to vector<8x128xf32>
    %56 = vector.shape_cast %53 : vector<8x128xf32> to vector<1x8x128xf32>
    tpu.vector_store %arg9[%c0_29, %c0_30, %c0_31], %56 {strides = array<i32>} : memref<8x8x128xf32, #tpu.memory_space<vmem>>, vector<1x8x128xf32>,
    %c1 = arith.constant 1 : index
    %c0_32 = arith.constant 0 : index
    %c0_33 = arith.constant 0 : index
    %57 = vector.load %arg13[%c1, %c0_32, %c0_33] : memref<8x8x512xf32, #tpu.memory_space<vmem>>, vector<1x8x512xf32>
    %58 = vector.shape_cast %57 : vector<1x8x512xf32> to vector<8x512xf32>
    %59 = arith.truncf %53 : vector<8x128xf32> to vector<8x128xbf16>
    %cst_34 = arith.constant dense<0.000000e+00> : vector<8x512xf32>
    %60 = tpu.matmul %59, %4, %cst_34 {dimension_numbers = #tpu.dot_dimension_numbers<[1], [0], [0], [1], [0, 0, 1, 1], [], []>} : vector<8x128xbf16>, vector<128x512xbf16>, vector<8x512xf32> -> vector<8x512xf32>
    %61 = arith.addf %58, %60 : vector<8x512xf32>
    %62 = vector.extract_strided_slice %61 {offsets = [0, 0], sizes = [8, 128], strides = [1, 1]} : vector<8x512xf32> to vector<8x128xf32>
    %63 = math.exp %62 : vector<8x128xf32>
    %64 = vector.extract_strided_slice %61 {offsets = [0, 128], sizes = [8, 128], strides = [1, 1]} : vector<8x512xf32> to vector<8x128xf32>
    %65 = arith.negf %64 : vector<8x128xf32>
    %66 = math.exp %65 : vector<8x128xf32>
    %cst_35 = arith.constant 1.000000e+00 : f32
    %67 = vector.broadcast %cst_35 : f32 to vector<8x128xf32>
    %68 = arith.addf %67, %66 : vector<8x128xf32>
    %69 = arith.divf %67, %68 : vector<8x128xf32>
    %70 = vector.extract_strided_slice %61 {offsets = [0, 256], sizes = [8, 128], strides = [1, 1]} : vector<8x512xf32> to vector<8x128xf32>
    %71 = math.tanh %70 : vector<8x128xf32>
    %72 = vector.extract_strided_slice %61 {offsets = [0, 384], sizes = [8, 128], strides = [1, 1]} : vector<8x512xf32> to vector<8x128xf32>
    %73 = arith.negf %72 : vector<8x128xf32>
    %74 = math.exp %73 : vector<8x128xf32>
    %cst_36 = arith.constant 1.000000e+00 : f32
    %75 = vector.broadcast %cst_36 : f32 to vector<8x128xf32>
    %76 = arith.addf %75, %74 : vector<8x128xf32>
    %77 = arith.divf %75, %76 : vector<8x128xf32>
    %78 = arith.mulf %69, %41 : vector<8x128xf32>
    %79 = arith.addf %78, %63 : vector<8x128xf32>
    %80 = arith.mulf %69, %44 : vector<8x128xf32>
    %81 = arith.mulf %63, %71 : vector<8x128xf32>
    %82 = arith.addf %80, %81 : vector<8x128xf32>
    %cst_37 = arith.constant 9.99999993E-9 : f32
    %83 = vector.broadcast %cst_37 : f32 to vector<8x128xf32>
    %84 = arith.addf %79, %83 : vector<8x128xf32>
    %85 = tpu.reciprocal %84 {approx = true} : vector<8x128xf32> -> vector<8x128xf32>
    %86 = arith.mulf %84, %85 : vector<8x128xf32>
    %cst_38 = arith.constant 2.000000e+00 : f32
    %87 = vector.broadcast %cst_38 : f32 to vector<8x128xf32>
    %88 = arith.subf %87, %86 : vector<8x128xf32>
    %89 = arith.mulf %85, %88 : vector<8x128xf32>
    %90 = arith.mulf %77, %82 : vector<8x128xf32>
    %91 = arith.mulf %90, %89 : vector<8x128xf32>
    %c1_39 = arith.constant 1 : index
    %c0_40 = arith.constant 0 : index
    %c0_41 = arith.constant 0 : index
    %92 = vector.load %arg9[%c1_39, %c0_40, %c0_41] : memref<8x8x128xf32, #tpu.memory_space<vmem>>, vector<1x8x128xf32>
    %93 = vector.shape_cast %92 : vector<1x8x128xf32> to vector<8x128xf32>
    %94 = vector.shape_cast %91 : vector<8x128xf32> to vector<1x8x128xf32>
    tpu.vector_store %arg9[%c1_39, %c0_40, %c0_41], %94 {strides = array<i32>} : memref<8x8x128xf32, #tpu.memory_space<vmem>>, vector<1x8x128xf32>,
    %c2 = arith.constant 2 : index
    %c0_42 = arith.constant 0 : index
    %c0_43 = arith.constant 0 : index
    %95 = vector.load %arg13[%c2, %c0_42, %c0_43] : memref<8x8x512xf32, #tpu.memory_space<vmem>>, vector<1x8x512xf32>
    %96 = vector.shape_cast %95 : vector<1x8x512xf32> to vector<8x512xf32>
    %97 = arith.truncf %91 : vector<8x128xf32> to vector<8x128xbf16>
    %cst_44 = arith.constant dense<0.000000e+00> : vector<8x512xf32>
    %98 = tpu.matmul %97, %4, %cst_44 {dimension_numbers = #tpu.dot_dimension_numbers<[1], [0], [0], [1], [0, 0, 1, 1], [], []>} : vector<8x128xbf16>, vector<128x512xbf16>, vector<8x512xf32> -> vector<8x512xf32>
    %99 = arith.addf %96, %98 : vector<8x512xf32>
    %100 = vector.extract_strided_slice %99 {offsets = [0, 0], sizes = [8, 128], strides = [1, 1]} : vector<8x512xf32> to vector<8x128xf32>
    %101 = math.exp %100 : vector<8x128xf32>
    %102 = vector.extract_strided_slice %99 {offsets = [0, 128], sizes = [8, 128], strides = [1, 1]} : vector<8x512xf32> to vector<8x128xf32>
    %103 = arith.negf %102 : vector<8x128xf32>
    %104 = math.exp %103 : vector<8x128xf32>
    %cst_45 = arith.constant 1.000000e+00 : f32
    %105 = vector.broadcast %cst_45 : f32 to vector<8x128xf32>
    %106 = arith.addf %105, %104 : vector<8x128xf32>
    %107 = arith.divf %105, %106 : vector<8x128xf32>
    %108 = vector.extract_strided_slice %99 {offsets = [0, 256], sizes = [8, 128], strides = [1, 1]} : vector<8x512xf32> to vector<8x128xf32>
    %109 = math.tanh %108 : vector<8x128xf32>
    %110 = vector.extract_strided_slice %99 {offsets = [0, 384], sizes = [8, 128], strides = [1, 1]} : vector<8x512xf32> to vector<8x128xf32>
    %111 = arith.negf %110 : vector<8x128xf32>
    %112 = math.exp %111 : vector<8x128xf32>
    %cst_46 = arith.constant 1.000000e+00 : f32
    %113 = vector.broadcast %cst_46 : f32 to vector<8x128xf32>
    %114 = arith.addf %113, %112 : vector<8x128xf32>
    %115 = arith.divf %113, %114 : vector<8x128xf32>
    %116 = arith.mulf %107, %79 : vector<8x128xf32>
    %117 = arith.addf %116, %101 : vector<8x128xf32>
    %118 = arith.mulf %107, %82 : vector<8x128xf32>
    %119 = arith.mulf %101, %109 : vector<8x128xf32>
    %120 = arith.addf %118, %119 : vector<8x128xf32>
    %cst_47 = arith.constant 9.99999993E-9 : f32
    %121 = vector.broadcast %cst_47 : f32 to vector<8x128xf32>
    %122 = arith.addf %117, %121 : vector<8x128xf32>
    %123 = tpu.reciprocal %122 {approx = true} : vector<8x128xf32> -> vector<8x128xf32>
    %124 = arith.mulf %122, %123 : vector<8x128xf32>
    %cst_48 = arith.constant 2.000000e+00 : f32
    %125 = vector.broadcast %cst_48 : f32 to vector<8x128xf32>
    %126 = arith.subf %125, %124 : vector<8x128xf32>
    %127 = arith.mulf %123, %126 : vector<8x128xf32>
    %128 = arith.mulf %115, %120 : vector<8x128xf32>
    %129 = arith.mulf %128, %127 : vector<8x128xf32>
    %c2_49 = arith.constant 2 : index
    %c0_50 = arith.constant 0 : index
    %c0_51 = arith.constant 0 : index
    %130 = vector.load %arg9[%c2_49, %c0_50, %c0_51] : memref<8x8x128xf32, #tpu.memory_space<vmem>>, vector<1x8x128xf32>
    %131 = vector.shape_cast %130 : vector<1x8x128xf32> to vector<8x128xf32>
    %132 = vector.shape_cast %129 : vector<8x128xf32> to vector<1x8x128xf32>
    tpu.vector_store %arg9[%c2_49, %c0_50, %c0_51], %132 {strides = array<i32>} : memref<8x8x128xf32, #tpu.memory_space<vmem>>, vector<1x8x128xf32>,
    %c3 = arith.constant 3 : index
    %c0_52 = arith.constant 0 : index
    %c0_53 = arith.constant 0 : index
    %133 = vector.load %arg13[%c3, %c0_52, %c0_53] : memref<8x8x512xf32, #tpu.memory_space<vmem>>, vector<1x8x512xf32>
    %134 = vector.shape_cast %133 : vector<1x8x512xf32> to vector<8x512xf32>
    %135 = arith.truncf %129 : vector<8x128xf32> to vector<8x128xbf16>
    %cst_54 = arith.constant dense<0.000000e+00> : vector<8x512xf32>
    %136 = tpu.matmul %135, %4, %cst_54 {dimension_numbers = #tpu.dot_dimension_numbers<[1], [0], [0], [1], [0, 0, 1, 1], [], []>} : vector<8x128xbf16>, vector<128x512xbf16>, vector<8x512xf32> -> vector<8x512xf32>
    %137 = arith.addf %134, %136 : vector<8x512xf32>
    %138 = vector.extract_strided_slice %137 {offsets = [0, 0], sizes = [8, 128], strides = [1, 1]} : vector<8x512xf32> to vector<8x128xf32>
    %139 = math.exp %138 : vector<8x128xf32>
    %140 = vector.extract_strided_slice %137 {offsets = [0, 128], sizes = [8, 128], strides = [1, 1]} : vector<8x512xf32> to vector<8x128xf32>
    %141 = arith.negf %140 : vector<8x128xf32>
    %142 = math.exp %141 : vector<8x128xf32>
    %cst_55 = arith.constant 1.000000e+00 : f32
    %143 = vector.broadcast %cst_55 : f32 to vector<8x128xf32>
    %144 = arith.addf %143, %142 : vector<8x128xf32>
    %145 = arith.divf %143, %144 : vector<8x128xf32>
    %146 = vector.extract_strided_slice %137 {offsets = [0, 256], sizes = [8, 128], strides = [1, 1]} : vector<8x512xf32> to vector<8x128xf32>
    %147 = math.tanh %146 : vector<8x128xf32>
    %148 = vector.extract_strided_slice %137 {offsets = [0, 384], sizes = [8, 128], strides = [1, 1]} : vector<8x512xf32> to vector<8x128xf32>
    %149 = arith.negf %148 : vector<8x128xf32>
    %150 = math.exp %149 : vector<8x128xf32>
    %cst_56 = arith.constant 1.000000e+00 : f32
    %151 = vector.broadcast %cst_56 : f32 to vector<8x128xf32>
    %152 = arith.addf %151, %150 : vector<8x128xf32>
    %153 = arith.divf %151, %152 : vector<8x128xf32>
    %154 = arith.mulf %145, %117 : vector<8x128xf32>
    %155 = arith.addf %154, %139 : vector<8x128xf32>
    %156 = arith.mulf %145, %120 : vector<8x128xf32>
    %157 = arith.mulf %139, %147 : vector<8x128xf32>
    %158 = arith.addf %156, %157 : vector<8x128xf32>
    %cst_57 = arith.constant 9.99999993E-9 : f32
    %159 = vector.broadcast %cst_57 : f32 to vector<8x128xf32>
    %160 = arith.addf %155, %159 : vector<8x128xf32>
    %161 = tpu.reciprocal %160 {approx = true} : vector<8x128xf32> -> vector<8x128xf32>
    %162 = arith.mulf %160, %161 : vector<8x128xf32>
    %cst_58 = arith.constant 2.000000e+00 : f32
    %163 = vector.broadcast %cst_58 : f32 to vector<8x128xf32>
    %164 = arith.subf %163, %162 : vector<8x128xf32>
    %165 = arith.mulf %161, %164 : vector<8x128xf32>
    %166 = arith.mulf %153, %158 : vector<8x128xf32>
    %167 = arith.mulf %166, %165 : vector<8x128xf32>
    %c3_59 = arith.constant 3 : index
    %c0_60 = arith.constant 0 : index
    %c0_61 = arith.constant 0 : index
    %168 = vector.load %arg9[%c3_59, %c0_60, %c0_61] : memref<8x8x128xf32, #tpu.memory_space<vmem>>, vector<1x8x128xf32>
    %169 = vector.shape_cast %168 : vector<1x8x128xf32> to vector<8x128xf32>
    %170 = vector.shape_cast %167 : vector<8x128xf32> to vector<1x8x128xf32>
    tpu.vector_store %arg9[%c3_59, %c0_60, %c0_61], %170 {strides = array<i32>} : memref<8x8x128xf32, #tpu.memory_space<vmem>>, vector<1x8x128xf32>,
    %c4 = arith.constant 4 : index
    %c0_62 = arith.constant 0 : index
    %c0_63 = arith.constant 0 : index
    %171 = vector.load %arg13[%c4, %c0_62, %c0_63] : memref<8x8x512xf32, #tpu.memory_space<vmem>>, vector<1x8x512xf32>
    %172 = vector.shape_cast %171 : vector<1x8x512xf32> to vector<8x512xf32>
    %173 = arith.truncf %167 : vector<8x128xf32> to vector<8x128xbf16>
    %cst_64 = arith.constant dense<0.000000e+00> : vector<8x512xf32>
    %174 = tpu.matmul %173, %4, %cst_64 {dimension_numbers = #tpu.dot_dimension_numbers<[1], [0], [0], [1], [0, 0, 1, 1], [], []>} : vector<8x128xbf16>, vector<128x512xbf16>, vector<8x512xf32> -> vector<8x512xf32>
    %175 = arith.addf %172, %174 : vector<8x512xf32>
    %176 = vector.extract_strided_slice %175 {offsets = [0, 0], sizes = [8, 128], strides = [1, 1]} : vector<8x512xf32> to vector<8x128xf32>
    %177 = math.exp %176 : vector<8x128xf32>
    %178 = vector.extract_strided_slice %175 {offsets = [0, 128], sizes = [8, 128], strides = [1, 1]} : vector<8x512xf32> to vector<8x128xf32>
    %179 = arith.negf %178 : vector<8x128xf32>
    %180 = math.exp %179 : vector<8x128xf32>
    %cst_65 = arith.constant 1.000000e+00 : f32
    %181 = vector.broadcast %cst_65 : f32 to vector<8x128xf32>
    %182 = arith.addf %181, %180 : vector<8x128xf32>
    %183 = arith.divf %181, %182 : vector<8x128xf32>
    %184 = vector.extract_strided_slice %175 {offsets = [0, 256], sizes = [8, 128], strides = [1, 1]} : vector<8x512xf32> to vector<8x128xf32>
    %185 = math.tanh %184 : vector<8x128xf32>
    %186 = vector.extract_strided_slice %175 {offsets = [0, 384], sizes = [8, 128], strides = [1, 1]} : vector<8x512xf32> to vector<8x128xf32>
    %187 = arith.negf %186 : vector<8x128xf32>
    %188 = math.exp %187 : vector<8x128xf32>
    %cst_66 = arith.constant 1.000000e+00 : f32
    %189 = vector.broadcast %cst_66 : f32 to vector<8x128xf32>
    %190 = arith.addf %189, %188 : vector<8x128xf32>
    %191 = arith.divf %189, %190 : vector<8x128xf32>
    %192 = arith.mulf %183, %155 : vector<8x128xf32>
    %193 = arith.addf %192, %177 : vector<8x128xf32>
    %194 = arith.mulf %183, %158 : vector<8x128xf32>
    %195 = arith.mulf %177, %185 : vector<8x128xf32>
    %196 = arith.addf %194, %195 : vector<8x128xf32>
    %cst_67 = arith.constant 9.99999993E-9 : f32
    %197 = vector.broadcast %cst_67 : f32 to vector<8x128xf32>
    %198 = arith.addf %193, %197 : vector<8x128xf32>
    %199 = tpu.reciprocal %198 {approx = true} : vector<8x128xf32> -> vector<8x128xf32>
    %200 = arith.mulf %198, %199 : vector<8x128xf32>
    %cst_68 = arith.constant 2.000000e+00 : f32
    %201 = vector.broadcast %cst_68 : f32 to vector<8x128xf32>
    %202 = arith.subf %201, %200 : vector<8x128xf32>
    %203 = arith.mulf %199, %202 : vector<8x128xf32>
    %204 = arith.mulf %191, %196 : vector<8x128xf32>
    %205 = arith.mulf %204, %203 : vector<8x128xf32>
    %c4_69 = arith.constant 4 : index
    %c0_70 = arith.constant 0 : index
    %c0_71 = arith.constant 0 : index
    %206 = vector.load %arg9[%c4_69, %c0_70, %c0_71] : memref<8x8x128xf32, #tpu.memory_space<vmem>>, vector<1x8x128xf32>
    %207 = vector.shape_cast %206 : vector<1x8x128xf32> to vector<8x128xf32>
    %208 = vector.shape_cast %205 : vector<8x128xf32> to vector<1x8x128xf32>
    tpu.vector_store %arg9[%c4_69, %c0_70, %c0_71], %208 {strides = array<i32>} : memref<8x8x128xf32, #tpu.memory_space<vmem>>, vector<1x8x128xf32>,
    %c5 = arith.constant 5 : index
    %c0_72 = arith.constant 0 : index
    %c0_73 = arith.constant 0 : index
    %209 = vector.load %arg13[%c5, %c0_72, %c0_73] : memref<8x8x512xf32, #tpu.memory_space<vmem>>, vector<1x8x512xf32>
    %210 = vector.shape_cast %209 : vector<1x8x512xf32> to vector<8x512xf32>
    %211 = arith.truncf %205 : vector<8x128xf32> to vector<8x128xbf16>
    %cst_74 = arith.constant dense<0.000000e+00> : vector<8x512xf32>
    %212 = tpu.matmul %211, %4, %cst_74 {dimension_numbers = #tpu.dot_dimension_numbers<[1], [0], [0], [1], [0, 0, 1, 1], [], []>} : vector<8x128xbf16>, vector<128x512xbf16>, vector<8x512xf32> -> vector<8x512xf32>
    %213 = arith.addf %210, %212 : vector<8x512xf32>
    %214 = vector.extract_strided_slice %213 {offsets = [0, 0], sizes = [8, 128], strides = [1, 1]} : vector<8x512xf32> to vector<8x128xf32>
    %215 = math.exp %214 : vector<8x128xf32>
    %216 = vector.extract_strided_slice %213 {offsets = [0, 128], sizes = [8, 128], strides = [1, 1]} : vector<8x512xf32> to vector<8x128xf32>
    %217 = arith.negf %216 : vector<8x128xf32>
    %218 = math.exp %217 : vector<8x128xf32>
    %cst_75 = arith.constant 1.000000e+00 : f32
    %219 = vector.broadcast %cst_75 : f32 to vector<8x128xf32>
    %220 = arith.addf %219, %218 : vector<8x128xf32>
    %221 = arith.divf %219, %220 : vector<8x128xf32>
    %222 = vector.extract_strided_slice %213 {offsets = [0, 256], sizes = [8, 128], strides = [1, 1]} : vector<8x512xf32> to vector<8x128xf32>
    %223 = math.tanh %222 : vector<8x128xf32>
    %224 = vector.extract_strided_slice %213 {offsets = [0, 384], sizes = [8, 128], strides = [1, 1]} : vector<8x512xf32> to vector<8x128xf32>
    %225 = arith.negf %224 : vector<8x128xf32>
    %226 = math.exp %225 : vector<8x128xf32>
    %cst_76 = arith.constant 1.000000e+00 : f32
    %227 = vector.broadcast %cst_76 : f32 to vector<8x128xf32>
    %228 = arith.addf %227, %226 : vector<8x128xf32>
    %229 = arith.divf %227, %228 : vector<8x128xf32>
    %230 = arith.mulf %221, %193 : vector<8x128xf32>
    %231 = arith.addf %230, %215 : vector<8x128xf32>
    %232 = arith.mulf %221, %196 : vector<8x128xf32>
    %233 = arith.mulf %215, %223 : vector<8x128xf32>
    %234 = arith.addf %232, %233 : vector<8x128xf32>
    %cst_77 = arith.constant 9.99999993E-9 : f32
    %235 = vector.broadcast %cst_77 : f32 to vector<8x128xf32>
    %236 = arith.addf %231, %235 : vector<8x128xf32>
    %237 = tpu.reciprocal %236 {approx = true} : vector<8x128xf32> -> vector<8x128xf32>
    %238 = arith.mulf %236, %237 : vector<8x128xf32>
    %cst_78 = arith.constant 2.000000e+00 : f32
    %239 = vector.broadcast %cst_78 : f32 to vector<8x128xf32>
    %240 = arith.subf %239, %238 : vector<8x128xf32>
    %241 = arith.mulf %237, %240 : vector<8x128xf32>
    %242 = arith.mulf %229, %234 : vector<8x128xf32>
    %243 = arith.mulf %242, %241 : vector<8x128xf32>
    %c5_79 = arith.constant 5 : index
    %c0_80 = arith.constant 0 : index
    %c0_81 = arith.constant 0 : index
    %244 = vector.load %arg9[%c5_79, %c0_80, %c0_81] : memref<8x8x128xf32, #tpu.memory_space<vmem>>, vector<1x8x128xf32>
    %245 = vector.shape_cast %244 : vector<1x8x128xf32> to vector<8x128xf32>
    %246 = vector.shape_cast %243 : vector<8x128xf32> to vector<1x8x128xf32>
    tpu.vector_store %arg9[%c5_79, %c0_80, %c0_81], %246 {strides = array<i32>} : memref<8x8x128xf32, #tpu.memory_space<vmem>>, vector<1x8x128xf32>,
    %c6 = arith.constant 6 : index
    %c0_82 = arith.constant 0 : index
    %c0_83 = arith.constant 0 : index
    %247 = vector.load %arg13[%c6, %c0_82, %c0_83] : memref<8x8x512xf32, #tpu.memory_space<vmem>>, vector<1x8x512xf32>
    %248 = vector.shape_cast %247 : vector<1x8x512xf32> to vector<8x512xf32>
    %249 = arith.truncf %243 : vector<8x128xf32> to vector<8x128xbf16>
    %cst_84 = arith.constant dense<0.000000e+00> : vector<8x512xf32>
    %250 = tpu.matmul %249, %4, %cst_84 {dimension_numbers = #tpu.dot_dimension_numbers<[1], [0], [0], [1], [0, 0, 1, 1], [], []>} : vector<8x128xbf16>, vector<128x512xbf16>, vector<8x512xf32> -> vector<8x512xf32>
    %251 = arith.addf %248, %250 : vector<8x512xf32>
    %252 = vector.extract_strided_slice %251 {offsets = [0, 0], sizes = [8, 128], strides = [1, 1]} : vector<8x512xf32> to vector<8x128xf32>
    %253 = math.exp %252 : vector<8x128xf32>
    %254 = vector.extract_strided_slice %251 {offsets = [0, 128], sizes = [8, 128], strides = [1, 1]} : vector<8x512xf32> to vector<8x128xf32>
    %255 = arith.negf %254 : vector<8x128xf32>
    %256 = math.exp %255 : vector<8x128xf32>
    %cst_85 = arith.constant 1.000000e+00 : f32
    %257 = vector.broadcast %cst_85 : f32 to vector<8x128xf32>
    %258 = arith.addf %257, %256 : vector<8x128xf32>
    %259 = arith.divf %257, %258 : vector<8x128xf32>
    %260 = vector.extract_strided_slice %251 {offsets = [0, 256], sizes = [8, 128], strides = [1, 1]} : vector<8x512xf32> to vector<8x128xf32>
    %261 = math.tanh %260 : vector<8x128xf32>
    %262 = vector.extract_strided_slice %251 {offsets = [0, 384], sizes = [8, 128], strides = [1, 1]} : vector<8x512xf32> to vector<8x128xf32>
    %263 = arith.negf %262 : vector<8x128xf32>
    %264 = math.exp %263 : vector<8x128xf32>
    %cst_86 = arith.constant 1.000000e+00 : f32
    %265 = vector.broadcast %cst_86 : f32 to vector<8x128xf32>
    %266 = arith.addf %265, %264 : vector<8x128xf32>
    %267 = arith.divf %265, %266 : vector<8x128xf32>
    %268 = arith.mulf %259, %231 : vector<8x128xf32>
    %269 = arith.addf %268, %253 : vector<8x128xf32>
    %270 = arith.mulf %259, %234 : vector<8x128xf32>
    %271 = arith.mulf %253, %261 : vector<8x128xf32>
    %272 = arith.addf %270, %271 : vector<8x128xf32>
    %cst_87 = arith.constant 9.99999993E-9 : f32
    %273 = vector.broadcast %cst_87 : f32 to vector<8x128xf32>
    %274 = arith.addf %269, %273 : vector<8x128xf32>
    %275 = tpu.reciprocal %274 {approx = true} : vector<8x128xf32> -> vector<8x128xf32>
    %276 = arith.mulf %274, %275 : vector<8x128xf32>
    %cst_88 = arith.constant 2.000000e+00 : f32
    %277 = vector.broadcast %cst_88 : f32 to vector<8x128xf32>
    %278 = arith.subf %277, %276 : vector<8x128xf32>
    %279 = arith.mulf %275, %278 : vector<8x128xf32>
    %280 = arith.mulf %267, %272 : vector<8x128xf32>
    %281 = arith.mulf %280, %279 : vector<8x128xf32>
    %c6_89 = arith.constant 6 : index
    %c0_90 = arith.constant 0 : index
    %c0_91 = arith.constant 0 : index
    %282 = vector.load %arg9[%c6_89, %c0_90, %c0_91] : memref<8x8x128xf32, #tpu.memory_space<vmem>>, vector<1x8x128xf32>
    %283 = vector.shape_cast %282 : vector<1x8x128xf32> to vector<8x128xf32>
    %284 = vector.shape_cast %281 : vector<8x128xf32> to vector<1x8x128xf32>
    tpu.vector_store %arg9[%c6_89, %c0_90, %c0_91], %284 {strides = array<i32>} : memref<8x8x128xf32, #tpu.memory_space<vmem>>, vector<1x8x128xf32>,
    %c7 = arith.constant 7 : index
    %c0_92 = arith.constant 0 : index
    %c0_93 = arith.constant 0 : index
    %285 = vector.load %arg13[%c7, %c0_92, %c0_93] : memref<8x8x512xf32, #tpu.memory_space<vmem>>, vector<1x8x512xf32>
    %286 = vector.shape_cast %285 : vector<1x8x512xf32> to vector<8x512xf32>
    %287 = arith.truncf %281 : vector<8x128xf32> to vector<8x128xbf16>
    %cst_94 = arith.constant dense<0.000000e+00> : vector<8x512xf32>
    %288 = tpu.matmul %287, %4, %cst_94 {dimension_numbers = #tpu.dot_dimension_numbers<[1], [0], [0], [1], [0, 0, 1, 1], [], []>} : vector<8x128xbf16>, vector<128x512xbf16>, vector<8x512xf32> -> vector<8x512xf32>
    %289 = arith.addf %286, %288 : vector<8x512xf32>
    %290 = vector.extract_strided_slice %289 {offsets = [0, 0], sizes = [8, 128], strides = [1, 1]} : vector<8x512xf32> to vector<8x128xf32>
    %291 = math.exp %290 : vector<8x128xf32>
    %292 = vector.extract_strided_slice %289 {offsets = [0, 128], sizes = [8, 128], strides = [1, 1]} : vector<8x512xf32> to vector<8x128xf32>
    %293 = arith.negf %292 : vector<8x128xf32>
    %294 = math.exp %293 : vector<8x128xf32>
    %cst_95 = arith.constant 1.000000e+00 : f32
    %295 = vector.broadcast %cst_95 : f32 to vector<8x128xf32>
    %296 = arith.addf %295, %294 : vector<8x128xf32>
    %297 = arith.divf %295, %296 : vector<8x128xf32>
    %298 = vector.extract_strided_slice %289 {offsets = [0, 256], sizes = [8, 128], strides = [1, 1]} : vector<8x512xf32> to vector<8x128xf32>
    %299 = math.tanh %298 : vector<8x128xf32>
    %300 = vector.extract_strided_slice %289 {offsets = [0, 384], sizes = [8, 128], strides = [1, 1]} : vector<8x512xf32> to vector<8x128xf32>
    %301 = arith.negf %300 : vector<8x128xf32>
    %302 = math.exp %301 : vector<8x128xf32>
    %cst_96 = arith.constant 1.000000e+00 : f32
    %303 = vector.broadcast %cst_96 : f32 to vector<8x128xf32>
    %304 = arith.addf %303, %302 : vector<8x128xf32>
    %305 = arith.divf %303, %304 : vector<8x128xf32>
    %306 = arith.mulf %297, %269 : vector<8x128xf32>
    %307 = arith.addf %306, %291 : vector<8x128xf32>
    %308 = arith.mulf %297, %272 : vector<8x128xf32>
    %309 = arith.mulf %291, %299 : vector<8x128xf32>
    %310 = arith.addf %308, %309 : vector<8x128xf32>
    %cst_97 = arith.constant 9.99999993E-9 : f32
    %311 = vector.broadcast %cst_97 : f32 to vector<8x128xf32>
    %312 = arith.addf %307, %311 : vector<8x128xf32>
    %313 = tpu.reciprocal %312 {approx = true} : vector<8x128xf32> -> vector<8x128xf32>
    %314 = arith.mulf %312, %313 : vector<8x128xf32>
    %cst_98 = arith.constant 2.000000e+00 : f32
    %315 = vector.broadcast %cst_98 : f32 to vector<8x128xf32>
    %316 = arith.subf %315, %314 : vector<8x128xf32>
    %317 = arith.mulf %313, %316 : vector<8x128xf32>
    %318 = arith.mulf %305, %310 : vector<8x128xf32>
    %319 = arith.mulf %318, %317 : vector<8x128xf32>
    %c7_99 = arith.constant 7 : index
    %c0_100 = arith.constant 0 : index
    %c0_101 = arith.constant 0 : index
    %320 = vector.load %arg9[%c7_99, %c0_100, %c0_101] : memref<8x8x128xf32, #tpu.memory_space<vmem>>, vector<1x8x128xf32>
    %321 = vector.shape_cast %320 : vector<1x8x128xf32> to vector<8x128xf32>
    %322 = vector.shape_cast %319 : vector<8x128xf32> to vector<1x8x128xf32>
    tpu.vector_store %arg9[%c7_99, %c0_100, %c0_101], %322 {strides = array<i32>} : memref<8x8x128xf32, #tpu.memory_space<vmem>>, vector<1x8x128xf32>,
    %c0_102 = arith.constant 0 : index
    %c0_103 = arith.constant 0 : index
    %c0_104 = arith.constant 0 : index
    %323 = vector.load %arg10[%c0_102, %c0_103, %c0_104] : memref<2x8x128xf32, #tpu.memory_space<vmem>>, vector<1x8x128xf32>
    %324 = vector.shape_cast %323 : vector<1x8x128xf32> to vector<8x128xf32>
    %325 = vector.shape_cast %319 : vector<8x128xf32> to vector<1x8x128xf32>
    tpu.vector_store %arg10[%c0_102, %c0_103, %c0_104], %325 {strides = array<i32>} : memref<2x8x128xf32, #tpu.memory_space<vmem>>, vector<1x8x128xf32>,
    %c0_105 = arith.constant 0 : index
    %c0_106 = arith.constant 0 : index
    %c0_107 = arith.constant 0 : index
    %326 = vector.load %arg11[%c0_105, %c0_106, %c0_107] : memref<2x8x128xf32, #tpu.memory_space<vmem>>, vector<1x8x128xf32>
    %327 = vector.shape_cast %326 : vector<1x8x128xf32> to vector<8x128xf32>
    %328 = vector.shape_cast %310 : vector<8x128xf32> to vector<1x8x128xf32>
    tpu.vector_store %arg11[%c0_105, %c0_106, %c0_107], %328 {strides = array<i32>} : memref<2x8x128xf32, #tpu.memory_space<vmem>>, vector<1x8x128xf32>,
    %c0_108 = arith.constant 0 : index
    %c0_109 = arith.constant 0 : index
    %c0_110 = arith.constant 0 : index
    %329 = vector.load %arg12[%c0_108, %c0_109, %c0_110] : memref<2x8x128xf32, #tpu.memory_space<vmem>>, vector<1x8x128xf32>
    %330 = vector.shape_cast %329 : vector<1x8x128xf32> to vector<8x128xf32>
    %331 = vector.shape_cast %307 : vector<8x128xf32> to vector<1x8x128xf32>
    tpu.vector_store %arg12[%c0_108, %c0_109, %c0_110], %331 {strides = array<i32>} : memref<2x8x128xf32, #tpu.memory_space<vmem>>, vector<1x8x128xf32>,
    %c0_111 = arith.constant 0 : index
    %c0_112 = arith.constant 0 : index
    %332 = vector.load %arg6[%c0_111, %c0_112] : memref<128x512xbf16, #tpu.memory_space<vmem>>, vector<128x512xbf16>
    %c0_113 = arith.constant 0 : index
    %c0_114 = arith.constant 0 : index
    %333 = vector.load %arg7[%c0_113, %c0_114] : memref<128x512xbf16, #tpu.memory_space<vmem>>, vector<128x512xbf16>
    %c0_115 = arith.constant 0 : index
    %c0_116 = arith.constant 0 : index
    %334 = vector.load %arg8[%c0_115, %c0_116] : memref<1x512xf32, #tpu.memory_space<vmem>>, vector<1x512xf32>
    %c0_117 = arith.constant 0 : index
    %c0_118 = arith.constant 0 : index
    %c0_119 = arith.constant 0 : index
    %335 = vector.load %arg9[%c0_117, %c0_118, %c0_119] : memref<8x8x128xf32, #tpu.memory_space<vmem>>, vector<8x8x128xf32>
    %336 = vector.shape_cast %335 : vector<8x8x128xf32> to vector<64x128xf32>
    %337 = arith.truncf %336 : vector<64x128xf32> to vector<64x128xbf16>
    %cst_120 = arith.constant dense<0.000000e+00> : vector<64x512xf32>
    %338 = tpu.matmul %337, %332, %cst_120 {dimension_numbers = #tpu.dot_dimension_numbers<[1], [0], [0], [1], [0, 0, 1, 1], [], []>} : vector<64x128xbf16>, vector<128x512xbf16>, vector<64x512xf32> -> vector<64x512xf32>
    %339 = vector.broadcast %334 : vector<1x512xf32> to vector<64x512xf32>
    %340 = arith.addf %338, %339 : vector<64x512xf32>
    %341 = vector.shape_cast %340 : vector<64x512xf32> to vector<8x8x512xf32>
    %c0_121 = arith.constant 0 : index
    %c0_122 = arith.constant 0 : index
    %c0_123 = arith.constant 0 : index
    %342 = vector.load %arg13[%c0_121, %c0_122, %c0_123] : memref<8x8x512xf32, #tpu.memory_space<vmem>>, vector<8x8x512xf32>
    tpu.vector_store %arg13[%c0_121, %c0_122, %c0_123], %341 {strides = array<i32>} : memref<8x8x512xf32, #tpu.memory_space<vmem>>, vector<8x8x512xf32>,
    %c1_124 = arith.constant 1 : index
    %c0_125 = arith.constant 0 : index
    %c0_126 = arith.constant 0 : index
    %343 = vector.load %arg10[%c1_124, %c0_125, %c0_126] : memref<2x8x128xf32, #tpu.memory_space<vmem>>, vector<1x8x128xf32>
    %344 = vector.shape_cast %343 : vector<1x8x128xf32> to vector<8x128xf32>
    %c1_127 = arith.constant 1 : index
    %c0_128 = arith.constant 0 : index
    %c0_129 = arith.constant 0 : index
    %345 = vector.load %arg11[%c1_127, %c0_128, %c0_129] : memref<2x8x128xf32, #tpu.memory_space<vmem>>, vector<1x8x128xf32>
    %346 = vector.shape_cast %345 : vector<1x8x128xf32> to vector<8x128xf32>
    %c1_130 = arith.constant 1 : index
    %c0_131 = arith.constant 0 : index
    %c0_132 = arith.constant 0 : index
    %347 = vector.load %arg12[%c1_130, %c0_131, %c0_132] : memref<2x8x128xf32, #tpu.memory_space<vmem>>, vector<1x8x128xf32>
    %348 = vector.shape_cast %347 : vector<1x8x128xf32> to vector<8x128xf32>
    %c0_133 = arith.constant 0 : index
    %c0_134 = arith.constant 0 : index
    %c0_135 = arith.constant 0 : index
    %349 = vector.load %arg13[%c0_133, %c0_134, %c0_135] : memref<8x8x512xf32, #tpu.memory_space<vmem>>, vector<1x8x512xf32>
    %350 = vector.shape_cast %349 : vector<1x8x512xf32> to vector<8x512xf32>
    %351 = arith.truncf %344 : vector<8x128xf32> to vector<8x128xbf16>
    %cst_136 = arith.constant dense<0.000000e+00> : vector<8x512xf32>
    %352 = tpu.matmul %351, %333, %cst_136 {dimension_numbers = #tpu.dot_dimension_numbers<[1], [0], [0], [1], [0, 0, 1, 1], [], []>} : vector<8x128xbf16>, vector<128x512xbf16>, vector<8x512xf32> -> vector<8x512xf32>
    %353 = arith.addf %350, %352 : vector<8x512xf32>
    %354 = vector.extract_strided_slice %353 {offsets = [0, 0], sizes = [8, 128], strides = [1, 1]} : vector<8x512xf32> to vector<8x128xf32>
    %355 = math.exp %354 : vector<8x128xf32>
    %356 = vector.extract_strided_slice %353 {offsets = [0, 128], sizes = [8, 128], strides = [1, 1]} : vector<8x512xf32> to vector<8x128xf32>
    %357 = arith.negf %356 : vector<8x128xf32>
    %358 = math.exp %357 : vector<8x128xf32>
    %cst_137 = arith.constant 1.000000e+00 : f32
    %359 = vector.broadcast %cst_137 : f32 to vector<8x128xf32>
    %360 = arith.addf %359, %358 : vector<8x128xf32>
    %361 = arith.divf %359, %360 : vector<8x128xf32>
    %362 = vector.extract_strided_slice %353 {offsets = [0, 256], sizes = [8, 128], strides = [1, 1]} : vector<8x512xf32> to vector<8x128xf32>
    %363 = math.tanh %362 : vector<8x128xf32>
    %364 = vector.extract_strided_slice %353 {offsets = [0, 384], sizes = [8, 128], strides = [1, 1]} : vector<8x512xf32> to vector<8x128xf32>
    %365 = arith.negf %364 : vector<8x128xf32>
    %366 = math.exp %365 : vector<8x128xf32>
    %cst_138 = arith.constant 1.000000e+00 : f32
    %367 = vector.broadcast %cst_138 : f32 to vector<8x128xf32>
    %368 = arith.addf %367, %366 : vector<8x128xf32>
    %369 = arith.divf %367, %368 : vector<8x128xf32>
    %370 = arith.mulf %361, %348 : vector<8x128xf32>
    %371 = arith.addf %370, %355 : vector<8x128xf32>
    %372 = arith.mulf %361, %346 : vector<8x128xf32>
    %373 = arith.mulf %355, %363 : vector<8x128xf32>
    %374 = arith.addf %372, %373 : vector<8x128xf32>
    %cst_139 = arith.constant 9.99999993E-9 : f32
    %375 = vector.broadcast %cst_139 : f32 to vector<8x128xf32>
    %376 = arith.addf %371, %375 : vector<8x128xf32>
    %377 = tpu.reciprocal %376 {approx = true} : vector<8x128xf32> -> vector<8x128xf32>
    %378 = arith.mulf %376, %377 : vector<8x128xf32>
    %cst_140 = arith.constant 2.000000e+00 : f32
    %379 = vector.broadcast %cst_140 : f32 to vector<8x128xf32>
    %380 = arith.subf %379, %378 : vector<8x128xf32>
    %381 = arith.mulf %377, %380 : vector<8x128xf32>
    %382 = arith.mulf %369, %374 : vector<8x128xf32>
    %383 = arith.mulf %382, %381 : vector<8x128xf32>
    %c0_141 = arith.constant 0 : index
    %c0_142 = arith.constant 0 : index
    %c0_143 = arith.constant 0 : index
    %384 = vector.load %arg9[%c0_141, %c0_142, %c0_143] : memref<8x8x128xf32, #tpu.memory_space<vmem>>, vector<1x8x128xf32>
    %385 = vector.shape_cast %384 : vector<1x8x128xf32> to vector<8x128xf32>
    %386 = vector.shape_cast %383 : vector<8x128xf32> to vector<1x8x128xf32>
    tpu.vector_store %arg9[%c0_141, %c0_142, %c0_143], %386 {strides = array<i32>} : memref<8x8x128xf32, #tpu.memory_space<vmem>>, vector<1x8x128xf32>,
    %c1_144 = arith.constant 1 : index
    %c0_145 = arith.constant 0 : index
    %c0_146 = arith.constant 0 : index
    %387 = vector.load %arg13[%c1_144, %c0_145, %c0_146] : memref<8x8x512xf32, #tpu.memory_space<vmem>>, vector<1x8x512xf32>
    %388 = vector.shape_cast %387 : vector<1x8x512xf32> to vector<8x512xf32>
    %389 = arith.truncf %383 : vector<8x128xf32> to vector<8x128xbf16>
    %cst_147 = arith.constant dense<0.000000e+00> : vector<8x512xf32>
    %390 = tpu.matmul %389, %333, %cst_147 {dimension_numbers = #tpu.dot_dimension_numbers<[1], [0], [0], [1], [0, 0, 1, 1], [], []>} : vector<8x128xbf16>, vector<128x512xbf16>, vector<8x512xf32> -> vector<8x512xf32>
    %391 = arith.addf %388, %390 : vector<8x512xf32>
    %392 = vector.extract_strided_slice %391 {offsets = [0, 0], sizes = [8, 128], strides = [1, 1]} : vector<8x512xf32> to vector<8x128xf32>
    %393 = math.exp %392 : vector<8x128xf32>
    %394 = vector.extract_strided_slice %391 {offsets = [0, 128], sizes = [8, 128], strides = [1, 1]} : vector<8x512xf32> to vector<8x128xf32>
    %395 = arith.negf %394 : vector<8x128xf32>
    %396 = math.exp %395 : vector<8x128xf32>
    %cst_148 = arith.constant 1.000000e+00 : f32
    %397 = vector.broadcast %cst_148 : f32 to vector<8x128xf32>
    %398 = arith.addf %397, %396 : vector<8x128xf32>
    %399 = arith.divf %397, %398 : vector<8x128xf32>
    %400 = vector.extract_strided_slice %391 {offsets = [0, 256], sizes = [8, 128], strides = [1, 1]} : vector<8x512xf32> to vector<8x128xf32>
    %401 = math.tanh %400 : vector<8x128xf32>
    %402 = vector.extract_strided_slice %391 {offsets = [0, 384], sizes = [8, 128], strides = [1, 1]} : vector<8x512xf32> to vector<8x128xf32>
    %403 = arith.negf %402 : vector<8x128xf32>
    %404 = math.exp %403 : vector<8x128xf32>
    %cst_149 = arith.constant 1.000000e+00 : f32
    %405 = vector.broadcast %cst_149 : f32 to vector<8x128xf32>
    %406 = arith.addf %405, %404 : vector<8x128xf32>
    %407 = arith.divf %405, %406 : vector<8x128xf32>
    %408 = arith.mulf %399, %371 : vector<8x128xf32>
    %409 = arith.addf %408, %393 : vector<8x128xf32>
    %410 = arith.mulf %399, %374 : vector<8x128xf32>
    %411 = arith.mulf %393, %401 : vector<8x128xf32>
    %412 = arith.addf %410, %411 : vector<8x128xf32>
    %cst_150 = arith.constant 9.99999993E-9 : f32
    %413 = vector.broadcast %cst_150 : f32 to vector<8x128xf32>
    %414 = arith.addf %409, %413 : vector<8x128xf32>
    %415 = tpu.reciprocal %414 {approx = true} : vector<8x128xf32> -> vector<8x128xf32>
    %416 = arith.mulf %414, %415 : vector<8x128xf32>
    %cst_151 = arith.constant 2.000000e+00 : f32
    %417 = vector.broadcast %cst_151 : f32 to vector<8x128xf32>
    %418 = arith.subf %417, %416 : vector<8x128xf32>
    %419 = arith.mulf %415, %418 : vector<8x128xf32>
    %420 = arith.mulf %407, %412 : vector<8x128xf32>
    %421 = arith.mulf %420, %419 : vector<8x128xf32>
    %c1_152 = arith.constant 1 : index
    %c0_153 = arith.constant 0 : index
    %c0_154 = arith.constant 0 : index
    %422 = vector.load %arg9[%c1_152, %c0_153, %c0_154] : memref<8x8x128xf32, #tpu.memory_space<vmem>>, vector<1x8x128xf32>
    %423 = vector.shape_cast %422 : vector<1x8x128xf32> to vector<8x128xf32>
    %424 = vector.shape_cast %421 : vector<8x128xf32> to vector<1x8x128xf32>
    tpu.vector_store %arg9[%c1_152, %c0_153, %c0_154], %424 {strides = array<i32>} : memref<8x8x128xf32, #tpu.memory_space<vmem>>, vector<1x8x128xf32>,
    %c2_155 = arith.constant 2 : index
    %c0_156 = arith.constant 0 : index
    %c0_157 = arith.constant 0 : index
    %425 = vector.load %arg13[%c2_155, %c0_156, %c0_157] : memref<8x8x512xf32, #tpu.memory_space<vmem>>, vector<1x8x512xf32>
    %426 = vector.shape_cast %425 : vector<1x8x512xf32> to vector<8x512xf32>
    %427 = arith.truncf %421 : vector<8x128xf32> to vector<8x128xbf16>
    %cst_158 = arith.constant dense<0.000000e+00> : vector<8x512xf32>
    %428 = tpu.matmul %427, %333, %cst_158 {dimension_numbers = #tpu.dot_dimension_numbers<[1], [0], [0], [1], [0, 0, 1, 1], [], []>} : vector<8x128xbf16>, vector<128x512xbf16>, vector<8x512xf32> -> vector<8x512xf32>
    %429 = arith.addf %426, %428 : vector<8x512xf32>
    %430 = vector.extract_strided_slice %429 {offsets = [0, 0], sizes = [8, 128], strides = [1, 1]} : vector<8x512xf32> to vector<8x128xf32>
    %431 = math.exp %430 : vector<8x128xf32>
    %432 = vector.extract_strided_slice %429 {offsets = [0, 128], sizes = [8, 128], strides = [1, 1]} : vector<8x512xf32> to vector<8x128xf32>
    %433 = arith.negf %432 : vector<8x128xf32>
    %434 = math.exp %433 : vector<8x128xf32>
    %cst_159 = arith.constant 1.000000e+00 : f32
    %435 = vector.broadcast %cst_159 : f32 to vector<8x128xf32>
    %436 = arith.addf %435, %434 : vector<8x128xf32>
    %437 = arith.divf %435, %436 : vector<8x128xf32>
    %438 = vector.extract_strided_slice %429 {offsets = [0, 256], sizes = [8, 128], strides = [1, 1]} : vector<8x512xf32> to vector<8x128xf32>
    %439 = math.tanh %438 : vector<8x128xf32>
    %440 = vector.extract_strided_slice %429 {offsets = [0, 384], sizes = [8, 128], strides = [1, 1]} : vector<8x512xf32> to vector<8x128xf32>
    %441 = arith.negf %440 : vector<8x128xf32>
    %442 = math.exp %441 : vector<8x128xf32>
    %cst_160 = arith.constant 1.000000e+00 : f32
    %443 = vector.broadcast %cst_160 : f32 to vector<8x128xf32>
    %444 = arith.addf %443, %442 : vector<8x128xf32>
    %445 = arith.divf %443, %444 : vector<8x128xf32>
    %446 = arith.mulf %437, %409 : vector<8x128xf32>
    %447 = arith.addf %446, %431 : vector<8x128xf32>
    %448 = arith.mulf %437, %412 : vector<8x128xf32>
    %449 = arith.mulf %431, %439 : vector<8x128xf32>
    %450 = arith.addf %448, %449 : vector<8x128xf32>
    %cst_161 = arith.constant 9.99999993E-9 : f32
    %451 = vector.broadcast %cst_161 : f32 to vector<8x128xf32>
    %452 = arith.addf %447, %451 : vector<8x128xf32>
    %453 = tpu.reciprocal %452 {approx = true} : vector<8x128xf32> -> vector<8x128xf32>
    %454 = arith.mulf %452, %453 : vector<8x128xf32>
    %cst_162 = arith.constant 2.000000e+00 : f32
    %455 = vector.broadcast %cst_162 : f32 to vector<8x128xf32>
    %456 = arith.subf %455, %454 : vector<8x128xf32>
    %457 = arith.mulf %453, %456 : vector<8x128xf32>
    %458 = arith.mulf %445, %450 : vector<8x128xf32>
    %459 = arith.mulf %458, %457 : vector<8x128xf32>
    %c2_163 = arith.constant 2 : index
    %c0_164 = arith.constant 0 : index
    %c0_165 = arith.constant 0 : index
    %460 = vector.load %arg9[%c2_163, %c0_164, %c0_165] : memref<8x8x128xf32, #tpu.memory_space<vmem>>, vector<1x8x128xf32>
    %461 = vector.shape_cast %460 : vector<1x8x128xf32> to vector<8x128xf32>
    %462 = vector.shape_cast %459 : vector<8x128xf32> to vector<1x8x128xf32>
    tpu.vector_store %arg9[%c2_163, %c0_164, %c0_165], %462 {strides = array<i32>} : memref<8x8x128xf32, #tpu.memory_space<vmem>>, vector<1x8x128xf32>,
    %c3_166 = arith.constant 3 : index
    %c0_167 = arith.constant 0 : index
    %c0_168 = arith.constant 0 : index
    %463 = vector.load %arg13[%c3_166, %c0_167, %c0_168] : memref<8x8x512xf32, #tpu.memory_space<vmem>>, vector<1x8x512xf32>
    %464 = vector.shape_cast %463 : vector<1x8x512xf32> to vector<8x512xf32>
    %465 = arith.truncf %459 : vector<8x128xf32> to vector<8x128xbf16>
    %cst_169 = arith.constant dense<0.000000e+00> : vector<8x512xf32>
    %466 = tpu.matmul %465, %333, %cst_169 {dimension_numbers = #tpu.dot_dimension_numbers<[1], [0], [0], [1], [0, 0, 1, 1], [], []>} : vector<8x128xbf16>, vector<128x512xbf16>, vector<8x512xf32> -> vector<8x512xf32>
    %467 = arith.addf %464, %466 : vector<8x512xf32>
    %468 = vector.extract_strided_slice %467 {offsets = [0, 0], sizes = [8, 128], strides = [1, 1]} : vector<8x512xf32> to vector<8x128xf32>
    %469 = math.exp %468 : vector<8x128xf32>
    %470 = vector.extract_strided_slice %467 {offsets = [0, 128], sizes = [8, 128], strides = [1, 1]} : vector<8x512xf32> to vector<8x128xf32>
    %471 = arith.negf %470 : vector<8x128xf32>
    %472 = math.exp %471 : vector<8x128xf32>
    %cst_170 = arith.constant 1.000000e+00 : f32
    %473 = vector.broadcast %cst_170 : f32 to vector<8x128xf32>
    %474 = arith.addf %473, %472 : vector<8x128xf32>
    %475 = arith.divf %473, %474 : vector<8x128xf32>
    %476 = vector.extract_strided_slice %467 {offsets = [0, 256], sizes = [8, 128], strides = [1, 1]} : vector<8x512xf32> to vector<8x128xf32>
    %477 = math.tanh %476 : vector<8x128xf32>
    %478 = vector.extract_strided_slice %467 {offsets = [0, 384], sizes = [8, 128], strides = [1, 1]} : vector<8x512xf32> to vector<8x128xf32>
    %479 = arith.negf %478 : vector<8x128xf32>
    %480 = math.exp %479 : vector<8x128xf32>
    %cst_171 = arith.constant 1.000000e+00 : f32
    %481 = vector.broadcast %cst_171 : f32 to vector<8x128xf32>
    %482 = arith.addf %481, %480 : vector<8x128xf32>
    %483 = arith.divf %481, %482 : vector<8x128xf32>
    %484 = arith.mulf %475, %447 : vector<8x128xf32>
    %485 = arith.addf %484, %469 : vector<8x128xf32>
    %486 = arith.mulf %475, %450 : vector<8x128xf32>
    %487 = arith.mulf %469, %477 : vector<8x128xf32>
    %488 = arith.addf %486, %487 : vector<8x128xf32>
    %cst_172 = arith.constant 9.99999993E-9 : f32
    %489 = vector.broadcast %cst_172 : f32 to vector<8x128xf32>
    %490 = arith.addf %485, %489 : vector<8x128xf32>
    %491 = tpu.reciprocal %490 {approx = true} : vector<8x128xf32> -> vector<8x128xf32>
    %492 = arith.mulf %490, %491 : vector<8x128xf32>
    %cst_173 = arith.constant 2.000000e+00 : f32
    %493 = vector.broadcast %cst_173 : f32 to vector<8x128xf32>
    %494 = arith.subf %493, %492 : vector<8x128xf32>
    %495 = arith.mulf %491, %494 : vector<8x128xf32>
    %496 = arith.mulf %483, %488 : vector<8x128xf32>
    %497 = arith.mulf %496, %495 : vector<8x128xf32>
    %c3_174 = arith.constant 3 : index
    %c0_175 = arith.constant 0 : index
    %c0_176 = arith.constant 0 : index
    %498 = vector.load %arg9[%c3_174, %c0_175, %c0_176] : memref<8x8x128xf32, #tpu.memory_space<vmem>>, vector<1x8x128xf32>
    %499 = vector.shape_cast %498 : vector<1x8x128xf32> to vector<8x128xf32>
    %500 = vector.shape_cast %497 : vector<8x128xf32> to vector<1x8x128xf32>
    tpu.vector_store %arg9[%c3_174, %c0_175, %c0_176], %500 {strides = array<i32>} : memref<8x8x128xf32, #tpu.memory_space<vmem>>, vector<1x8x128xf32>,
    %c4_177 = arith.constant 4 : index
    %c0_178 = arith.constant 0 : index
    %c0_179 = arith.constant 0 : index
    %501 = vector.load %arg13[%c4_177, %c0_178, %c0_179] : memref<8x8x512xf32, #tpu.memory_space<vmem>>, vector<1x8x512xf32>
    %502 = vector.shape_cast %501 : vector<1x8x512xf32> to vector<8x512xf32>
    %503 = arith.truncf %497 : vector<8x128xf32> to vector<8x128xbf16>
    %cst_180 = arith.constant dense<0.000000e+00> : vector<8x512xf32>
    %504 = tpu.matmul %503, %333, %cst_180 {dimension_numbers = #tpu.dot_dimension_numbers<[1], [0], [0], [1], [0, 0, 1, 1], [], []>} : vector<8x128xbf16>, vector<128x512xbf16>, vector<8x512xf32> -> vector<8x512xf32>
    %505 = arith.addf %502, %504 : vector<8x512xf32>
    %506 = vector.extract_strided_slice %505 {offsets = [0, 0], sizes = [8, 128], strides = [1, 1]} : vector<8x512xf32> to vector<8x128xf32>
    %507 = math.exp %506 : vector<8x128xf32>
    %508 = vector.extract_strided_slice %505 {offsets = [0, 128], sizes = [8, 128], strides = [1, 1]} : vector<8x512xf32> to vector<8x128xf32>
    %509 = arith.negf %508 : vector<8x128xf32>
    %510 = math.exp %509 : vector<8x128xf32>
    %cst_181 = arith.constant 1.000000e+00 : f32
    %511 = vector.broadcast %cst_181 : f32 to vector<8x128xf32>
    %512 = arith.addf %511, %510 : vector<8x128xf32>
    %513 = arith.divf %511, %512 : vector<8x128xf32>
    %514 = vector.extract_strided_slice %505 {offsets = [0, 256], sizes = [8, 128], strides = [1, 1]} : vector<8x512xf32> to vector<8x128xf32>
    %515 = math.tanh %514 : vector<8x128xf32>
    %516 = vector.extract_strided_slice %505 {offsets = [0, 384], sizes = [8, 128], strides = [1, 1]} : vector<8x512xf32> to vector<8x128xf32>
    %517 = arith.negf %516 : vector<8x128xf32>
    %518 = math.exp %517 : vector<8x128xf32>
    %cst_182 = arith.constant 1.000000e+00 : f32
    %519 = vector.broadcast %cst_182 : f32 to vector<8x128xf32>
    %520 = arith.addf %519, %518 : vector<8x128xf32>
    %521 = arith.divf %519, %520 : vector<8x128xf32>
    %522 = arith.mulf %513, %485 : vector<8x128xf32>
    %523 = arith.addf %522, %507 : vector<8x128xf32>
    %524 = arith.mulf %513, %488 : vector<8x128xf32>
    %525 = arith.mulf %507, %515 : vector<8x128xf32>
    %526 = arith.addf %524, %525 : vector<8x128xf32>
    %cst_183 = arith.constant 9.99999993E-9 : f32
    %527 = vector.broadcast %cst_183 : f32 to vector<8x128xf32>
    %528 = arith.addf %523, %527 : vector<8x128xf32>
    %529 = tpu.reciprocal %528 {approx = true} : vector<8x128xf32> -> vector<8x128xf32>
    %530 = arith.mulf %528, %529 : vector<8x128xf32>
    %cst_184 = arith.constant 2.000000e+00 : f32
    %531 = vector.broadcast %cst_184 : f32 to vector<8x128xf32>
    %532 = arith.subf %531, %530 : vector<8x128xf32>
    %533 = arith.mulf %529, %532 : vector<8x128xf32>
    %534 = arith.mulf %521, %526 : vector<8x128xf32>
    %535 = arith.mulf %534, %533 : vector<8x128xf32>
    %c4_185 = arith.constant 4 : index
    %c0_186 = arith.constant 0 : index
    %c0_187 = arith.constant 0 : index
    %536 = vector.load %arg9[%c4_185, %c0_186, %c0_187] : memref<8x8x128xf32, #tpu.memory_space<vmem>>, vector<1x8x128xf32>
    %537 = vector.shape_cast %536 : vector<1x8x128xf32> to vector<8x128xf32>
    %538 = vector.shape_cast %535 : vector<8x128xf32> to vector<1x8x128xf32>
    tpu.vector_store %arg9[%c4_185, %c0_186, %c0_187], %538 {strides = array<i32>} : memref<8x8x128xf32, #tpu.memory_space<vmem>>, vector<1x8x128xf32>,
    %c5_188 = arith.constant 5 : index
    %c0_189 = arith.constant 0 : index
    %c0_190 = arith.constant 0 : index
    %539 = vector.load %arg13[%c5_188, %c0_189, %c0_190] : memref<8x8x512xf32, #tpu.memory_space<vmem>>, vector<1x8x512xf32>
    %540 = vector.shape_cast %539 : vector<1x8x512xf32> to vector<8x512xf32>
    %541 = arith.truncf %535 : vector<8x128xf32> to vector<8x128xbf16>
    %cst_191 = arith.constant dense<0.000000e+00> : vector<8x512xf32>
    %542 = tpu.matmul %541, %333, %cst_191 {dimension_numbers = #tpu.dot_dimension_numbers<[1], [0], [0], [1], [0, 0, 1, 1], [], []>} : vector<8x128xbf16>, vector<128x512xbf16>, vector<8x512xf32> -> vector<8x512xf32>
    %543 = arith.addf %540, %542 : vector<8x512xf32>
    %544 = vector.extract_strided_slice %543 {offsets = [0, 0], sizes = [8, 128], strides = [1, 1]} : vector<8x512xf32> to vector<8x128xf32>
    %545 = math.exp %544 : vector<8x128xf32>
    %546 = vector.extract_strided_slice %543 {offsets = [0, 128], sizes = [8, 128], strides = [1, 1]} : vector<8x512xf32> to vector<8x128xf32>
    %547 = arith.negf %546 : vector<8x128xf32>
    %548 = math.exp %547 : vector<8x128xf32>
    %cst_192 = arith.constant 1.000000e+00 : f32
    %549 = vector.broadcast %cst_192 : f32 to vector<8x128xf32>
    %550 = arith.addf %549, %548 : vector<8x128xf32>
    %551 = arith.divf %549, %550 : vector<8x128xf32>
    %552 = vector.extract_strided_slice %543 {offsets = [0, 256], sizes = [8, 128], strides = [1, 1]} : vector<8x512xf32> to vector<8x128xf32>
    %553 = math.tanh %552 : vector<8x128xf32>
    %554 = vector.extract_strided_slice %543 {offsets = [0, 384], sizes = [8, 128], strides = [1, 1]} : vector<8x512xf32> to vector<8x128xf32>
    %555 = arith.negf %554 : vector<8x128xf32>
    %556 = math.exp %555 : vector<8x128xf32>
    %cst_193 = arith.constant 1.000000e+00 : f32
    %557 = vector.broadcast %cst_193 : f32 to vector<8x128xf32>
    %558 = arith.addf %557, %556 : vector<8x128xf32>
    %559 = arith.divf %557, %558 : vector<8x128xf32>
    %560 = arith.mulf %551, %523 : vector<8x128xf32>
    %561 = arith.addf %560, %545 : vector<8x128xf32>
    %562 = arith.mulf %551, %526 : vector<8x128xf32>
    %563 = arith.mulf %545, %553 : vector<8x128xf32>
    %564 = arith.addf %562, %563 : vector<8x128xf32>
    %cst_194 = arith.constant 9.99999993E-9 : f32
    %565 = vector.broadcast %cst_194 : f32 to vector<8x128xf32>
    %566 = arith.addf %561, %565 : vector<8x128xf32>
    %567 = tpu.reciprocal %566 {approx = true} : vector<8x128xf32> -> vector<8x128xf32>
    %568 = arith.mulf %566, %567 : vector<8x128xf32>
    %cst_195 = arith.constant 2.000000e+00 : f32
    %569 = vector.broadcast %cst_195 : f32 to vector<8x128xf32>
    %570 = arith.subf %569, %568 : vector<8x128xf32>
    %571 = arith.mulf %567, %570 : vector<8x128xf32>
    %572 = arith.mulf %559, %564 : vector<8x128xf32>
    %573 = arith.mulf %572, %571 : vector<8x128xf32>
    %c5_196 = arith.constant 5 : index
    %c0_197 = arith.constant 0 : index
    %c0_198 = arith.constant 0 : index
    %574 = vector.load %arg9[%c5_196, %c0_197, %c0_198] : memref<8x8x128xf32, #tpu.memory_space<vmem>>, vector<1x8x128xf32>
    %575 = vector.shape_cast %574 : vector<1x8x128xf32> to vector<8x128xf32>
    %576 = vector.shape_cast %573 : vector<8x128xf32> to vector<1x8x128xf32>
    tpu.vector_store %arg9[%c5_196, %c0_197, %c0_198], %576 {strides = array<i32>} : memref<8x8x128xf32, #tpu.memory_space<vmem>>, vector<1x8x128xf32>,
    %c6_199 = arith.constant 6 : index
    %c0_200 = arith.constant 0 : index
    %c0_201 = arith.constant 0 : index
    %577 = vector.load %arg13[%c6_199, %c0_200, %c0_201] : memref<8x8x512xf32, #tpu.memory_space<vmem>>, vector<1x8x512xf32>
    %578 = vector.shape_cast %577 : vector<1x8x512xf32> to vector<8x512xf32>
    %579 = arith.truncf %573 : vector<8x128xf32> to vector<8x128xbf16>
    %cst_202 = arith.constant dense<0.000000e+00> : vector<8x512xf32>
    %580 = tpu.matmul %579, %333, %cst_202 {dimension_numbers = #tpu.dot_dimension_numbers<[1], [0], [0], [1], [0, 0, 1, 1], [], []>} : vector<8x128xbf16>, vector<128x512xbf16>, vector<8x512xf32> -> vector<8x512xf32>
    %581 = arith.addf %578, %580 : vector<8x512xf32>
    %582 = vector.extract_strided_slice %581 {offsets = [0, 0], sizes = [8, 128], strides = [1, 1]} : vector<8x512xf32> to vector<8x128xf32>
    %583 = math.exp %582 : vector<8x128xf32>
    %584 = vector.extract_strided_slice %581 {offsets = [0, 128], sizes = [8, 128], strides = [1, 1]} : vector<8x512xf32> to vector<8x128xf32>
    %585 = arith.negf %584 : vector<8x128xf32>
    %586 = math.exp %585 : vector<8x128xf32>
    %cst_203 = arith.constant 1.000000e+00 : f32
    %587 = vector.broadcast %cst_203 : f32 to vector<8x128xf32>
    %588 = arith.addf %587, %586 : vector<8x128xf32>
    %589 = arith.divf %587, %588 : vector<8x128xf32>
    %590 = vector.extract_strided_slice %581 {offsets = [0, 256], sizes = [8, 128], strides = [1, 1]} : vector<8x512xf32> to vector<8x128xf32>
    %591 = math.tanh %590 : vector<8x128xf32>
    %592 = vector.extract_strided_slice %581 {offsets = [0, 384], sizes = [8, 128], strides = [1, 1]} : vector<8x512xf32> to vector<8x128xf32>
    %593 = arith.negf %592 : vector<8x128xf32>
    %594 = math.exp %593 : vector<8x128xf32>
    %cst_204 = arith.constant 1.000000e+00 : f32
    %595 = vector.broadcast %cst_204 : f32 to vector<8x128xf32>
    %596 = arith.addf %595, %594 : vector<8x128xf32>
    %597 = arith.divf %595, %596 : vector<8x128xf32>
    %598 = arith.mulf %589, %561 : vector<8x128xf32>
    %599 = arith.addf %598, %583 : vector<8x128xf32>
    %600 = arith.mulf %589, %564 : vector<8x128xf32>
    %601 = arith.mulf %583, %591 : vector<8x128xf32>
    %602 = arith.addf %600, %601 : vector<8x128xf32>
    %cst_205 = arith.constant 9.99999993E-9 : f32
    %603 = vector.broadcast %cst_205 : f32 to vector<8x128xf32>
    %604 = arith.addf %599, %603 : vector<8x128xf32>
    %605 = tpu.reciprocal %604 {approx = true} : vector<8x128xf32> -> vector<8x128xf32>
    %606 = arith.mulf %604, %605 : vector<8x128xf32>
    %cst_206 = arith.constant 2.000000e+00 : f32
    %607 = vector.broadcast %cst_206 : f32 to vector<8x128xf32>
    %608 = arith.subf %607, %606 : vector<8x128xf32>
    %609 = arith.mulf %605, %608 : vector<8x128xf32>
    %610 = arith.mulf %597, %602 : vector<8x128xf32>
    %611 = arith.mulf %610, %609 : vector<8x128xf32>
    %c6_207 = arith.constant 6 : index
    %c0_208 = arith.constant 0 : index
    %c0_209 = arith.constant 0 : index
    %612 = vector.load %arg9[%c6_207, %c0_208, %c0_209] : memref<8x8x128xf32, #tpu.memory_space<vmem>>, vector<1x8x128xf32>
    %613 = vector.shape_cast %612 : vector<1x8x128xf32> to vector<8x128xf32>
    %614 = vector.shape_cast %611 : vector<8x128xf32> to vector<1x8x128xf32>
    tpu.vector_store %arg9[%c6_207, %c0_208, %c0_209], %614 {strides = array<i32>} : memref<8x8x128xf32, #tpu.memory_space<vmem>>, vector<1x8x128xf32>,
    %c7_210 = arith.constant 7 : index
    %c0_211 = arith.constant 0 : index
    %c0_212 = arith.constant 0 : index
    %615 = vector.load %arg13[%c7_210, %c0_211, %c0_212] : memref<8x8x512xf32, #tpu.memory_space<vmem>>, vector<1x8x512xf32>
    %616 = vector.shape_cast %615 : vector<1x8x512xf32> to vector<8x512xf32>
    %617 = arith.truncf %611 : vector<8x128xf32> to vector<8x128xbf16>
    %cst_213 = arith.constant dense<0.000000e+00> : vector<8x512xf32>
    %618 = tpu.matmul %617, %333, %cst_213 {dimension_numbers = #tpu.dot_dimension_numbers<[1], [0], [0], [1], [0, 0, 1, 1], [], []>} : vector<8x128xbf16>, vector<128x512xbf16>, vector<8x512xf32> -> vector<8x512xf32>
    %619 = arith.addf %616, %618 : vector<8x512xf32>
    %620 = vector.extract_strided_slice %619 {offsets = [0, 0], sizes = [8, 128], strides = [1, 1]} : vector<8x512xf32> to vector<8x128xf32>
    %621 = math.exp %620 : vector<8x128xf32>
    %622 = vector.extract_strided_slice %619 {offsets = [0, 128], sizes = [8, 128], strides = [1, 1]} : vector<8x512xf32> to vector<8x128xf32>
    %623 = arith.negf %622 : vector<8x128xf32>
    %624 = math.exp %623 : vector<8x128xf32>
    %cst_214 = arith.constant 1.000000e+00 : f32
    %625 = vector.broadcast %cst_214 : f32 to vector<8x128xf32>
    %626 = arith.addf %625, %624 : vector<8x128xf32>
    %627 = arith.divf %625, %626 : vector<8x128xf32>
    %628 = vector.extract_strided_slice %619 {offsets = [0, 256], sizes = [8, 128], strides = [1, 1]} : vector<8x512xf32> to vector<8x128xf32>
    %629 = math.tanh %628 : vector<8x128xf32>
    %630 = vector.extract_strided_slice %619 {offsets = [0, 384], sizes = [8, 128], strides = [1, 1]} : vector<8x512xf32> to vector<8x128xf32>
    %631 = arith.negf %630 : vector<8x128xf32>
    %632 = math.exp %631 : vector<8x128xf32>
    %cst_215 = arith.constant 1.000000e+00 : f32
    %633 = vector.broadcast %cst_215 : f32 to vector<8x128xf32>
    %634 = arith.addf %633, %632 : vector<8x128xf32>
    %635 = arith.divf %633, %634 : vector<8x128xf32>
    %636 = arith.mulf %627, %599 : vector<8x128xf32>
    %637 = arith.addf %636, %621 : vector<8x128xf32>
    %638 = arith.mulf %627, %602 : vector<8x128xf32>
    %639 = arith.mulf %621, %629 : vector<8x128xf32>
    %640 = arith.addf %638, %639 : vector<8x128xf32>
    %cst_216 = arith.constant 9.99999993E-9 : f32
    %641 = vector.broadcast %cst_216 : f32 to vector<8x128xf32>
    %642 = arith.addf %637, %641 : vector<8x128xf32>
    %643 = tpu.reciprocal %642 {approx = true} : vector<8x128xf32> -> vector<8x128xf32>
    %644 = arith.mulf %642, %643 : vector<8x128xf32>
    %cst_217 = arith.constant 2.000000e+00 : f32
    %645 = vector.broadcast %cst_217 : f32 to vector<8x128xf32>
    %646 = arith.subf %645, %644 : vector<8x128xf32>
    %647 = arith.mulf %643, %646 : vector<8x128xf32>
    %648 = arith.mulf %635, %640 : vector<8x128xf32>
    %649 = arith.mulf %648, %647 : vector<8x128xf32>
    %c7_218 = arith.constant 7 : index
    %c0_219 = arith.constant 0 : index
    %c0_220 = arith.constant 0 : index
    %650 = vector.load %arg9[%c7_218, %c0_219, %c0_220] : memref<8x8x128xf32, #tpu.memory_space<vmem>>, vector<1x8x128xf32>
    %651 = vector.shape_cast %650 : vector<1x8x128xf32> to vector<8x128xf32>
    %652 = vector.shape_cast %649 : vector<8x128xf32> to vector<1x8x128xf32>
    tpu.vector_store %arg9[%c7_218, %c0_219, %c0_220], %652 {strides = array<i32>} : memref<8x8x128xf32, #tpu.memory_space<vmem>>, vector<1x8x128xf32>,
    %c1_221 = arith.constant 1 : index
    %c0_222 = arith.constant 0 : index
    %c0_223 = arith.constant 0 : index
    %653 = vector.load %arg10[%c1_221, %c0_222, %c0_223] : memref<2x8x128xf32, #tpu.memory_space<vmem>>, vector<1x8x128xf32>
    %654 = vector.shape_cast %653 : vector<1x8x128xf32> to vector<8x128xf32>
    %655 = vector.shape_cast %649 : vector<8x128xf32> to vector<1x8x128xf32>
    tpu.vector_store %arg10[%c1_221, %c0_222, %c0_223], %655 {strides = array<i32>} : memref<2x8x128xf32, #tpu.memory_space<vmem>>, vector<1x8x128xf32>,
    %c1_224 = arith.constant 1 : index
    %c0_225 = arith.constant 0 : index
    %c0_226 = arith.constant 0 : index
    %656 = vector.load %arg11[%c1_224, %c0_225, %c0_226] : memref<2x8x128xf32, #tpu.memory_space<vmem>>, vector<1x8x128xf32>
    %657 = vector.shape_cast %656 : vector<1x8x128xf32> to vector<8x128xf32>
    %658 = vector.shape_cast %640 : vector<8x128xf32> to vector<1x8x128xf32>
    tpu.vector_store %arg11[%c1_224, %c0_225, %c0_226], %658 {strides = array<i32>} : memref<2x8x128xf32, #tpu.memory_space<vmem>>, vector<1x8x128xf32>,
    %c1_227 = arith.constant 1 : index
    %c0_228 = arith.constant 0 : index
    %c0_229 = arith.constant 0 : index
    %659 = vector.load %arg12[%c1_227, %c0_228, %c0_229] : memref<2x8x128xf32, #tpu.memory_space<vmem>>, vector<1x8x128xf32>
    %660 = vector.shape_cast %659 : vector<1x8x128xf32> to vector<8x128xf32>
    %661 = vector.shape_cast %637 : vector<8x128xf32> to vector<1x8x128xf32>
    tpu.vector_store %arg12[%c1_227, %c0_228, %c0_229], %661 {strides = array<i32>} : memref<2x8x128xf32, #tpu.memory_space<vmem>>, vector<1x8x128xf32>,
    return
  }
  func.func @transform_0(%arg0: i32, %arg1: i32) -> (i32, i32, i32) {
    %c0_i32 = arith.constant 0 : i32
    %c0_i32_0 = arith.constant 0 : i32
    return %arg1, %arg0, %c0_i32 : i32, i32, i32
  }
  func.func @transform_1(%arg0: i32, %arg1: i32) -> (i32, i32) {
    %c0_i32 = arith.constant 0 : i32
    %c0_i32_0 = arith.constant 0 : i32
    %c0_i32_1 = arith.constant 0 : i32
    return %c0_i32, %c0_i32_0 : i32, i32
  }
  func.func @transform_2(%arg0: i32, %arg1: i32) -> (i32, i32) {
    %c0_i32 = arith.constant 0 : i32
    %c0_i32_0 = arith.constant 0 : i32
    %c0_i32_1 = arith.constant 0 : i32
    return %c0_i32, %c0_i32_0 : i32, i32
  }
  func.func @transform_3(%arg0: i32, %arg1: i32) -> (i32, i32) {
    %c0_i32 = arith.constant 0 : i32
    %c0_i32_0 = arith.constant 0 : i32
    %c0_i32_1 = arith.constant 0 : i32
    return %c0_i32, %c0_i32_0 : i32, i32
  }
  func.func @transform_4(%arg0: i32, %arg1: i32) -> (i32, i32) {
    %c0_i32 = arith.constant 0 : i32
    %c0_i32_0 = arith.constant 0 : i32
    %c0_i32_1 = arith.constant 0 : i32
    return %c0_i32, %c0_i32_0 : i32, i32
  }
  func.func @transform_5(%arg0: i32, %arg1: i32) -> (i32, i32) {
    %c0_i32 = arith.constant 0 : i32
    %c0_i32_0 = arith.constant 0 : i32
    %c0_i32_1 = arith.constant 0 : i32
    return %c0_i32, %c0_i32_0 : i32, i32
  }
  func.func @transform_6(%arg0: i32, %arg1: i32) -> (i32, i32) {
    %c0_i32 = arith.constant 0 : i32
    %c0_i32_0 = arith.constant 0 : i32
    %c0_i32_1 = arith.constant 0 : i32
    return %c0_i32, %c0_i32_0 : i32, i32
  }
  func.func @transform_7(%arg0: i32, %arg1: i32) -> (i32, i32, i32) {
    %c0_i32 = arith.constant 0 : i32
    %c0_i32_0 = arith.constant 0 : i32
    return %arg1, %arg0, %c0_i32 : i32, i32, i32
  }
  func.func @transform_8(%arg0: i32, %arg1: i32) -> (i32, i32, i32) {
    %c0_i32 = arith.constant 0 : i32
    %c0_i32_0 = arith.constant 0 : i32
    %c0_i32_1 = arith.constant 0 : i32
    return %c0_i32, %arg0, %c0_i32_0 : i32, i32, i32
  }
  func.func @transform_9(%arg0: i32, %arg1: i32) -> (i32, i32, i32) {
    %c0_i32 = arith.constant 0 : i32
    %c0_i32_0 = arith.constant 0 : i32
    %c0_i32_1 = arith.constant 0 : i32
    return %c0_i32, %arg0, %c0_i32_0 : i32, i32, i32
  }
  func.func @transform_10(%arg0: i32, %arg1: i32) -> (i32, i32, i32) {
    %c0_i32 = arith.constant 0 : i32
    %c0_i32_0 = arith.constant 0 : i32
    %c0_i32_1 = arith.constant 0 : i32
    return %c0_i32, %arg0, %c0_i32_0 : i32, i32, i32
  }
}

</mosaic_0001>

<bundles_post_ra>
// kernel: tpu_custom_call.1
= control target key start
LH: loop header
LB: loop body
LE: loop exit
PB: predicated region body
PF: predicated region fallthrough
CT: control target
= control target key end

     0   :  { %16 = vsyncpa [#allocation4], 0  ;;  %s5743_s0 = inlined_call_operand.hbm [shape: bf16[8,8,128], index: 0, kind: input, shape index: {}]   ;;  %s5744_s1 = inlined_call_operand.hbm [shape: bf16[128,512], index: 1, kind: input, shape index: {}]   ;;  %s5745_s2 = inlined_call_operand.hbm [shape: bf16[128,512], index: 2, kind: input, shape index: {}]   ;;  %s5746_s3 = inlined_call_operand.hbm [shape: f32[1,512], index: 3, kind: input, shape index: {}]   ;;  %s5747_s4 = inlined_call_operand.hbm [shape: bf16[128,512], index: 4, kind: input, shape index: {}]   ;;  %s5748_s5 = inlined_call_operand.hbm [shape: bf16[128,512], index: 5, kind: input, shape index: {}]   ;;  %s5749_s6 = inlined_call_operand.hbm [shape: f32[1,512], index: 6, kind: input, shape index: {}]   ;;  %s5750_s7 = inlined_call_operand.hbm [shape: f32[8,8,128], index: 7, kind: output, shape index: {0}]   ;;  %s5751_s8 = inlined_call_operand.hbm [shape: f32[2,8,128], index: 8, kind: output, shape index: {1}]   ;;  %s5752_s9 = inlined_call_operand.hbm [shape: f32[2,8,128], index: 9, kind: output, shape index: {2}]   ;;  %s5753_s10 = inlined_call_operand.hbm [shape: f32[2,8,128], index: 10, kind: output, shape index: {3}]  }
   0x1   :  { %17 = vsyncpa [#allocation7], 0 }
   0x2   :  { %18 = vsyncpa [#allocation10], 0 }
   0x3   :  { %19 = vsyncpa [#allocation13], 0 }
   0x4   :  { %20 = vsyncpa [#allocation5], 0 }
   0x5   :  { %21 = vsyncpa [#allocation17], 0 }
   0x6   :  { %22 = vsyncpa [#allocation20], 0  ;;  %s4270_s13 = smov [#allocation6]   ;;  %s4014_s17 = scalar_lea.hbm %s5744_s1, 4096 }
   0x7   :  { %s40_s14 = sshll.u32 %s4270_s13, 4  ;;  %p4015_p0 = scmp.ne.s32.totalorder %s5744_s1, %s4014_s17  ;;  %s41_s14 = int_to_ptr.vmem [resolvable:$true] %s40_s14 }
   0x8   :  { %p4018_p1 = scmp.lt.u32.totalorder %s4014_s17, %s5744_s1 }
   0xa   :  { %p4020_p2 = pnand %p4018_p1, %p4015_p0 }
   0xc   :  { %4023 = shalt.err (!%p4020_p2)
}
   0xd   :  { %s4024_s22 = scalar_lea.vmem %s41_s14, 4096  ;;  %p4029_p4 = scmp.lt.s32.totalorder %s41_s14, %s41_s14 }
   0xe   :  { %p4025_p3 = scmp.ne.s32.totalorder %s41_s14, %s4024_s22  ;;  %p4030_p5 = scmp.lt.s32.totalorder %s4024_s22, %s4024_s22 }
  0x10   :  { %p4031_p6 = por %p4030_p5, %p4029_p4 }
  0x12   :  { %p4032_p7 = pnand %p4031_p6, %p4025_p3 }
  0x14   :  { %4035 = shalt.err (!%p4032_p7)
}
  0x15   :  { %s4271_s23 = smov 256   ;;  %s4272_s24 = smov 16  }
  0x16   :  { %46 = dma.hbm_to_vmem [thread:$0]  %s5744_s1, 4096, %s41_s14, [#allocation7], %s4271_s23, %s4271_s23, %s4272_s24  }
  0x17   :  { %s4273_s27 = smov [#allocation9]   ;;  %s4274_s29 = smov [#allocation12]  }
  0x18   :  { %s65_s28 = sshll.u32 %s4273_s27, 4  ;;  %s86_s30 = sshll.u32 %s4274_s29, 4  ;;  %s66_s28 = int_to_ptr.vmem [resolvable:$true] %s65_s28  ;;  %s87_s30 = int_to_ptr.vmem [resolvable:$true] %s86_s30 }
  0x19   :  { %s4036_s13 = scalar_lea.hbm %s5746_s3, 64 }
  0x1a   :  { %p4037_p8 = scmp.ne.s32.totalorder %s5746_s3, %s4036_s13  ;;  %p4040_p9 = scmp.lt.u32.totalorder %s4036_s13, %s5746_s3 }
  0x1c   :  { %p4042_p10 = pnand %p4040_p9, %p4037_p8 }
  0x1e   :  { %4045 = shalt.err (!%p4042_p10)
}
  0x1f   :  { %s4046_s1 = scalar_lea.vmem %s66_s28, 64  ;;  %p4051_p12 = scmp.lt.s32.totalorder %s66_s28, %s66_s28 }
  0x20   :  { %p4047_p11 = scmp.ne.s32.totalorder %s66_s28, %s4046_s1  ;;  %p4052_p13 = scmp.lt.s32.totalorder %s4046_s1, %s4046_s1 }
  0x22   :  { %p4053_p0 = por %p4052_p13, %p4051_p12 }
  0x24   :  { %p4054_p1 = pnand %p4053_p0, %p4047_p11 }
  0x26   :  { %4057 = shalt.err (!%p4054_p1)
}
  0x27   :  { %68 = dma.hbm_to_vmem [thread:$0]  %s5746_s3, 64, %s66_s28, [#allocation10]  }
  0x28   :  { %s4058_s22 = scalar_lea.hbm %s5748_s5, 4096 }
  0x29   :  { %p4059_p2 = scmp.ne.s32.totalorder %s5748_s5, %s4058_s22  ;;  %p4062_p3 = scmp.lt.u32.totalorder %s4058_s22, %s5748_s5 }
  0x2b   :  { %p4064_p4 = pnand %p4062_p3, %p4059_p2 }
  0x2d   :  { %4067 = shalt.err (!%p4064_p4)
}
  0x2e   :  { %s4068_s11 = scalar_lea.vmem %s87_s30, 4096  ;;  %p4073_p6 = scmp.lt.s32.totalorder %s87_s30, %s87_s30 }
  0x2f   :  { %p4069_p5 = scmp.ne.s32.totalorder %s87_s30, %s4068_s11  ;;  %p4074_p7 = scmp.lt.s32.totalorder %s4068_s11, %s4068_s11 }
  0x31   :  { %p4075_p8 = por %p4074_p7, %p4073_p6 }
  0x33   :  { %p4076_p9 = pnand %p4075_p8, %p4069_p5 }
  0x35   :  { %4079 = shalt.err (!%p4076_p9)
}
  0x36   :  { %92 = dma.hbm_to_vmem [thread:$0]  %s5748_s5, 4096, %s87_s30, [#allocation13], %s4271_s23, %s4271_s23, %s4272_s24  }
  0x37   :  { %s4275_s12 = smov [#allocation3]   ;;  %s4080_s17 = scalar_lea.hbm %s5743_s0, 512 }
  0x38   :  { %s28_s13 = sshll.u32 %s4275_s12, 4  ;;  %p4081_p10 = scmp.ne.s32.totalorder %s5743_s0, %s4080_s17  ;;  %s29_s13 = int_to_ptr.vmem [resolvable:$true] %s28_s13 }
  0x39   :  { %p4084_p11 = scmp.lt.u32.totalorder %s4080_s17, %s5743_s0 }
  0x3b   :  { %p4086_p12 = pnand %p4084_p11, %p4081_p10 }
  0x3d   :  { %4089 = shalt.err (!%p4086_p12)
}
  0x3e   :  { %s4090_s20 = scalar_lea.vmem %s29_s13, 512  ;;  %p4095_p0 = scmp.lt.s32.totalorder %s29_s13, %s29_s13 }
  0x3f   :  { %p4091_p13 = scmp.ne.s32.totalorder %s29_s13, %s4090_s20  ;;  %p4096_p1 = scmp.lt.s32.totalorder %s4090_s20, %s4090_s20 }
  0x41   :  { %p4097_p2 = por %p4096_p1, %p4095_p0 }
  0x43   :  { %p4098_p3 = pnand %p4097_p2, %p4091_p13 }
  0x45   :  { %4101 = shalt.err (!%p4098_p3)
}
  0x46   :  { %s4276_s5 = smov 64   ;;  %s4277_s30 = smov 4  }
  0x47   :  { %34 = dma.hbm_to_vmem [thread:$0]  %s5743_s0, 512, %s29_s13, [#allocation4], %s4276_s5, %s4276_s5, %s4277_s30  }
  0x48   :  { %s4278_s25 = smov [#allocation8]   ;;  %s4279_s27 = smov [#allocation11]  }
  0x49   :  { %s52_s26 = sshll.u32 %s4278_s25, 4  ;;  %s74_s29 = sshll.u32 %s4279_s27, 4  ;;  %s53_s26 = int_to_ptr.vmem [resolvable:$true] %s52_s26  ;;  %s4398_s29 = int_to_ptr.vmem [resolvable:$true] %s74_s29 }
  0x4a   :  { %s4102_s28 = scalar_lea.hbm %s5745_s2, 4096 }
  0x4b   :  { %p4103_p4 = scmp.ne.s32.totalorder %s5745_s2, %s4102_s28  ;;  %p4106_p5 = scmp.lt.u32.totalorder %s4102_s28, %s5745_s2 }
  0x4d   :  { %p4108_p6 = pnand %p4106_p5, %p4103_p4 }
  0x4f   :  { %4111 = shalt.err (!%p4108_p6)
}
  0x50   :  { %s4112_s0 = scalar_lea.vmem %s53_s26, 4096  ;;  %p4117_p8 = scmp.lt.s32.totalorder %s53_s26, %s53_s26 }
  0x51   :  { %p4113_p7 = scmp.ne.s32.totalorder %s53_s26, %s4112_s0  ;;  %p4118_p9 = scmp.lt.s32.totalorder %s4112_s0, %s4112_s0 }
  0x53   :  { %p4119_p10 = por %p4118_p9, %p4117_p8 }
  0x55   :  { %p4120_p11 = pnand %p4119_p10, %p4113_p7 }
  0x57   :  { %4123 = shalt.err (!%p4120_p11)
}
  0x58   :  { %58 = dma.hbm_to_vmem [thread:$0]  %s5745_s2, 4096, %s53_s26, [#allocation7], %s4271_s23, %s4271_s23, %s4272_s24  }
  0x59   :  { %s4124_s19 = scalar_lea.hbm %s5747_s4, 4096 }
  0x5a   :  { %p4125_p12 = scmp.ne.s32.totalorder %s5747_s4, %s4124_s19  ;;  %p4128_p13 = scmp.lt.u32.totalorder %s4124_s19, %s5747_s4 }
  0x5c   :  { %p4130_p0 = pnand %p4128_p13, %p4125_p12 }
  0x5e   :  { %4133 = shalt.err (!%p4130_p0)
}
  0x5f   :  { %s4134_s22 = scalar_lea.vmem %s4398_s29, 4096  ;;  %p4139_p2 = scmp.lt.s32.totalorder %s4398_s29, %s4398_s29 }
  0x60   :  { %p4135_p1 = scmp.ne.s32.totalorder %s4398_s29, %s4134_s22  ;;  %p4140_p3 = scmp.lt.s32.totalorder %s4134_s22, %s4134_s22 }
  0x62   :  { %p4141_p4 = por %p4140_p3, %p4139_p2 }
  0x64   :  { %p4142_p5 = pnand %p4141_p4, %p4135_p1 }
  0x66   :  { %4145 = shalt.err (!%p4142_p5)
}
  0x67   :  { %80 = dma.hbm_to_vmem [thread:$0]  %s5747_s4, 4096, %s4398_s29, [#allocation10], %s4271_s23, %s4271_s23, %s4272_s24  }
  0x68   :  { %s4280_s26 = smov [#allocation14]   ;;  %s4146_s28 = scalar_lea.hbm %s5749_s6, 64 }
  0x69   :  { %s99_s27 = sshll.u32 %s4280_s26, 4  ;;  %p4147_p6 = scmp.ne.s32.totalorder %s5749_s6, %s4146_s28  ;;  %s100_s27 = int_to_ptr.vmem [resolvable:$true] %s99_s27 }
  0x6a   :  { %p4150_p7 = scmp.lt.u32.totalorder %s4146_s28, %s5749_s6 }
  0x6c   :  { %p4152_p8 = pnand %p4150_p7, %p4147_p6 }
  0x6e   :  { %4155 = shalt.err (!%p4152_p8)
}
  0x6f   :  { %s4156_s0 = scalar_lea.vmem %s100_s27, 64  ;;  %p4161_p10 = scmp.lt.s32.totalorder %s100_s27, %s100_s27 }
  0x70   :  { %p4157_p9 = scmp.ne.s32.totalorder %s100_s27, %s4156_s0  ;;  %p4162_p11 = scmp.lt.s32.totalorder %s4156_s0, %s4156_s0 }
  0x72   :  { %p4163_p12 = por %p4162_p11, %p4161_p10 }
  0x74   :  { %p4164_p13 = pnand %p4163_p12, %p4157_p9 }
  0x76   :  { %4167 = shalt.err (!%p4164_p13)
}
  0x77   :  { %102 = dma.hbm_to_vmem [thread:$0]  %s5749_s6, 64, %s100_s27, [#allocation13]  }
  0x78   :  { %4256 = dma.done.wait [#allocation4], 512  }
  0x79   :  { %4257 = vsyncadd [#allocation4], 4294966784 }
  0x7a   :  { %4258 = dma.done.wait [#allocation7], 8192  }
  0x7b   :  { %4259 = vsyncadd [#allocation7], 4294959104 }
  0x7c   :  { %4260 = dma.done.wait [#allocation10], 4160  }
  0x7d   :  { %4261 = vsyncadd [#allocation10], 4294963136 }
  0x7e   :  { %4262 = dma.done.wait [#allocation13], 4160  }
  0x7f   :  { %4263 = vsyncadd [#allocation13], 4294963136  ;;  %v5760_v0 = vmov 0   ;;  %v3530_v1 = vld [vmem:[#allocation6 + $0x4] ss:$16 sps:$4 sm:$0xff]   ;;  %v3591_v44 = vld [vmem:[#allocation3 + $0x8] sm:$0xff]  }
  0x80   :  { %445 = vmatprep.mubr.bf16.mxu0 %v5760_v0  ;;  %518 = vmatprep.mubr.bf16.mxu1 %v5760_v0  ;;  %v3532_v2 = vld [vmem:[#allocation6 + $0xc] ss:$16 sps:$4 sm:$0xff]   ;;  %v3534_v3 = vld [vmem:[#allocation6] ss:$16 sps:$4 sm:$0xff]   ;;  %v3535_v4 = vld [vmem:[#allocation6 + $0x8] ss:$16 sps:$4 sm:$0xff]  }
  0x81   :  { %413 = vmatprep.subr.bf16.mxu0 %v3530_v1  ;;  %486 = vmatprep.subr.bf16.mxu1 %v3532_v2  ;;  %v3536_v5 = vld [vmem:[#allocation6 + $0x24] ss:$16 sps:$4 sm:$0xff]   ;;  %v3538_v6 = vld [vmem:[#allocation6 + $0x2c] ss:$16 sps:$4 sm:$0xff]   ;;  %v3540_v7 = vld [vmem:[#allocation6 + $0x20] ss:$16 sps:$4 sm:$0xff]  }
  0x82   :  { %414 = vmatpush1.bf16.msra.mxu0 %v3534_v3  ;;  %487 = vmatpush1.bf16.msra.mxu1 %v3535_v4  ;;  %v3541_v8 = vld [vmem:[#allocation6 + $0x28] ss:$16 sps:$4 sm:$0xff]   ;;  %v3542_v9 = vld [vmem:[#allocation6 + $0x44] ss:$16 sps:$4 sm:$0xff]   ;;  %v3544_v10 = vld [vmem:[#allocation6 + $0x4c] ss:$16 sps:$4 sm:$0xff]  }
  0x83   :  { %415 = vmatprep.subr.bf16.mxu0 %v3536_v5  ;;  %488 = vmatprep.subr.bf16.mxu1 %v3538_v6  ;;  %v3546_v11 = vld [vmem:[#allocation6 + $0x40] ss:$16 sps:$4 sm:$0xff]   ;;  %v3547_v12 = vld [vmem:[#allocation6 + $0x48] ss:$16 sps:$4 sm:$0xff]   ;;  %v3548_v13 = vld [vmem:[#allocation6 + $0x64] ss:$16 sps:$4 sm:$0xff]  }
  0x84   :  { %v3550_v14 = vld [vmem:[#allocation6 + $0x6c] ss:$16 sps:$4 sm:$0xff]   ;;  %v3552_v15 = vld [vmem:[#allocation6 + $0x60] ss:$16 sps:$4 sm:$0xff]   ;;  %v3553_v16 = vld [vmem:[#allocation6 + $0x68] ss:$16 sps:$4 sm:$0xff]  }
  0x85   :  { %v3554_v17 = vld [vmem:[#allocation6 + $0x84] ss:$16 sps:$4 sm:$0xff]   ;;  %v3556_v18 = vld [vmem:[#allocation6 + $0x8c] ss:$16 sps:$4 sm:$0xff]   ;;  %v3558_v19 = vld [vmem:[#allocation6 + $0x80] ss:$16 sps:$4 sm:$0xff]  }
  0x86   :  { %416 = vmatpush1.bf16.msra.mxu0 %v3540_v7  ;;  %489 = vmatpush1.bf16.msra.mxu1 %v3541_v8  ;;  %v3559_v20 = vld [vmem:[#allocation6 + $0x88] ss:$16 sps:$4 sm:$0xff]   ;;  %v3560_v21 = vld [vmem:[#allocation6 + $0xa4] ss:$16 sps:$4 sm:$0xff]   ;;  %v3562_v22 = vld [vmem:[#allocation6 + $0xac] ss:$16 sps:$4 sm:$0xff]   ;;  %v209_v7 = vlaneseq }
  0x87   :  { %417 = vmatprep.subr.bf16.mxu0 %v3542_v9  ;;  %490 = vmatprep.subr.bf16.mxu1 %v3544_v10  ;;  %v3564_v23 = vld [vmem:[#allocation6 + $0xa0] ss:$16 sps:$4 sm:$0xff]   ;;  %v3565_v24 = vld [vmem:[#allocation6 + $0xa8] ss:$16 sps:$4 sm:$0xff]   ;;  %v3566_v25 = vld [vmem:[#allocation6 + $0xc4] ss:$16 sps:$4 sm:$0xff]  }
  0x88   :  { %v3568_v26 = vld [vmem:[#allocation6 + $0xcc] ss:$16 sps:$4 sm:$0xff]   ;;  %v3570_v27 = vld [vmem:[#allocation6 + $0xc0] ss:$16 sps:$4 sm:$0xff]   ;;  %v3571_v28 = vld [vmem:[#allocation6 + $0xc8] ss:$16 sps:$4 sm:$0xff]  }
  0x89   :  { %v3572_v29 = vld [vmem:[#allocation6 + $0xe4] ss:$16 sps:$4 sm:$0xff]   ;;  %v3574_v30 = vld [vmem:[#allocation6 + $0xec] ss:$16 sps:$4 sm:$0xff]   ;;  %v3576_v31 = vld [vmem:[#allocation6 + $0xe0] ss:$16 sps:$4 sm:$0xff]  }
  0x8a   :  { %418 = vmatpush1.bf16.msra.mxu0 %v3546_v11  ;;  %491 = vmatpush1.bf16.msra.mxu1 %v3547_v12  ;;  %v3577_v32 = vld [vmem:[#allocation6 + $0xe8] ss:$16 sps:$4 sm:$0xff]   ;;  %v4449_v33 = vld [vmem:[#allocation8 + $0x4] ss:$16 sps:$4 sm:$0xff]   ;;  %v4451_v34 = vld [vmem:[#allocation8 + $0xc] ss:$16 sps:$4 sm:$0xff]  }
  0x8b   :  { %419 = vmatprep.subr.bf16.mxu0 %v3548_v13  ;;  %492 = vmatprep.subr.bf16.mxu1 %v3550_v14  ;;  %v3578_v35 = vld [vmem:[#allocation3] sm:$0xff]   ;;  %v4455_v37 = vld [vmem:[#allocation8 + $0x8] ss:$16 sps:$4 sm:$0xff]   ;;  %v4461_v39 = vld [vmem:[#allocation8 + $0x2c] ss:$16 sps:$4 sm:$0xff]   ;;  %v5758_v6 = vmov 0.0|0.0  }
  0x8c   :  { %v4453_v36 = vld [vmem:[#allocation8] ss:$16 sps:$4 sm:$0xff]   ;;  %v4459_v38 = vld [vmem:[#allocation8 + $0x24] ss:$16 sps:$4 sm:$0xff]   ;;  %v4467_v41 = vld [vmem:[#allocation8 + $0x28] ss:$16 sps:$4 sm:$0xff]  }
  0x8d   :  { %v4463_v40 = vld [vmem:[#allocation8 + $0x20] ss:$16 sps:$4 sm:$0xff]   ;;  %v4471_v42 = vld [vmem:[#allocation8 + $0x44] ss:$16 sps:$4 sm:$0xff]   ;;  %v4473_v43 = vld [vmem:[#allocation8 + $0x4c] ss:$16 sps:$4 sm:$0xff]  }
  0x8e   :  { %420 = vmatpush1.bf16.msra.mxu0 %v3552_v15  ;;  %493 = vmatpush1.bf16.msra.mxu1 %v3553_v16  ;;  %v4477_v45 = vld [vmem:[#allocation8 + $0x40] ss:$16 sps:$4 sm:$0xff]   ;;  %v4479_v46 = vld [vmem:[#allocation8 + $0x48] ss:$16 sps:$4 sm:$0xff]   ;;  %v4483_v47 = vld [vmem:[#allocation8 + $0x64] ss:$16 sps:$4 sm:$0xff]  }
  0x8f   :  { %421 = vmatprep.subr.bf16.mxu0 %v3554_v17  ;;  %494 = vmatprep.subr.bf16.mxu1 %v3556_v18  ;;  %v4487_v48 = vld [vmem:[#allocation8 + $0x6c] ss:$16 sps:$4 sm:$0xff]   ;;  %v4489_v49 = vld [vmem:[#allocation8 + $0x60] ss:$16 sps:$4 sm:$0xff]   ;;  %v4491_v50 = vld [vmem:[#allocation8 + $0x68] ss:$16 sps:$4 sm:$0xff]  }
  0x90   :  { %v4495_v51 = vld [vmem:[#allocation8 + $0x84] ss:$16 sps:$4 sm:$0xff]   ;;  %v4499_v52 = vld [vmem:[#allocation8 + $0x8c] ss:$16 sps:$4 sm:$0xff]   ;;  %v4503_v54 = vld [vmem:[#allocation8 + $0x80] ss:$16 sps:$4 sm:$0xff]  }
  0x91   :  { %v3604_v53 = vld [vmem:[#allocation3 + $0x10] sm:$0xff]   ;;  %v4505_v55 = vld [vmem:[#allocation8 + $0x88] ss:$16 sps:$4 sm:$0xff]   ;;  %v4509_v57 = vld [vmem:[#allocation8 + $0xac] ss:$16 sps:$4 sm:$0xff]   ;;  %v4591_v8 = vshrl.u32 %v209_v7, 7 }
  0x92   :  { %422 = vmatpush1.bf16.msra.mxu0 %v3558_v19  ;;  %495 = vmatpush1.bf16.msra.mxu1 %v3559_v20  ;;  %v4507_v56 = vld [vmem:[#allocation8 + $0xa4] ss:$16 sps:$4 sm:$0xff]   ;;  %v4515_v58 = vld [vmem:[#allocation8 + $0xa0] ss:$16 sps:$4 sm:$0xff]   ;;  %v4517_v59 = vld [vmem:[#allocation8 + $0xa8] ss:$16 sps:$4 sm:$0xff]  }
  0x93   :  { %423 = vmatprep.subr.bf16.mxu0 %v3560_v21  ;;  %496 = vmatprep.subr.bf16.mxu1 %v3562_v22  ;;  %v4519_v60 = vld [vmem:[#allocation8 + $0xc4] ss:$16 sps:$4 sm:$0xff]   ;;  %v4521_v61 = vld [vmem:[#allocation8 + $0xcc] ss:$16 sps:$4 sm:$0xff]   ;;  %v4529_v63 = vld [vmem:[#allocation8 + $0xc0] ss:$16 sps:$4 sm:$0xff]  }
  0x94   :  { %v3617_v62 = vld [vmem:[#allocation3 + $0x18] sm:$0xff]   ;;  %v4533_v2 = vld [vmem:[#allocation8 + $0xe4] ss:$16 sps:$4 sm:$0xff]   ;;  %v4541_v4 = vld [vmem:[#allocation8 + $0xe0] ss:$16 sps:$4 sm:$0xff]   ;;  %5764 = vst [vmem:[#allocation28_spill] sm:$0xff] %v4591_v8 }
  0x95   :  { %v4531_v1 = vld [vmem:[#allocation8 + $0xc8] ss:$16 sps:$4 sm:$0xff]   ;;  %v4535_v3 = vld [vmem:[#allocation8 + $0xec] ss:$16 sps:$4 sm:$0xff]   ;;  %v5756_v9 = vsub.s32 2, %v4591_v8  ;;  %v5754_v10 = vsub.s32 3, %v4591_v8 }
  0x96   :  { %424 = vmatpush1.bf16.msra.mxu0 %v3564_v23  ;;  %497 = vmatpush1.bf16.msra.mxu1 %v3565_v24  ;;  %v4543_v5 = vld [vmem:[#allocation8 + $0xe8] ss:$16 sps:$4 sm:$0xff]   ;;  %v5757_v11 = vsub.s32 0, %v4591_v8  ;;  %v199_v12 = vld [vmem:[#allocation9] sm:$0xf]  ;;  %v5755_v13 = vsub.s32 1, %v4591_v8 }
  0x97   :  { %425 = vmatprep.subr.bf16.mxu0 %v3566_v25  ;;  %498 = vmatprep.subr.bf16.mxu1 %v3568_v26  ;;  %v4599_v14 = vrot.slane %v199_v12, %v5756_v9  ;;  %v4607_v17 = vrot.slane %v199_v12, %v5754_v10  ;;  %s4283_s6 = smov [#allocation19]  }
  0x98   :  { %v212_v18 = vrot.slane %v199_v12, %v5757_v11  ;;  %v216_v21 = vrot.slane %v199_v12, %v5755_v13  ;;  %s3321_s24 = sshll.u32 %s4283_s6, 4  ;;  %s3322_s24 = int_to_ptr.vmem [resolvable:$true] %s3321_s24 }
  0x99   :  { %s4168_s29 = scalar_lea.vmem %s3322_s24, 256  ;;  %p4173_p1 = scmp.lt.s32.totalorder %s3322_s24, %s3322_s24 }
  0x9a   :  { %426 = vmatpush1.bf16.msra.mxu0 %v3570_v27  ;;  %499 = vmatpush1.bf16.msra.mxu1 %v3571_v28  ;;  %p4169_p0 = scmp.ne.s32.totalorder %s3322_s24, %s4168_s29  ;;  %p4174_p2 = scmp.lt.s32.totalorder %s4168_s29, %s4168_s29 }
  0x9b   :  { %427 = vmatprep.subr.bf16.mxu0 %v3572_v29  ;;  %500 = vmatprep.subr.bf16.mxu1 %v3574_v30 }
  0x9c   :  { %p4175_p3 = por %p4174_p2, %p4173_p1 }
  0x9e   :  { %428 = vmatpush1.bf16.msra.mxu0 %v3576_v31  ;;  %501 = vmatpush1.bf16.msra.mxu1 %v3577_v32  ;;  %p4176_p4 = pnand %p4175_p3, %p4169_p0 }
  0x9f   :  { %759 = vmatprep.subr.bf16.mxu0 %v4449_v33  ;;  %800 = vmatprep.subr.bf16.mxu1 %v4451_v34 }
  0xa1   :  { %446 = vmatmul.mubr.bf16.vlgmr.msra.gmra.mrb[0].mxu0 %v3578_v35  ;;  %519 = vmatmul.mubr.bf16.vlgmr.msra.gmra.mrb[0].mxu1 %v3578_v35 }
  0xa2   :  { %760 = vmatpush1.bf16.msra.mxu0 %v4453_v36  ;;  %801 = vmatpush1.bf16.msra.mxu1 %v4455_v37 }
  0xa3   :  { %761 = vmatprep.subr.bf16.mxu0 %v4459_v38  ;;  %802 = vmatprep.subr.bf16.mxu1 %v4461_v39 }
  0xa4   :  { %455 = vmatprep.mubr.bf16.mxu0 %v5760_v0  ;;  %528 = vmatprep.mubr.bf16.mxu1 %v5760_v0 }
  0xa6   :  { %762 = vmatpush1.bf16.msra.mxu0 %v4463_v40  ;;  %803 = vmatpush1.bf16.msra.mxu1 %v4467_v41 }
  0xa7   :  { %763 = vmatprep.subr.bf16.mxu0 %v4471_v42  ;;  %804 = vmatprep.subr.bf16.mxu1 %v4473_v43 }
  0xa9   :  { %456 = vmatmul.mubr.bf16.gmra.mrb[4].mxu0 %v3591_v44  ;;  %529 = vmatmul.mubr.bf16.gmra.mrb[4].mxu1 %v3591_v44 }
  0xaa   :  { %764 = vmatpush1.bf16.msra.mxu0 %v4477_v45  ;;  %805 = vmatpush1.bf16.msra.mxu1 %v4479_v46 }
  0xab   :  { %765 = vmatprep.subr.bf16.mxu0 %v4483_v47  ;;  %806 = vmatprep.subr.bf16.mxu1 %v4487_v48 }
  0xac   :  { %465 = vmatprep.mubr.bf16.mxu0 %v5760_v0  ;;  %538 = vmatprep.mubr.bf16.mxu1 %v5760_v0 }
  0xae   :  { %766 = vmatpush1.bf16.msra.mxu0 %v4489_v49  ;;  %807 = vmatpush1.bf16.msra.mxu1 %v4491_v50 }
  0xaf   :  { %767 = vmatprep.subr.bf16.mxu0 %v4495_v51  ;;  %808 = vmatprep.subr.bf16.mxu1 %v4499_v52 }
  0xb1   :  { %466 = vmatmul.mubr.bf16.gmra.mrb[8].mxu0 %v3604_v53  ;;  %539 = vmatmul.mubr.bf16.gmra.mrb[8].mxu1 %v3604_v53 }
  0xb2   :  { %768 = vmatpush1.bf16.msra.mxu0 %v4503_v54  ;;  %809 = vmatpush1.bf16.msra.mxu1 %v4505_v55 }
  0xb3   :  { %769 = vmatprep.subr.bf16.mxu0 %v4507_v56  ;;  %810 = vmatprep.subr.bf16.mxu1 %v4509_v57 }
  0xb4   :  { %475 = vmatprep.mubr.bf16.mxu0 %v5760_v0  ;;  %548 = vmatprep.mubr.bf16.mxu1 %v5760_v0 }
  0xb6   :  { %770 = vmatpush1.bf16.msra.mxu0 %v4515_v58  ;;  %811 = vmatpush1.bf16.msra.mxu1 %v4517_v59 }
  0xb7   :  { %771 = vmatprep.subr.bf16.mxu0 %v4519_v60  ;;  %812 = vmatprep.subr.bf16.mxu1 %v4521_v61 }
  0xb9   :  { %476 = vmatmul.mubr.bf16.gmra.mrb[12].mxu0 %v3617_v62  ;;  %549 = vmatmul.mubr.bf16.gmra.mrb[12].mxu1 %v3617_v62 }
  0xba   :  { %772 = vmatpush1.bf16.msra.mxu0 %v4529_v63  ;;  %813 = vmatpush1.bf16.msra.mxu1 %v4531_v1 }
  0xbb   :  { %773 = vmatprep.subr.bf16.mxu0 %v4533_v2  ;;  %814 = vmatprep.subr.bf16.mxu1 %v4535_v3 }
  0xbc   :  { %791 = vmatprep.mubr.bf16.mxu0 %v5760_v0  ;;  %832 = vmatprep.mubr.bf16.mxu1 %v5760_v0 }
  0xbe   :  { %774 = vmatpush1.bf16.msra.mxu0 %v4541_v4  ;;  %815 = vmatpush1.bf16.msra.mxu1 %v4543_v5 }
  0xbf   :  { %879 = vmatprep.subr.bf16.mxu0 %v4449_v33  ;;  %920 = vmatprep.subr.bf16.mxu1 %v4451_v34 }
  0xc1   :  { %792 = vmatmul.mubr.bf16.vlgmr.msra.gmra.mrb[16].mxu0 %v5758_v6  ;;  %833 = vmatmul.mubr.bf16.vlgmr.msra.gmra.mrb[16].mxu1 %v5758_v6 }
  0xc2   :  { %880 = vmatpush1.bf16.msra.mxu0 %v4453_v36  ;;  %921 = vmatpush1.bf16.msra.mxu1 %v4455_v37 }
  0xc3   :  { %881 = vmatprep.subr.bf16.mxu0 %v4459_v38  ;;  %922 = vmatprep.subr.bf16.mxu1 %v4461_v39 }
  0xc4   :  { %911 = vmatprep.mubr.bf16.mxu0 %v5760_v0  ;;  %952 = vmatprep.mubr.bf16.mxu1 %v5760_v0 }
  0xc6   :  { %882 = vmatpush1.bf16.msra.mxu0 %v4463_v40  ;;  %923 = vmatpush1.bf16.msra.mxu1 %v4467_v41 }
  0xc7   :  { %883 = vmatprep.subr.bf16.mxu0 %v4471_v42  ;;  %924 = vmatprep.subr.bf16.mxu1 %v4473_v43 }
  0xca   :  { %884 = vmatpush1.bf16.msra.mxu0 %v4477_v45  ;;  %925 = vmatpush1.bf16.msra.mxu1 %v4479_v46 }
  0xcb   :  { %885 = vmatprep.subr.bf16.mxu0 %v4483_v47  ;;  %926 = vmatprep.subr.bf16.mxu1 %v4487_v48 }
  0xce   :  { %886 = vmatpush1.bf16.msra.mxu0 %v4489_v49  ;;  %927 = vmatpush1.bf16.msra.mxu1 %v4491_v50 }
  0xcf   :  { %887 = vmatprep.subr.bf16.mxu0 %v4495_v51  ;;  %928 = vmatprep.subr.bf16.mxu1 %v4499_v52 }
  0xd2   :  { %888 = vmatpush1.bf16.msra.mxu0 %v4503_v54  ;;  %929 = vmatpush1.bf16.msra.mxu1 %v4505_v55 }
  0xd3   :  { %889 = vmatprep.subr.bf16.mxu0 %v4507_v56  ;;  %930 = vmatprep.subr.bf16.mxu1 %v4509_v57 }
  0xd6   :  { %890 = vmatpush1.bf16.msra.mxu0 %v4515_v58  ;;  %931 = vmatpush1.bf16.msra.mxu1 %v4517_v59 }
  0xd7   :  { %891 = vmatprep.subr.bf16.mxu0 %v4519_v60  ;;  %932 = vmatprep.subr.bf16.mxu1 %v4521_v61 }
  0xda   :  { %892 = vmatpush1.bf16.msra.mxu0 %v4529_v63  ;;  %933 = vmatpush1.bf16.msra.mxu1 %v4531_v1 }
  0xdb   :  { %893 = vmatprep.subr.bf16.mxu0 %v4533_v2  ;;  %934 = vmatprep.subr.bf16.mxu1 %v4535_v3 }
  0xde   :  { %894 = vmatpush1.bf16.msra.mxu0 %v4541_v4  ;;  %935 = vmatpush1.bf16.msra.mxu1 %v4543_v5 }
  0xdf   :  { %1000 = vmatprep.subr.bf16.mxu0 %v4449_v33  ;;  %1041 = vmatprep.subr.bf16.mxu1 %v4451_v34 }
 0x174   :  { %v4601_v15 = vpop.f32.mrb[0].mxu0  ;;  %v4603_v16 = vpop.f32.mrb[0].mxu1 }
 0x175   :  { %v449_v19 = vpop.f32.mrb[1].mxu0  ;;  %v522_v20 = vpop.f32.mrb[1].mxu1 }
 0x176   :  { %v451_v22 = vpop.f32.mrb[2].mxu0  ;;  %v524_v23 = vpop.f32.mrb[2].mxu1 }
 0x177   :  { %v4613_v24 = vadd.f32 %v451_v22, %v212_v18  ;;  %v453_v25 = vpop.f32.mrb[3].mxu0  ;;  %v4616_v26 = vadd.f32 %v524_v23, %v4599_v14  ;;  %v526_v27 = vpop.f32.mrb[3].mxu1 }
 0x178   :  { %v4618_v28 = vadd.f32 %v453_v25, %v216_v21  ;;  %v4621_v29 = vadd.f32 %v526_v27, %v4607_v17 }
 0x17c   :  { %v457_v30 = vpop.f32.mrb[4].mxu0  ;;  %v530_v31 = vpop.f32.mrb[4].mxu1 }
 0x17d   :  { %v4623_v32 = vadd.f32 %v457_v30, %v212_v18  ;;  %v459_v35 = vpop.f32.mrb[5].mxu0  ;;  %v4626_v44 = vadd.f32 %v530_v31, %v4599_v14  ;;  %v532_v53 = vpop.f32.mrb[5].mxu1 }
 0x17e   :  { %v4628_v62 = vadd.f32 %v459_v35, %v216_v21  ;;  %v461_v7 = vpop.f32.mrb[6].mxu0  ;;  %v4631_v12 = vadd.f32 %v532_v53, %v4607_v17  ;;  %v534_v22 = vpop.f32.mrb[6].mxu1 }
 0x17f   :  { %v4633_v23 = vadd.f32 %v461_v7, %v212_v18  ;;  %v463_v25 = vpop.f32.mrb[7].mxu0  ;;  %v4636_v27 = vadd.f32 %v534_v22, %v4599_v14  ;;  %v536_v30 = vpop.f32.mrb[7].mxu1 }
 0x180   :  { %5765 = vst [vmem:[#allocation29_spill] sm:$0xff] %v4631_v12  ;;  %v4638_v10 = vadd.f32 %v463_v25, %v216_v21  ;;  %v4641_v31 = vadd.f32 %v536_v30, %v4607_v17 }
 0x181   :  { %5766 = vst [vmem:[#allocation30_spill] sm:$0xff] %v4633_v23  ;;  %5767 = vst [vmem:[#allocation31_spill] sm:$0xff] %v4636_v27 }
 0x182   :  { %5768 = vst [vmem:[#allocation32_spill] sm:$0xff] %v4638_v10  ;;  %5769 = vst [vmem:[#allocation33_spill] sm:$0xff] %v4641_v31 }
 0x184   :  { %v467_v13 = vpop.f32.mrb[8].mxu0  ;;  %v540_v35 = vpop.f32.mrb[8].mxu1 }
 0x185   :  { %v4643_v9 = vadd.f32 %v467_v13, %v212_v18  ;;  %v469_v11 = vpop.f32.mrb[9].mxu0  ;;  %v4646_v53 = vadd.f32 %v540_v35, %v4599_v14  ;;  %v542_v7 = vpop.f32.mrb[9].mxu1 }
 0x186   :  { %v4648_v6 = vadd.f32 %v469_v11, %v216_v21  ;;  %v471_v0 = vpop.f32.mrb[10].mxu0  ;;  %v4651_v22 = vadd.f32 %v542_v7, %v4607_v17  ;;  %v544_v25 = vpop.f32.mrb[10].mxu1 }
 0x187   :  { %5770 = vst [vmem:[#allocation34_spill] sm:$0xff] %v4643_v9  ;;  %5771 = vst [vmem:[#allocation35_spill] sm:$0xff] %v4646_v53  ;;  %v4653_v8 = vadd.f32 %v471_v0, %v212_v18  ;;  %v473_v30 = vpop.f32.mrb[11].mxu0  ;;  %v4656_v31 = vadd.f32 %v544_v25, %v4599_v14  ;;  %v546_v13 = vpop.f32.mrb[11].mxu1 }
 0x188   :  { %5772 = vst [vmem:[#allocation36_spill] sm:$0xff] %v4648_v6  ;;  %5773 = vst [vmem:[#allocation37_spill] sm:$0xff] %v4651_v22  ;;  %v4658_v9 = vadd.f32 %v473_v30, %v216_v21  ;;  %v4661_v35 = vadd.f32 %v546_v13, %v4607_v17 }
 0x189   :  { %5774 = vst [vmem:[#allocation38_spill] sm:$0xff] %v4653_v8  ;;  %5775 = vst [vmem:[#allocation39_spill] sm:$0xff] %v4656_v31 }
 0x18a   :  { %5776 = vst [vmem:[#allocation40_spill] sm:$0xff] %v4658_v9  ;;  %5777 = vst [vmem:[#allocation41_spill] sm:$0xff] %v4661_v35 }
 0x18c   :  { %v477_v53 = vpop.f32.mrb[12].mxu0  ;;  %v550_v11 = vpop.f32.mrb[12].mxu1 }
 0x18d   :  { %v4663_v6 = vadd.f32 %v477_v53, %v212_v18  ;;  %v479_v10 = vpop.f32.mrb[13].mxu0  ;;  %v4666_v7 = vadd.f32 %v550_v11, %v4599_v14  ;;  %v552_v0 = vpop.f32.mrb[13].mxu1 }
 0x18e   :  { %v4668_v8 = vadd.f32 %v479_v10, %v216_v21  ;;  %v481_v22 = vpop.f32.mrb[14].mxu0  ;;  %v4671_v25 = vadd.f32 %v552_v0, %v4607_v17  ;;  %v554_v30 = vpop.f32.mrb[14].mxu1  ;;  %v448_v10 = vadd.f32 %v4601_v15, %v212_v18  ;;  %v450_v0 = vadd.f32 %v449_v19, %v216_v21 }
 0x18f   :  { %5778 = vst [vmem:[#allocation42_spill] sm:$0xff] %v4663_v6  ;;  %5779 = vst [vmem:[#allocation43_spill] sm:$0xff] %v4666_v7  ;;  %v4673_v9 = vadd.f32 %v481_v22, %v212_v18  ;;  %v483_v13 = vpop.f32.mrb[15].mxu0  ;;  %v4676_v35 = vadd.f32 %v554_v30, %v4599_v14  ;;  %v556_v53 = vpop.f32.mrb[15].mxu1 }
 0x190   :  { %5780 = vst [vmem:[#allocation44_spill] sm:$0xff] %v4668_v8  ;;  %5781 = vst [vmem:[#allocation45_spill] sm:$0xff] %v4671_v25  ;;  %v4678_v6 = vadd.f32 %v483_v13, %v216_v21  ;;  %v4681_v11 = vadd.f32 %v556_v53, %v4607_v17  ;;  %v521_v8 = vadd.f32 %v4603_v16, %v4599_v14 }
 0x191   :  { %5782 = vst [vmem:[#allocation46_spill] sm:$0xff] %v4673_v9  ;;  %5783 = vst [vmem:[#allocation47_spill] sm:$0xff] %v4676_v35  ;;  %v523_v25 = vadd.f32 %v522_v20, %v4607_v17 }
 0x192   :  { %5784 = vst [vmem:[#allocation48_spill] sm:$0xff] %v4678_v6  ;;  %5785 = vst [vmem:[#allocation49_spill] sm:$0xff] %v4681_v11 }
 0x194   :  { %v793_v22 = vpop.f32.mrb[16].mxu0  ;;  %v834_v9 = vpop.f32.mrb[16].mxu1 }
 0x195   :  { %v841_v7 = vadd.f32 %v793_v22, %v448_v10  ;;  %v843_v31 = vadd.f32 %v834_v9, %v521_v8  ;;  %v795_v30 = vpop.f32.mrb[17].mxu0  ;;  %v836_v35 = vpop.f32.mrb[17].mxu1 }
 0x196   :  { %v842_v27 = vadd.f32 %v795_v30, %v450_v0  ;;  %v844_v13 = vadd.f32 %v836_v35, %v523_v25  ;;  %v797_v6 = vpop.f32.mrb[18].mxu0  ;;  %v838_v23 = vpop.f32.mrb[18].mxu1  ;;  %v5786_v30 = vmov 0  }
 0x197   :  { %v845_v53 = vmul.f32 1.442695, %v841_v7  ;;  %v798_v11 = vpop.f32.mrb[19].mxu0  ;;  %v839_v12 = vpop.f32.mrb[19].mxu1  ;;  %3726 = vtanh.f32 %v843_v31 }
 0x198   :  { %v3415_v15 = vmul.f32 -1.442695, %v842_v27  ;;  %v3416_v8 = vmul.f32 -1.442695, %v844_v13 }
 0x199   :  { %3728 = vpow2.f32 %v845_v53 }
 0x19a   :  { %3730 = vpow2.f32 %v3415_v15 }
 0x1a1   :  { %v3727_v14 = vpop.eup %3726 }
 0x1a3   :  { %v3729_v16 = vpop.eup %3728 }
 0x1a4   :  { %v3731_v17 = vpop.eup %3730  ;;  %v863_v18 = vmul.f32 %v3729_v16, %v3727_v14 }
 0x1a5   :  { %v850_v19 = vadd.f32 1.0, %v3731_v17 }
 0x1a7   :  { %3732 = vrcp.f32 %v850_v19 }
 0x1a8   :  { %3734 = vpow2.f32 %v3416_v8 }
 0x1b1   :  { %v3733_v9 = vpop.eup %3732 }
 0x1b2   :  { %v860_v20 = vmul.f32 0.0, %v3733_v9  ;;  %v3735_v23 = vpop.eup %3734 }
 0x1b3   :  { %v857_v27 = vadd.f32 1.0, %v3735_v23 }
 0x1b4   :  { %v4687_v21 = vadd.f32 %v3729_v16, %v860_v20  ;;  %v4689_v6 = vadd.f32 %v863_v18, %v860_v20 }
 0x1b6   :  { %v865_v12 = vadd.f32 1e-08, %v4687_v21 }
 0x1b8   :  { %3736 = vrcp.f32 %v865_v12 }
 0x1b9   :  { %3738 = vrcp.f32 %v857_v27 }
 0x1c2   :  { %v3737_v31 = vpop.eup %3736 }
 0x1c3   :  { %v867_v35 = vmul.f32 %v3737_v31, %v865_v12  ;;  %v3739_v25 = vpop.eup %3738 }
 0x1c4   :  { %v870_v10 = vmul.f32 %v3739_v25, %v4689_v6 }
 0x1c5   :  { %v868_v7 = vsub.f32 2.0, %v867_v35 }
 0x1c7   :  { %v869_v11 = vmul.f32 %v3737_v31, %v868_v7 }
 0x1c9   :  { %v871_v0 = vmul.f32 %v870_v10, %v869_v11 }
 0x1cb   :  { %872 = vst [vmem:[#allocation15] sm:$0xff] %v871_v0  ;;  %v878_v22 = vpack.c.bf16 %v871_v0, %v871_v0 }
 0x1cd   :  { %912 = vmatmul.mubr.bf16.vlgmr.msra.gmra.mrb[20].mxu0 %v878_v22  ;;  %953 = vmatmul.mubr.bf16.vlgmr.msra.gmra.mrb[20].mxu1 %v878_v22 }
 0x1ce   :  { %1001 = vmatpush1.bf16.msra.mxu0 %v4453_v36  ;;  %1042 = vmatpush1.bf16.msra.mxu1 %v4455_v37 }
 0x1cf   :  { %1002 = vmatprep.subr.bf16.mxu0 %v4459_v38  ;;  %1043 = vmatprep.subr.bf16.mxu1 %v4461_v39 }
 0x1d0   :  { %1032 = vmatprep.mubr.bf16.mxu0 %v5786_v30  ;;  %1073 = vmatprep.mubr.bf16.mxu1 %v5786_v30 }
 0x1d2   :  { %1003 = vmatpush1.bf16.msra.mxu0 %v4463_v40  ;;  %1044 = vmatpush1.bf16.msra.mxu1 %v4467_v41 }
 0x1d3   :  { %1004 = vmatprep.subr.bf16.mxu0 %v4471_v42  ;;  %1045 = vmatprep.subr.bf16.mxu1 %v4473_v43 }
 0x1d6   :  { %1005 = vmatpush1.bf16.msra.mxu0 %v4477_v45  ;;  %1046 = vmatpush1.bf16.msra.mxu1 %v4479_v46 }
 0x1d7   :  { %1006 = vmatprep.subr.bf16.mxu0 %v4483_v47  ;;  %1047 = vmatprep.subr.bf16.mxu1 %v4487_v48 }
 0x1da   :  { %1007 = vmatpush1.bf16.msra.mxu0 %v4489_v49  ;;  %1048 = vmatpush1.bf16.msra.mxu1 %v4491_v50 }
 0x1db   :  { %1008 = vmatprep.subr.bf16.mxu0 %v4495_v51  ;;  %1049 = vmatprep.subr.bf16.mxu1 %v4499_v52 }
 0x1de   :  { %1009 = vmatpush1.bf16.msra.mxu0 %v4503_v54  ;;  %1050 = vmatpush1.bf16.msra.mxu1 %v4505_v55 }
 0x1df   :  { %1010 = vmatprep.subr.bf16.mxu0 %v4507_v56  ;;  %1051 = vmatprep.subr.bf16.mxu1 %v4509_v57 }
 0x1e2   :  { %1011 = vmatpush1.bf16.msra.mxu0 %v4515_v58  ;;  %1052 = vmatpush1.bf16.msra.mxu1 %v4517_v59 }
 0x1e3   :  { %1012 = vmatprep.subr.bf16.mxu0 %v4519_v60  ;;  %1053 = vmatprep.subr.bf16.mxu1 %v4521_v61 }
 0x1e6   :  { %1013 = vmatpush1.bf16.msra.mxu0 %v4529_v63  ;;  %1054 = vmatpush1.bf16.msra.mxu1 %v4531_v1 }
 0x1e7   :  { %1014 = vmatprep.subr.bf16.mxu0 %v4533_v2  ;;  %1055 = vmatprep.subr.bf16.mxu1 %v4535_v3 }
 0x1ea   :  { %1015 = vmatpush1.bf16.msra.mxu0 %v4541_v4  ;;  %1056 = vmatpush1.bf16.msra.mxu1 %v4543_v5 }
 0x1eb   :  { %1121 = vmatprep.subr.bf16.mxu0 %v4449_v33  ;;  %1162 = vmatprep.subr.bf16.mxu1 %v4451_v34 }
 0x2a0   :  { %v913_v13 = vpop.f32.mrb[20].mxu0  ;;  %v954_v53 = vpop.f32.mrb[20].mxu1 }
 0x2a1   :  { %v961_v15 = vadd.f32 %v913_v13, %v4613_v24  ;;  %v963_v14 = vadd.f32 %v954_v53, %v4616_v26  ;;  %v915_v16 = vpop.f32.mrb[21].mxu0  ;;  %v956_v17 = vpop.f32.mrb[21].mxu1 }
 0x2a2   :  { %v962_v18 = vadd.f32 %v915_v16, %v4618_v28  ;;  %v964_v19 = vadd.f32 %v956_v17, %v4621_v29  ;;  %v917_v8 = vpop.f32.mrb[22].mxu0  ;;  %v958_v9 = vpop.f32.mrb[22].mxu1 }
 0x2a3   :  { %v965_v20 = vmul.f32 1.442695, %v961_v15  ;;  %v918_v23 = vpop.f32.mrb[23].mxu0  ;;  %v959_v12 = vpop.f32.mrb[23].mxu1  ;;  %3740 = vtanh.f32 %v963_v14 }
 0x2a4   :  { %v3417_v27 = vmul.f32 -1.442695, %v962_v18  ;;  %v3418_v25 = vmul.f32 -1.442695, %v964_v19 }
 0x2a5   :  { %3742 = vpow2.f32 %v965_v20 }
 0x2a6   :  { %3744 = vpow2.f32 %v3417_v27 }
 0x2ad   :  { %v3741_v31 = vpop.eup %3740 }
 0x2af   :  { %v3743_v35 = vpop.eup %3742 }
 0x2b0   :  { %v3745_v24 = vpop.eup %3744  ;;  %v983_v7 = vmul.f32 %v3743_v35, %v3741_v31 }
 0x2b1   :  { %v970_v26 = vadd.f32 1.0, %v3745_v24 }
 0x2b3   :  { %3746 = vrcp.f32 %v970_v26 }
 0x2b4   :  { %3748 = vpow2.f32 %v3418_v25 }
 0x2bd   :  { %v3747_v28 = vpop.eup %3746 }
 0x2be   :  { %v980_v29 = vmul.f32 %v3747_v28, %v4687_v21  ;;  %v982_v11 = vmul.f32 %v3747_v28, %v4689_v6  ;;  %v3749_v22 = vpop.eup %3748 }
 0x2bf   :  { %v977_v53 = vadd.f32 1.0, %v3749_v22 }
 0x2c0   :  { %v4733_v10 = vadd.f32 %v3743_v35, %v980_v29  ;;  %v4735_v0 = vadd.f32 %v983_v7, %v982_v11  ;;  %v5787_v35 = vld [vmem:[#allocation29_spill] sm:$0xff] }
 0x2c2   :  { %v985_v13 = vadd.f32 1e-08, %v4733_v10 }
 0x2c4   :  { %3750 = vrcp.f32 %v985_v13 }
 0x2c5   :  { %3752 = vrcp.f32 %v977_v53 }
 0x2ce   :  { %v3751_v15 = vpop.eup %3750 }
 0x2cf   :  { %v987_v14 = vmul.f32 %v3751_v15, %v985_v13  ;;  %v3753_v17 = vpop.eup %3752 }
 0x2d0   :  { %v990_v19 = vmul.f32 %v3753_v17, %v4735_v0 }
 0x2d1   :  { %v988_v16 = vsub.f32 2.0, %v987_v14 }
 0x2d3   :  { %v989_v18 = vmul.f32 %v3751_v15, %v988_v16 }
 0x2d5   :  { %v4739_v21 = vmul.f32 %v990_v19, %v989_v18 }
 0x2d7   :  { %v999_v6 = vpack.c.bf16 %v4739_v21, %v4739_v21 }
 0x2d9   :  { %1033 = vmatmul.mubr.bf16.vlgmr.msra.gmra.mrb[24].mxu0 %v999_v6  ;;  %1074 = vmatmul.mubr.bf16.vlgmr.msra.gmra.mrb[24].mxu1 %v999_v6 }
 0x2da   :  { %1122 = vmatpush1.bf16.msra.mxu0 %v4453_v36  ;;  %1163 = vmatpush1.bf16.msra.mxu1 %v4455_v37 }
 0x2db   :  { %1123 = vmatprep.subr.bf16.mxu0 %v4459_v38  ;;  %1164 = vmatprep.subr.bf16.mxu1 %v4461_v39 }
 0x2dc   :  { %1153 = vmatprep.mubr.bf16.mxu0 %v5786_v30  ;;  %1194 = vmatprep.mubr.bf16.mxu1 %v5786_v30 }
 0x2de   :  { %1124 = vmatpush1.bf16.msra.mxu0 %v4463_v40  ;;  %1165 = vmatpush1.bf16.msra.mxu1 %v4467_v41 }
 0x2df   :  { %1125 = vmatprep.subr.bf16.mxu0 %v4471_v42  ;;  %1166 = vmatprep.subr.bf16.mxu1 %v4473_v43 }
 0x2e2   :  { %1126 = vmatpush1.bf16.msra.mxu0 %v4477_v45  ;;  %1167 = vmatpush1.bf16.msra.mxu1 %v4479_v46 }
 0x2e3   :  { %1127 = vmatprep.subr.bf16.mxu0 %v4483_v47  ;;  %1168 = vmatprep.subr.bf16.mxu1 %v4487_v48 }
 0x2e6   :  { %1128 = vmatpush1.bf16.msra.mxu0 %v4489_v49  ;;  %1169 = vmatpush1.bf16.msra.mxu1 %v4491_v50 }
 0x2e7   :  { %1129 = vmatprep.subr.bf16.mxu0 %v4495_v51  ;;  %1170 = vmatprep.subr.bf16.mxu1 %v4499_v52 }
 0x2ea   :  { %1130 = vmatpush1.bf16.msra.mxu0 %v4503_v54  ;;  %1171 = vmatpush1.bf16.msra.mxu1 %v4505_v55 }
 0x2eb   :  { %1131 = vmatprep.subr.bf16.mxu0 %v4507_v56  ;;  %1172 = vmatprep.subr.bf16.mxu1 %v4509_v57 }
 0x2ee   :  { %1132 = vmatpush1.bf16.msra.mxu0 %v4515_v58  ;;  %1173 = vmatpush1.bf16.msra.mxu1 %v4517_v59 }
 0x2ef   :  { %1133 = vmatprep.subr.bf16.mxu0 %v4519_v60  ;;  %1174 = vmatprep.subr.bf16.mxu1 %v4521_v61 }
 0x2f2   :  { %1134 = vmatpush1.bf16.msra.mxu0 %v4529_v63  ;;  %1175 = vmatpush1.bf16.msra.mxu1 %v4531_v1 }
 0x2f3   :  { %1135 = vmatprep.subr.bf16.mxu0 %v4533_v2  ;;  %1176 = vmatprep.subr.bf16.mxu1 %v4535_v3 }
 0x2f6   :  { %1136 = vmatpush1.bf16.msra.mxu0 %v4541_v4  ;;  %1177 = vmatpush1.bf16.msra.mxu1 %v4543_v5 }
 0x2f7   :  { %1242 = vmatprep.subr.bf16.mxu0 %v4449_v33  ;;  %1283 = vmatprep.subr.bf16.mxu1 %v4451_v34 }
 0x3ac   :  { %v1034_v8 = vpop.f32.mrb[24].mxu0  ;;  %v1075_v9 = vpop.f32.mrb[24].mxu1 }
 0x3ad   :  { %v1082_v20 = vadd.f32 %v1034_v8, %v4623_v32  ;;  %v1084_v23 = vadd.f32 %v1075_v9, %v4626_v44  ;;  %v1036_v12 = vpop.f32.mrb[25].mxu0  ;;  %v1077_v27 = vpop.f32.mrb[25].mxu1 }
 0x3ae   :  { %v1083_v31 = vadd.f32 %v1036_v12, %v4628_v62  ;;  %v1085_v24 = vadd.f32 %v1077_v27, %v5787_v35  ;;  %v1038_v7 = vpop.f32.mrb[26].mxu0  ;;  %v1079_v26 = vpop.f32.mrb[26].mxu1 }
 0x3af   :  { %v1086_v25 = vmul.f32 1.442695, %v1082_v20  ;;  %v1039_v28 = vpop.f32.mrb[27].mxu0  ;;  %v1080_v29 = vpop.f32.mrb[27].mxu1  ;;  %3754 = vtanh.f32 %v1084_v23 }
 0x3b0   :  { %v3419_v33 = vmul.f32 -1.442695, %v1083_v31  ;;  %v3420_v13 = vmul.f32 -1.442695, %v1085_v24 }
 0x3b1   :  { %3756 = vpow2.f32 %v1086_v25 }
 0x3b2   :  { %3758 = vpow2.f32 %v3419_v33 }
 0x3b9   :  { %v3755_v34 = vpop.eup %3754 }
 0x3bb   :  { %v3757_v11 = vpop.eup %3756 }
 0x3bc   :  { %v3759_v32 = vpop.eup %3758  ;;  %v1104_v22 = vmul.f32 %v3757_v11, %v3755_v34 }
 0x3bd   :  { %v1091_v44 = vadd.f32 1.0, %v3759_v32 }
 0x3bf   :  { %3760 = vrcp.f32 %v1091_v44 }
 0x3c0   :  { %3762 = vpow2.f32 %v3420_v13 }
 0x3c9   :  { %v3761_v62 = vpop.eup %3760 }
 0x3ca   :  { %v1101_v53 = vmul.f32 %v3761_v62, %v4733_v10  ;;  %v1103_v15 = vmul.f32 %v3761_v62, %v4735_v0  ;;  %v3763_v17 = vpop.eup %3762 }
 0x3cb   :  { %v1098_v19 = vadd.f32 1.0, %v3763_v17 }
 0x3cc   :  { %v4783_v14 = vadd.f32 %v3757_v11, %v1101_v53  ;;  %v4785_v16 = vadd.f32 %v1104_v22, %v1103_v15 }
 0x3ce   :  { %v1106_v18 = vadd.f32 1e-08, %v4783_v14 }
 0x3d0   :  { %3764 = vrcp.f32 %v1106_v18 }
 0x3d1   :  { %3766 = vrcp.f32 %v1098_v19  ;;  %v4850_v19 = vld [vmem:[#allocation8 + $0x8] ss:$16 sps:$4 sm:$0xff]  }
 0x3da   :  { %v3765_v6 = vpop.eup %3764 }
 0x3db   :  { %v1108_v8 = vmul.f32 %v3765_v6, %v1106_v18  ;;  %v3767_v20 = vpop.eup %3766  ;;  %v4847_v18 = vld [vmem:[#allocation8] ss:$16 sps:$4 sm:$0xff]  }
 0x3dc   :  { %v1111_v12 = vmul.f32 %v3767_v20, %v4785_v16  ;;  %v4864_v20 = vld [vmem:[#allocation8 + $0x28] ss:$16 sps:$4 sm:$0xff]  }
 0x3dd   :  { %v1109_v9 = vsub.f32 2.0, %v1108_v8  ;;  %v4856_v8 = vld [vmem:[#allocation8 + $0x2c] ss:$16 sps:$4 sm:$0xff]  }
 0x3df   :  { %v1110_v23 = vmul.f32 %v3765_v6, %v1109_v9  ;;  %v4853_v6 = vld [vmem:[#allocation8 + $0x24] ss:$16 sps:$4 sm:$0xff]   ;;  %v4861_v9 = vld [vmem:[#allocation8 + $0x20] ss:$16 sps:$4 sm:$0xff]  }
 0x3e1   :  { %v4789_v10 = vmul.f32 %v1111_v12, %v1110_v23  ;;  %v4867_v23 = vld [vmem:[#allocation8 + $0x44] ss:$16 sps:$4 sm:$0xff]   ;;  %v4870_v12 = vld [vmem:[#allocation8 + $0x4c] ss:$16 sps:$4 sm:$0xff]  }
 0x3e3   :  { %v1120_v0 = vpack.c.bf16 %v4789_v10, %v4789_v10 }
 0x3e5   :  { %1154 = vmatmul.mubr.bf16.vlgmr.msra.gmra.mrb[28].mxu0 %v1120_v0  ;;  %1195 = vmatmul.mubr.bf16.vlgmr.msra.gmra.mrb[28].mxu1 %v1120_v0  ;;  %v4873_v0 = vld [vmem:[#allocation8 + $0x40] ss:$16 sps:$4 sm:$0xff]  }
 0x3e6   :  { %1243 = vmatpush1.bf16.msra.mxu0 %v4453_v36  ;;  %1284 = vmatpush1.bf16.msra.mxu1 %v4455_v37  ;;  %v4825_v36 = vld [vmem:[#allocation8 + $0x4] ss:$16 sps:$4 sm:$0xff]   ;;  %v4828_v37 = vld [vmem:[#allocation8 + $0xc] ss:$16 sps:$4 sm:$0xff]  }
 0x3e7   :  { %1244 = vmatprep.subr.bf16.mxu0 %v4459_v38  ;;  %1285 = vmatprep.subr.bf16.mxu1 %v4461_v39 }
 0x3e8   :  { %1274 = vmatprep.mubr.bf16.mxu0 %v5786_v30  ;;  %1315 = vmatprep.mubr.bf16.mxu1 %v5786_v30 }
 0x3ea   :  { %1245 = vmatpush1.bf16.msra.mxu0 %v4463_v40  ;;  %1286 = vmatpush1.bf16.msra.mxu1 %v4467_v41  ;;  %v5788_v40 = vld [vmem:[#allocation30_spill] sm:$0xff] }
 0x3eb   :  { %1246 = vmatprep.subr.bf16.mxu0 %v4471_v42  ;;  %1287 = vmatprep.subr.bf16.mxu1 %v4473_v43  ;;  %v5789_v42 = vld [vmem:[#allocation31_spill] sm:$0xff] }
 0x3ee   :  { %1247 = vmatpush1.bf16.msra.mxu0 %v4477_v45  ;;  %1288 = vmatpush1.bf16.msra.mxu1 %v4479_v46 }
 0x3ef   :  { %1248 = vmatprep.subr.bf16.mxu0 %v4483_v47  ;;  %1289 = vmatprep.subr.bf16.mxu1 %v4487_v48  ;;  %v5790_v47 = vld [vmem:[#allocation32_spill] sm:$0xff] }
 0x3f2   :  { %1249 = vmatpush1.bf16.msra.mxu0 %v4489_v49  ;;  %1290 = vmatpush1.bf16.msra.mxu1 %v4491_v50  ;;  %v5791_v49 = vld [vmem:[#allocation33_spill] sm:$0xff] }
 0x3f3   :  { %1250 = vmatprep.subr.bf16.mxu0 %v4495_v51  ;;  %1291 = vmatprep.subr.bf16.mxu1 %v4499_v52 }
 0x3f6   :  { %1251 = vmatpush1.bf16.msra.mxu0 %v4503_v54  ;;  %1292 = vmatpush1.bf16.msra.mxu1 %v4505_v55 }
 0x3f7   :  { %1252 = vmatprep.subr.bf16.mxu0 %v4507_v56  ;;  %1293 = vmatprep.subr.bf16.mxu1 %v4509_v57 }
 0x3fa   :  { %1253 = vmatpush1.bf16.msra.mxu0 %v4515_v58  ;;  %1294 = vmatpush1.bf16.msra.mxu1 %v4517_v59 }
 0x3fb   :  { %1254 = vmatprep.subr.bf16.mxu0 %v4519_v60  ;;  %1295 = vmatprep.subr.bf16.mxu1 %v4521_v61 }
 0x3fe   :  { %1255 = vmatpush1.bf16.msra.mxu0 %v4529_v63  ;;  %1296 = vmatpush1.bf16.msra.mxu1 %v4531_v1 }
 0x3ff   :  { %1256 = vmatprep.subr.bf16.mxu0 %v4533_v2  ;;  %1297 = vmatprep.subr.bf16.mxu1 %v4535_v3 }
 0x402   :  { %1257 = vmatpush1.bf16.msra.mxu0 %v4541_v4  ;;  %1298 = vmatpush1.bf16.msra.mxu1 %v4543_v5 }
 0x403   :  { %1363 = vmatprep.subr.bf16.mxu0 %v4825_v36  ;;  %1404 = vmatprep.subr.bf16.mxu1 %v4828_v37 }
 0x4b8   :  { %v1155_v38 = vpop.f32.mrb[28].mxu0  ;;  %v1196_v39 = vpop.f32.mrb[28].mxu1 }
 0x4b9   :  { %v1203_v41 = vadd.f32 %v1155_v38, %v5788_v40  ;;  %v1205_v43 = vadd.f32 %v1196_v39, %v5789_v42  ;;  %v1157_v45 = vpop.f32.mrb[29].mxu0  ;;  %v1198_v46 = vpop.f32.mrb[29].mxu1  ;;  %v4876_v38 = vld [vmem:[#allocation8 + $0x48] ss:$16 sps:$4 sm:$0xff]   ;;  %v4879_v39 = vld [vmem:[#allocation8 + $0x64] ss:$16 sps:$4 sm:$0xff]  }
 0x4ba   :  { %v1204_v48 = vadd.f32 %v1157_v45, %v5790_v47  ;;  %v1206_v50 = vadd.f32 %v1198_v46, %v5791_v49  ;;  %v1159_v51 = vpop.f32.mrb[30].mxu0  ;;  %v1200_v52 = vpop.f32.mrb[30].mxu1  ;;  %v4882_v40 = vld [vmem:[#allocation8 + $0x6c] ss:$16 sps:$4 sm:$0xff]   ;;  %v4888_v42 = vld [vmem:[#allocation8 + $0x68] ss:$16 sps:$4 sm:$0xff]  }
 0x4bb   :  { %v1207_v54 = vmul.f32 1.442695, %v1203_v41  ;;  %v1160_v55 = vpop.f32.mrb[31].mxu0  ;;  %v1201_v56 = vpop.f32.mrb[31].mxu1  ;;  %3768 = vtanh.f32 %v1205_v43  ;;  %v4885_v41 = vld [vmem:[#allocation8 + $0x60] ss:$16 sps:$4 sm:$0xff]  }
 0x4bc   :  { %v3421_v57 = vmul.f32 -1.442695, %v1204_v48  ;;  %v3422_v26 = vmul.f32 -1.442695, %v1206_v50  ;;  %v4891_v43 = vld [vmem:[#allocation8 + $0x84] ss:$16 sps:$4 sm:$0xff]  }
 0x4bd   :  { %3770 = vpow2.f32 %v1207_v54  ;;  %v4894_v45 = vld [vmem:[#allocation8 + $0x8c] ss:$16 sps:$4 sm:$0xff]   ;;  %v4897_v46 = vld [vmem:[#allocation8 + $0x80] ss:$16 sps:$4 sm:$0xff]   ;;  %v4900_v47 = vld [vmem:[#allocation8 + $0x88] ss:$16 sps:$4 sm:$0xff]  }
 0x4be   :  { %3772 = vpow2.f32 %v3421_v57  ;;  %v4903_v48 = vld [vmem:[#allocation8 + $0xa4] ss:$16 sps:$4 sm:$0xff]   ;;  %v4906_v49 = vld [vmem:[#allocation8 + $0xac] ss:$16 sps:$4 sm:$0xff]  }
 0x4bf   :  { %v5793_v50 = vld [vmem:[#allocation35_spill] sm:$0xff]  ;;  %v5794_v52 = vld [vmem:[#allocation36_spill] sm:$0xff]  ;;  %v5795_v54 = vld [vmem:[#allocation37_spill] sm:$0xff] }
 0x4c5   :  { %v3769_v27 = vpop.eup %3768 }
 0x4c7   :  { %v3771_v31 = vpop.eup %3770 }
 0x4c8   :  { %v3773_v35 = vpop.eup %3772  ;;  %v1225_v24 = vmul.f32 %v3771_v31, %v3769_v27 }
 0x4c9   :  { %v1212_v7 = vadd.f32 1.0, %v3773_v35 }
 0x4cb   :  { %3774 = vrcp.f32 %v1212_v7 }
 0x4cc   :  { %3776 = vpow2.f32 %v3422_v26 }
 0x4d5   :  { %v3775_v25 = vpop.eup %3774 }
 0x4d6   :  { %v1222_v28 = vmul.f32 %v3775_v25, %v4783_v14  ;;  %v1224_v29 = vmul.f32 %v3775_v25, %v4785_v16  ;;  %v3777_v11 = vpop.eup %3776 }
 0x4d7   :  { %v1219_v22 = vadd.f32 1.0, %v3777_v11 }
 0x4d8   :  { %v4837_v33 = vadd.f32 %v3771_v31, %v1222_v28  ;;  %v4839_v34 = vadd.f32 %v1225_v24, %v1224_v29 }
 0x4da   :  { %v1227_v32 = vadd.f32 1e-08, %v4837_v33 }
 0x4dc   :  { %3778 = vrcp.f32 %v1227_v32 }
 0x4dd   :  { %3780 = vrcp.f32 %v1219_v22 }
 0x4e6   :  { %v3779_v44 = vpop.eup %3778 }
 0x4e7   :  { %v1229_v13 = vmul.f32 %v3779_v44, %v1227_v32  ;;  %v3781_v53 = vpop.eup %3780 }
 0x4e8   :  { %v1232_v17 = vmul.f32 %v3781_v53, %v4839_v34 }
 0x4e9   :  { %v1230_v62 = vsub.f32 2.0, %v1229_v13 }
 0x4eb   :  { %v1231_v15 = vmul.f32 %v3779_v44, %v1230_v62 }
 0x4ed   :  { %v4843_v14 = vmul.f32 %v1232_v17, %v1231_v15 }
 0x4ef   :  { %v1241_v16 = vpack.c.bf16 %v4843_v14, %v4843_v14 }
 0x4f1   :  { %1275 = vmatmul.mubr.bf16.vlgmr.msra.gmra.mrb[32].mxu0 %v1241_v16  ;;  %1316 = vmatmul.mubr.bf16.vlgmr.msra.gmra.mrb[32].mxu1 %v1241_v16 }
 0x4f2   :  { %1364 = vmatpush1.bf16.msra.mxu0 %v4847_v18  ;;  %1405 = vmatpush1.bf16.msra.mxu1 %v4850_v19 }
 0x4f3   :  { %1365 = vmatprep.subr.bf16.mxu0 %v4853_v6  ;;  %1406 = vmatprep.subr.bf16.mxu1 %v4856_v8 }
 0x4f4   :  { %1395 = vmatprep.mubr.bf16.mxu0 %v5786_v30  ;;  %1436 = vmatprep.mubr.bf16.mxu1 %v5786_v30 }
 0x4f6   :  { %1366 = vmatpush1.bf16.msra.mxu0 %v4861_v9  ;;  %1407 = vmatpush1.bf16.msra.mxu1 %v4864_v20 }
 0x4f7   :  { %1367 = vmatprep.subr.bf16.mxu0 %v4867_v23  ;;  %1408 = vmatprep.subr.bf16.mxu1 %v4870_v12 }
 0x4fa   :  { %1368 = vmatpush1.bf16.msra.mxu0 %v4873_v0  ;;  %1409 = vmatpush1.bf16.msra.mxu1 %v4876_v38 }
 0x4fb   :  { %1369 = vmatprep.subr.bf16.mxu0 %v4879_v39  ;;  %1410 = vmatprep.subr.bf16.mxu1 %v4882_v40 }
 0x4fe   :  { %1370 = vmatpush1.bf16.msra.mxu0 %v4885_v41  ;;  %1411 = vmatpush1.bf16.msra.mxu1 %v4888_v42 }
 0x4ff   :  { %1371 = vmatprep.subr.bf16.mxu0 %v4891_v43  ;;  %1412 = vmatprep.subr.bf16.mxu1 %v4894_v45 }
 0x502   :  { %1372 = vmatpush1.bf16.msra.mxu0 %v4897_v46  ;;  %1413 = vmatpush1.bf16.msra.mxu1 %v4900_v47 }
 0x503   :  { %1373 = vmatprep.subr.bf16.mxu0 %v4903_v48  ;;  %1414 = vmatprep.subr.bf16.mxu1 %v4906_v49 }
 0x506   :  { %1374 = vmatpush1.bf16.msra.mxu0 %v4515_v58  ;;  %1415 = vmatpush1.bf16.msra.mxu1 %v4517_v59 }
 0x507   :  { %1375 = vmatprep.subr.bf16.mxu0 %v4519_v60  ;;  %1416 = vmatprep.subr.bf16.mxu1 %v4521_v61  ;;  %v5792_v60 = vld [vmem:[#allocation34_spill] sm:$0xff] }
 0x50a   :  { %1376 = vmatpush1.bf16.msra.mxu0 %v4529_v63  ;;  %1417 = vmatpush1.bf16.msra.mxu1 %v4531_v1 }
 0x50b   :  { %1377 = vmatprep.subr.bf16.mxu0 %v4533_v2  ;;  %1418 = vmatprep.subr.bf16.mxu1 %v4535_v3 }
 0x50e   :  { %1378 = vmatpush1.bf16.msra.mxu0 %v4541_v4  ;;  %1419 = vmatpush1.bf16.msra.mxu1 %v4543_v5 }
 0x50f   :  { %1484 = vmatprep.subr.bf16.mxu0 %v4825_v36  ;;  %1525 = vmatprep.subr.bf16.mxu1 %v4828_v37 }
 0x5c4   :  { %v1276_v58 = vpop.f32.mrb[32].mxu0  ;;  %v1317_v59 = vpop.f32.mrb[32].mxu1 }
 0x5c5   :  { %v1324_v61 = vadd.f32 %v1276_v58, %v5792_v60  ;;  %v1326_v63 = vadd.f32 %v1317_v59, %v5793_v50  ;;  %v1278_v51 = vpop.f32.mrb[33].mxu0  ;;  %v1319_v1 = vpop.f32.mrb[33].mxu1  ;;  %v4959_v60 = vld [vmem:[#allocation8 + $0xa0] ss:$16 sps:$4 sm:$0xff]   ;;  %v4965_v50 = vld [vmem:[#allocation8 + $0xc4] ss:$16 sps:$4 sm:$0xff]  }
 0x5c6   :  { %v1325_v2 = vadd.f32 %v1278_v51, %v5794_v52  ;;  %v1327_v3 = vadd.f32 %v1319_v1, %v5795_v54  ;;  %v1280_v55 = vpop.f32.mrb[34].mxu0  ;;  %v1321_v4 = vpop.f32.mrb[34].mxu1  ;;  %v4971_v51 = vld [vmem:[#allocation8 + $0xc0] ss:$16 sps:$4 sm:$0xff]   ;;  %v4974_v1 = vld [vmem:[#allocation8 + $0xc8] ss:$16 sps:$4 sm:$0xff]  }
 0x5c7   :  { %v1328_v56 = vmul.f32 1.442695, %v1324_v61  ;;  %v1281_v5 = vpop.f32.mrb[35].mxu0  ;;  %v1322_v57 = vpop.f32.mrb[35].mxu1  ;;  %3782 = vtanh.f32 %v1326_v63  ;;  %v4962_v61 = vld [vmem:[#allocation8 + $0xa8] ss:$16 sps:$4 sm:$0xff]  }
 0x5c8   :  { %v3423_v27 = vmul.f32 -1.442695, %v1325_v2  ;;  %v3424_v25 = vmul.f32 -1.442695, %v1327_v3  ;;  %v4968_v63 = vld [vmem:[#allocation8 + $0xcc] ss:$16 sps:$4 sm:$0xff]  }
 0x5c9   :  { %3784 = vpow2.f32 %v1328_v56  ;;  %v4977_v52 = vld [vmem:[#allocation8 + $0xe4] ss:$16 sps:$4 sm:$0xff]   ;;  %v4980_v2 = vld [vmem:[#allocation8 + $0xec] ss:$16 sps:$4 sm:$0xff]   ;;  %v4983_v54 = vld [vmem:[#allocation8 + $0xe0] ss:$16 sps:$4 sm:$0xff]  }
 0x5ca   :  { %3786 = vpow2.f32 %v3423_v27  ;;  %v4986_v3 = vld [vmem:[#allocation8 + $0xe8] ss:$16 sps:$4 sm:$0xff]   ;;  %v5797_v57 = vld [vmem:[#allocation39_spill] sm:$0xff] }
 0x5cb   :  { %v5796_v56 = vld [vmem:[#allocation38_spill] sm:$0xff] }
 0x5d1   :  { %v3783_v31 = vpop.eup %3782 }
 0x5d3   :  { %v3785_v35 = vpop.eup %3784 }
 0x5d4   :  { %v3787_v24 = vpop.eup %3786  ;;  %v1346_v7 = vmul.f32 %v3785_v35, %v3783_v31 }
 0x5d5   :  { %v1333_v26 = vadd.f32 1.0, %v3787_v24  ;;  %v5798_v24 = vld [vmem:[#allocation40_spill] sm:$0xff] }
 0x5d7   :  { %3788 = vrcp.f32 %v1333_v26  ;;  %v5799_v26 = vld [vmem:[#allocation41_spill] sm:$0xff] }
 0x5d8   :  { %3790 = vpow2.f32 %v3424_v25 }
 0x5e1   :  { %v3789_v28 = vpop.eup %3788 }
 0x5e2   :  { %v1343_v29 = vmul.f32 %v3789_v28, %v4837_v33  ;;  %v1345_v11 = vmul.f32 %v3789_v28, %v4839_v34  ;;  %v3791_v44 = vpop.eup %3790 }
 0x5e3   :  { %v1340_v62 = vadd.f32 1.0, %v3791_v44 }
 0x5e4   :  { %v4927_v32 = vadd.f32 %v3785_v35, %v1343_v29  ;;  %v4929_v22 = vadd.f32 %v1346_v7, %v1345_v11 }
 0x5e6   :  { %v1348_v13 = vadd.f32 1e-08, %v4927_v32 }
 0x5e8   :  { %3792 = vrcp.f32 %v1348_v13 }
 0x5e9   :  { %3794 = vrcp.f32 %v1340_v62 }
 0x5f2   :  { %v3793_v53 = vpop.eup %3792 }
 0x5f3   :  { %v1350_v15 = vmul.f32 %v3793_v53, %v1348_v13  ;;  %v3795_v16 = vpop.eup %3794 }
 0x5f4   :  { %v1353_v59 = vmul.f32 %v3795_v16, %v4929_v22 }
 0x5f5   :  { %v1351_v17 = vsub.f32 2.0, %v1350_v15 }
 0x5f7   :  { %v1352_v58 = vmul.f32 %v3793_v53, %v1351_v17 }
 0x5f9   :  { %v4933_v33 = vmul.f32 %v1353_v59, %v1352_v58 }
 0x5fb   :  { %v1362_v34 = vpack.c.bf16 %v4933_v33, %v4933_v33 }
 0x5fd   :  { %1396 = vmatmul.mubr.bf16.vlgmr.msra.gmra.mrb[36].mxu0 %v1362_v34  ;;  %1437 = vmatmul.mubr.bf16.vlgmr.msra.gmra.mrb[36].mxu1 %v1362_v34 }
 0x5fe   :  { %1485 = vmatpush1.bf16.msra.mxu0 %v4847_v18  ;;  %1526 = vmatpush1.bf16.msra.mxu1 %v4850_v19 }
 0x5ff   :  { %1486 = vmatprep.subr.bf16.mxu0 %v4853_v6  ;;  %1527 = vmatprep.subr.bf16.mxu1 %v4856_v8 }
 0x600   :  { %1516 = vmatprep.mubr.bf16.mxu0 %v5786_v30  ;;  %1557 = vmatprep.mubr.bf16.mxu1 %v5786_v30 }
 0x602   :  { %1487 = vmatpush1.bf16.msra.mxu0 %v4861_v9  ;;  %1528 = vmatpush1.bf16.msra.mxu1 %v4864_v20 }
 0x603   :  { %1488 = vmatprep.subr.bf16.mxu0 %v4867_v23  ;;  %1529 = vmatprep.subr.bf16.mxu1 %v4870_v12 }
 0x606   :  { %1489 = vmatpush1.bf16.msra.mxu0 %v4873_v0  ;;  %1530 = vmatpush1.bf16.msra.mxu1 %v4876_v38 }
 0x607   :  { %1490 = vmatprep.subr.bf16.mxu0 %v4879_v39  ;;  %1531 = vmatprep.subr.bf16.mxu1 %v4882_v40 }
 0x60a   :  { %1491 = vmatpush1.bf16.msra.mxu0 %v4885_v41  ;;  %1532 = vmatpush1.bf16.msra.mxu1 %v4888_v42 }
 0x60b   :  { %1492 = vmatprep.subr.bf16.mxu0 %v4891_v43  ;;  %1533 = vmatprep.subr.bf16.mxu1 %v4894_v45 }
 0x60e   :  { %1493 = vmatpush1.bf16.msra.mxu0 %v4897_v46  ;;  %1534 = vmatpush1.bf16.msra.mxu1 %v4900_v47 }
 0x60f   :  { %1494 = vmatprep.subr.bf16.mxu0 %v4903_v48  ;;  %1535 = vmatprep.subr.bf16.mxu1 %v4906_v49 }
 0x612   :  { %1495 = vmatpush1.bf16.msra.mxu0 %v4959_v60  ;;  %1536 = vmatpush1.bf16.msra.mxu1 %v4962_v61 }
 0x613   :  { %1496 = vmatprep.subr.bf16.mxu0 %v4965_v50  ;;  %1537 = vmatprep.subr.bf16.mxu1 %v4968_v63 }
 0x616   :  { %1497 = vmatpush1.bf16.msra.mxu0 %v4971_v51  ;;  %1538 = vmatpush1.bf16.msra.mxu1 %v4974_v1 }
 0x617   :  { %1498 = vmatprep.subr.bf16.mxu0 %v4977_v52  ;;  %1539 = vmatprep.subr.bf16.mxu1 %v4980_v2 }
 0x61a   :  { %1499 = vmatpush1.bf16.msra.mxu0 %v4983_v54  ;;  %1540 = vmatpush1.bf16.msra.mxu1 %v4986_v3 }
 0x61b   :  { %1605 = vmatprep.subr.bf16.mxu0 %v4825_v36  ;;  %1646 = vmatprep.subr.bf16.mxu1 %v4828_v37 }
 0x6d0   :  { %v1397_v55 = vpop.f32.mrb[36].mxu0  ;;  %v1438_v4 = vpop.f32.mrb[36].mxu1 }
 0x6d1   :  { %v1445_v5 = vadd.f32 %v1397_v55, %v5796_v56  ;;  %v1447_v27 = vadd.f32 %v1438_v4, %v5797_v57  ;;  %v1399_v31 = vpop.f32.mrb[37].mxu0  ;;  %v1440_v35 = vpop.f32.mrb[37].mxu1 }
 0x6d2   :  { %v1446_v7 = vadd.f32 %v1399_v31, %v5798_v24  ;;  %v1448_v25 = vadd.f32 %v1440_v35, %v5799_v26  ;;  %v1401_v28 = vpop.f32.mrb[38].mxu0  ;;  %v1442_v29 = vpop.f32.mrb[38].mxu1 }
 0x6d3   :  { %v1449_v11 = vmul.f32 1.442695, %v1445_v5  ;;  %v1402_v44 = vpop.f32.mrb[39].mxu0  ;;  %v1443_v13 = vpop.f32.mrb[39].mxu1  ;;  %3796 = vtanh.f32 %v1447_v27 }
 0x6d4   :  { %v3425_v36 = vmul.f32 -1.442695, %v1446_v7  ;;  %v3426_v16 = vmul.f32 -1.442695, %v1448_v25 }
 0x6d5   :  { %3798 = vpow2.f32 %v1449_v11 }
 0x6d6   :  { %3800 = vpow2.f32 %v3425_v36 }
 0x6dd   :  { %v3797_v37 = vpop.eup %3796 }
 0x6df   :  { %v3799_v62 = vpop.eup %3798 }
 0x6e0   :  { %v3801_v53 = vpop.eup %3800  ;;  %v1467_v15 = vmul.f32 %v3799_v62, %v3797_v37 }
 0x6e1   :  { %v1454_v17 = vadd.f32 1.0, %v3801_v53 }
 0x6e3   :  { %3802 = vrcp.f32 %v1454_v17  ;;  %v3630_v17 = vld [vmem:[#allocation11] ss:$16 sps:$4 sm:$0xff]  }
 0x6e4   :  { %3804 = vpow2.f32 %v3426_v16  ;;  %v3633_v16 = vld [vmem:[#allocation11 + $0x8] ss:$16 sps:$4 sm:$0xff]  }
 0x6ed   :  { %v3803_v58 = vpop.eup %3802 }
 0x6ee   :  { %v1464_v59 = vmul.f32 %v3803_v58, %v4927_v32  ;;  %v1466_v34 = vmul.f32 %v3803_v58, %v4929_v22  ;;  %v3805_v56 = vpop.eup %3804 }
 0x6ef   :  { %v1461_v57 = vadd.f32 1.0, %v3805_v56  ;;  %v3644_v56 = vld [vmem:[#allocation11 + $0x44] ss:$16 sps:$4 sm:$0xff]  }
 0x6f0   :  { %v4997_v55 = vadd.f32 %v3799_v62, %v1464_v59  ;;  %v4999_v4 = vadd.f32 %v1467_v15, %v1466_v34  ;;  %v3638_v59 = vld [vmem:[#allocation11 + $0x24] ss:$16 sps:$4 sm:$0xff]   ;;  %v3641_v34 = vld [vmem:[#allocation11 + $0x2c] ss:$16 sps:$4 sm:$0xff]  }
 0x6f2   :  { %v1469_v5 = vadd.f32 1e-08, %v4997_v55 }
 0x6f4   :  { %3806 = vrcp.f32 %v1469_v5 }
 0x6f5   :  { %3808 = vrcp.f32 %v1461_v57  ;;  %v3642_v57 = vld [vmem:[#allocation11 + $0x40] ss:$16 sps:$4 sm:$0xff]  }
 0x6fe   :  { %v3807_v27 = vpop.eup %3806 }
 0x6ff   :  { %v1471_v31 = vmul.f32 %v3807_v27, %v1469_v5  ;;  %v3809_v24 = vpop.eup %3808  ;;  %v3647_v5 = vld [vmem:[#allocation11 + $0x4c] ss:$16 sps:$4 sm:$0xff]  }
 0x700   :  { %v1474_v26 = vmul.f32 %v3809_v24, %v4999_v4  ;;  %v3648_v24 = vld [vmem:[#allocation11 + $0x60] ss:$16 sps:$4 sm:$0xff]  }
 0x701   :  { %v1472_v35 = vsub.f32 2.0, %v1471_v31  ;;  %v3650_v31 = vld [vmem:[#allocation11 + $0x64] ss:$16 sps:$4 sm:$0xff]  }
 0x703   :  { %v1473_v7 = vmul.f32 %v3807_v27, %v1472_v35  ;;  %v3645_v27 = vld [vmem:[#allocation11 + $0x48] ss:$16 sps:$4 sm:$0xff]   ;;  %v3653_v35 = vld [vmem:[#allocation11 + $0x6c] ss:$16 sps:$4 sm:$0xff]  }
 0x705   :  { %v5003_v32 = vmul.f32 %v1474_v26, %v1473_v7  ;;  %v3651_v7 = vld [vmem:[#allocation11 + $0x68] ss:$16 sps:$4 sm:$0xff]   ;;  %v3656_v26 = vld [vmem:[#allocation11 + $0x84] ss:$16 sps:$4 sm:$0xff]  }
 0x707   :  { %v1483_v22 = vpack.c.bf16 %v5003_v32, %v5003_v32 }
 0x709   :  { %1517 = vmatmul.mubr.bf16.vlgmr.msra.gmra.mrb[40].mxu0 %v1483_v22  ;;  %1558 = vmatmul.mubr.bf16.vlgmr.msra.gmra.mrb[40].mxu1 %v1483_v22  ;;  %v3659_v22 = vld [vmem:[#allocation11 + $0x8c] ss:$16 sps:$4 sm:$0xff]  }
 0x70a   :  { %1606 = vmatpush1.bf16.msra.mxu0 %v4847_v18  ;;  %1647 = vmatpush1.bf16.msra.mxu1 %v4850_v19  ;;  %v3632_v18 = vld [vmem:[#allocation11 + $0x4] ss:$16 sps:$4 sm:$0xff]   ;;  %v3635_v19 = vld [vmem:[#allocation11 + $0xc] ss:$16 sps:$4 sm:$0xff]  }
 0x70b   :  { %1607 = vmatprep.subr.bf16.mxu0 %v4853_v6  ;;  %1648 = vmatprep.subr.bf16.mxu1 %v4856_v8 }
 0x70c   :  { %1637 = vmatprep.mubr.bf16.mxu0 %v5786_v30  ;;  %1678 = vmatprep.mubr.bf16.mxu1 %v5786_v30 }
 0x70e   :  { %1608 = vmatpush1.bf16.msra.mxu0 %v4861_v9  ;;  %1649 = vmatpush1.bf16.msra.mxu1 %v4864_v20  ;;  %v5800_v9 = vld [vmem:[#allocation42_spill] sm:$0xff] }
 0x70f   :  { %1609 = vmatprep.subr.bf16.mxu0 %v4867_v23  ;;  %1650 = vmatprep.subr.bf16.mxu1 %v4870_v12  ;;  %v5801_v23 = vld [vmem:[#allocation43_spill] sm:$0xff] }
 0x712   :  { %1610 = vmatpush1.bf16.msra.mxu0 %v4873_v0  ;;  %1651 = vmatpush1.bf16.msra.mxu1 %v4876_v38 }
 0x713   :  { %1611 = vmatprep.subr.bf16.mxu0 %v4879_v39  ;;  %1652 = vmatprep.subr.bf16.mxu1 %v4882_v40  ;;  %v5802_v39 = vld [vmem:[#allocation44_spill] sm:$0xff] }
 0x716   :  { %1612 = vmatpush1.bf16.msra.mxu0 %v4885_v41  ;;  %1653 = vmatpush1.bf16.msra.mxu1 %v4888_v42  ;;  %v5803_v41 = vld [vmem:[#allocation45_spill] sm:$0xff] }
 0x717   :  { %1613 = vmatprep.subr.bf16.mxu0 %v4891_v43  ;;  %1654 = vmatprep.subr.bf16.mxu1 %v4894_v45 }
 0x71a   :  { %1614 = vmatpush1.bf16.msra.mxu0 %v4897_v46  ;;  %1655 = vmatpush1.bf16.msra.mxu1 %v4900_v47 }
 0x71b   :  { %1615 = vmatprep.subr.bf16.mxu0 %v4903_v48  ;;  %1656 = vmatprep.subr.bf16.mxu1 %v4906_v49 }
 0x71e   :  { %1616 = vmatpush1.bf16.msra.mxu0 %v4959_v60  ;;  %1657 = vmatpush1.bf16.msra.mxu1 %v4962_v61 }
 0x71f   :  { %1617 = vmatprep.subr.bf16.mxu0 %v4965_v50  ;;  %1658 = vmatprep.subr.bf16.mxu1 %v4968_v63 }
 0x722   :  { %1618 = vmatpush1.bf16.msra.mxu0 %v4971_v51  ;;  %1659 = vmatpush1.bf16.msra.mxu1 %v4974_v1 }
 0x723   :  { %1619 = vmatprep.subr.bf16.mxu0 %v4977_v52  ;;  %1660 = vmatprep.subr.bf16.mxu1 %v4980_v2 }
 0x726   :  { %1620 = vmatpush1.bf16.msra.mxu0 %v4983_v54  ;;  %1661 = vmatpush1.bf16.msra.mxu1 %v4986_v3 }
 0x727   :  { %1981 = vmatprep.subr.bf16.mxu0 %v3632_v18  ;;  %2054 = vmatprep.subr.bf16.mxu1 %v3635_v19  ;;  %v3654_v18 = vld [vmem:[#allocation11 + $0x80] ss:$16 sps:$4 sm:$0xff]   ;;  %v3657_v19 = vld [vmem:[#allocation11 + $0x88] ss:$16 sps:$4 sm:$0xff]  }
 0x7dc   :  { %v1518_v6 = vpop.f32.mrb[40].mxu0  ;;  %v1559_v8 = vpop.f32.mrb[40].mxu1 }
 0x7dd   :  { %v1566_v20 = vadd.f32 %v1518_v6, %v5800_v9  ;;  %v1568_v12 = vadd.f32 %v1559_v8, %v5801_v23  ;;  %v1520_v0 = vpop.f32.mrb[41].mxu0  ;;  %v1561_v38 = vpop.f32.mrb[41].mxu1  ;;  %v3662_v6 = vld [vmem:[#allocation11 + $0xa4] ss:$16 sps:$4 sm:$0xff]   ;;  %v3665_v8 = vld [vmem:[#allocation11 + $0xac] ss:$16 sps:$4 sm:$0xff]  }
 0x7de   :  { %v1567_v40 = vadd.f32 %v1520_v0, %v5802_v39  ;;  %v1569_v42 = vadd.f32 %v1561_v38, %v5803_v41  ;;  %v1522_v43 = vpop.f32.mrb[42].mxu0  ;;  %v1563_v45 = vpop.f32.mrb[42].mxu1  ;;  %v3660_v9 = vld [vmem:[#allocation11 + $0xa0] ss:$16 sps:$4 sm:$0xff]   ;;  %v3668_v23 = vld [vmem:[#allocation11 + $0xc4] ss:$16 sps:$4 sm:$0xff]  }
 0x7df   :  { %v1570_v46 = vmul.f32 1.442695, %v1566_v20  ;;  %v1523_v47 = vpop.f32.mrb[43].mxu0  ;;  %v1564_v48 = vpop.f32.mrb[43].mxu1  ;;  %3810 = vtanh.f32 %v1568_v12  ;;  %v3663_v20 = vld [vmem:[#allocation11 + $0xa8] ss:$16 sps:$4 sm:$0xff]  }
 0x7e0   :  { %v3427_v49 = vmul.f32 -1.442695, %v1567_v40  ;;  %v3428_v1 = vmul.f32 -1.442695, %v1569_v42  ;;  %v3671_v12 = vld [vmem:[#allocation11 + $0xcc] ss:$16 sps:$4 sm:$0xff]   ;;  %v1798_v47 = vpack.c.bf16 %v5003_v32, %v4933_v33 }
 0x7e1   :  { %3812 = vpow2.f32 %v1570_v46  ;;  %v3666_v0 = vld [vmem:[#allocation11 + $0xc0] ss:$16 sps:$4 sm:$0xff]   ;;  %v3669_v38 = vld [vmem:[#allocation11 + $0xc8] ss:$16 sps:$4 sm:$0xff]   ;;  %v3674_v39 = vld [vmem:[#allocation11 + $0xe4] ss:$16 sps:$4 sm:$0xff]   ;;  %v1797_v46 = vpack.c.bf16 %v4843_v14, %v4789_v10 }
 0x7e2   :  { %3814 = vpow2.f32 %v3427_v49  ;;  %v3677_v40 = vld [vmem:[#allocation11 + $0xec] ss:$16 sps:$4 sm:$0xff]   ;;  %v3672_v41 = vld [vmem:[#allocation11 + $0xe0] ss:$16 sps:$4 sm:$0xff]   ;;  %v3675_v42 = vld [vmem:[#allocation11 + $0xe8] ss:$16 sps:$4 sm:$0xff]  }
 0x7e3   :  { %v1788_v43 = vld [vmem:[#allocation15] sm:$0xff]  ;;  %v5070_v48 = vld [vmem:[#allocation12 + $0xc] ss:$16 sps:$4 sm:$0xff]   ;;  %v5072_v10 = vld [vmem:[#allocation12] ss:$16 sps:$4 sm:$0xff]  }
 0x7e4   :  { %v1796_v45 = vpack.c.bf16 %v4739_v21, %v1788_v43  ;;  %v5068_v21 = vld [vmem:[#allocation12 + $0x4] ss:$16 sps:$4 sm:$0xff]   ;;  %v5074_v14 = vld [vmem:[#allocation12 + $0x8] ss:$16 sps:$4 sm:$0xff]   ;;  %v5082_v32 = vld [vmem:[#allocation12 + $0x2c] ss:$16 sps:$4 sm:$0xff]  }
 0x7e5   :  { %v5080_v33 = vld [vmem:[#allocation12 + $0x24] ss:$16 sps:$4 sm:$0xff]   ;;  %v5084_v49 = vld [vmem:[#allocation12 + $0x20] ss:$16 sps:$4 sm:$0xff]  }
 0x7e9   :  { %v3811_v60 = vpop.eup %3810 }
 0x7eb   :  { %v3813_v61 = vpop.eup %3812 }
 0x7ec   :  { %v3815_v50 = vpop.eup %3814  ;;  %v1588_v63 = vmul.f32 %v3813_v61, %v3811_v60  ;;  %v5086_v60 = vld [vmem:[#allocation12 + $0x28] ss:$16 sps:$4 sm:$0xff]  }
 0x7ed   :  { %v1575_v51 = vadd.f32 1.0, %v3815_v50  ;;  %v5094_v50 = vld [vmem:[#allocation12 + $0x4c] ss:$16 sps:$4 sm:$0xff]  }
 0x7ef   :  { %3816 = vrcp.f32 %v1575_v51  ;;  %v5098_v51 = vld [vmem:[#allocation12 + $0x48] ss:$16 sps:$4 sm:$0xff]  }
 0x7f0   :  { %3818 = vpow2.f32 %v3428_v1  ;;  %v5104_v1 = vld [vmem:[#allocation12 + $0x64] ss:$16 sps:$4 sm:$0xff]  }
 0x7f9   :  { %v3817_v52 = vpop.eup %3816 }
 0x7fa   :  { %v1585_v2 = vmul.f32 %v3817_v52, %v4997_v55  ;;  %v1587_v54 = vmul.f32 %v3817_v52, %v4999_v4  ;;  %v3819_v28 = vpop.eup %3818  ;;  %v3636_v55 = vld [vmem:[#allocation11 + $0x20] ss:$16 sps:$4 sm:$0xff]   ;;  %v3639_v4 = vld [vmem:[#allocation11 + $0x28] ss:$16 sps:$4 sm:$0xff]   ;;  %v5106_v52 = vld [vmem:[#allocation12 + $0x6c] ss:$16 sps:$4 sm:$0xff]  }
 0x7fb   :  { %v1582_v11 = vadd.f32 1.0, %v3819_v28  ;;  %v5116_v28 = vld [vmem:[#allocation12 + $0x84] ss:$16 sps:$4 sm:$0xff]  }
 0x7fc   :  { %v5045_v3 = vadd.f32 %v3813_v61, %v1585_v2  ;;  %v5047_v25 = vadd.f32 %v1588_v63, %v1587_v54  ;;  %v5092_v61 = vld [vmem:[#allocation12 + $0x44] ss:$16 sps:$4 sm:$0xff]   ;;  %v5096_v63 = vld [vmem:[#allocation12 + $0x40] ss:$16 sps:$4 sm:$0xff]   ;;  %v5110_v54 = vld [vmem:[#allocation12 + $0x68] ss:$16 sps:$4 sm:$0xff]  }
 0x7fd   :  { %v5108_v2 = vld [vmem:[#allocation12 + $0x60] ss:$16 sps:$4 sm:$0xff]  }
 0x7fe   :  { %v1590_v29 = vadd.f32 1e-08, %v5045_v3 }
 0x800   :  { %3820 = vrcp.f32 %v1590_v29 }
 0x801   :  { %3822 = vrcp.f32 %v1582_v11  ;;  %v5120_v11 = vld [vmem:[#allocation12 + $0x80] ss:$16 sps:$4 sm:$0xff]  }
 0x80a   :  { %v3821_v44 = vpop.eup %3820 }
 0x80b   :  { %v1592_v13 = vmul.f32 %v3821_v44, %v1590_v29  ;;  %v3823_v37 = vpop.eup %3822  ;;  %v5118_v29 = vld [vmem:[#allocation12 + $0x8c] ss:$16 sps:$4 sm:$0xff]  }
 0x80c   :  { %v1595_v53 = vmul.f32 %v3823_v37, %v5047_v25  ;;  %v5132_v37 = vld [vmem:[#allocation12 + $0xa0] ss:$16 sps:$4 sm:$0xff]  }
 0x80d   :  { %v1593_v36 = vsub.f32 2.0, %v1592_v13  ;;  %v5128_v13 = vld [vmem:[#allocation12 + $0xa4] ss:$16 sps:$4 sm:$0xff]  }
 0x80f   :  { %v1594_v62 = vmul.f32 %v3821_v44, %v1593_v36  ;;  %v5122_v44 = vld [vmem:[#allocation12 + $0x88] ss:$16 sps:$4 sm:$0xff]   ;;  %v5130_v36 = vld [vmem:[#allocation12 + $0xac] ss:$16 sps:$4 sm:$0xff]  }
 0x811   :  { %v5051_v15 = vmul.f32 %v1595_v53, %v1594_v62  ;;  %v5134_v62 = vld [vmem:[#allocation12 + $0xa8] ss:$16 sps:$4 sm:$0xff]   ;;  %v5140_v53 = vld [vmem:[#allocation12 + $0xc4] ss:$16 sps:$4 sm:$0xff]  }
 0x813   :  { %v1604_v58 = vpack.c.bf16 %v5051_v15, %v5051_v15 }
 0x815   :  { %1638 = vmatmul.mubr.bf16.vlgmr.msra.gmra.mrb[44].mxu0 %v1604_v58  ;;  %1679 = vmatmul.mubr.bf16.vlgmr.msra.gmra.mrb[44].mxu1 %v1604_v58  ;;  %v5146_v58 = vld [vmem:[#allocation12 + $0xc8] ss:$16 sps:$4 sm:$0xff]  }
 0x816   :  { %1982 = vmatpush1.bf16.msra.mxu0 %v3630_v17  ;;  %2055 = vmatpush1.bf16.msra.mxu1 %v3633_v16  ;;  %v5142_v17 = vld [vmem:[#allocation12 + $0xcc] ss:$16 sps:$4 sm:$0xff]   ;;  %v5144_v16 = vld [vmem:[#allocation12 + $0xc0] ss:$16 sps:$4 sm:$0xff]  }
 0x817   :  { %1983 = vmatprep.subr.bf16.mxu0 %v3638_v59  ;;  %2056 = vmatprep.subr.bf16.mxu1 %v3641_v34  ;;  %v5148_v59 = vld [vmem:[#allocation12 + $0xe4] ss:$16 sps:$4 sm:$0xff]   ;;  %v5152_v34 = vld [vmem:[#allocation12 + $0xec] ss:$16 sps:$4 sm:$0xff]  }
 0x818   :  { %2013 = vmatprep.mubr.bf16.mxu0 %v5786_v30  ;;  %2086 = vmatprep.mubr.bf16.mxu1 %v5786_v30 }
 0x81a   :  { %1984 = vmatpush1.bf16.msra.mxu0 %v3636_v55  ;;  %2057 = vmatpush1.bf16.msra.mxu1 %v3639_v4  ;;  %v5156_v55 = vld [vmem:[#allocation12 + $0xe0] ss:$16 sps:$4 sm:$0xff]   ;;  %v5158_v4 = vld [vmem:[#allocation12 + $0xe8] ss:$16 sps:$4 sm:$0xff]  }
 0x81b   :  { %1985 = vmatprep.subr.bf16.mxu0 %v3644_v56  ;;  %2058 = vmatprep.subr.bf16.mxu1 %v3647_v5 }
 0x81e   :  { %1986 = vmatpush1.bf16.msra.mxu0 %v3642_v57  ;;  %2059 = vmatpush1.bf16.msra.mxu1 %v3645_v27  ;;  %v5804_v57 = vld [vmem:[#allocation46_spill] sm:$0xff] }
 0x81f   :  { %1987 = vmatprep.subr.bf16.mxu0 %v3650_v31  ;;  %2060 = vmatprep.subr.bf16.mxu1 %v3653_v35  ;;  %v5805_v31 = vld [vmem:[#allocation47_spill] sm:$0xff] }
 0x822   :  { %1988 = vmatpush1.bf16.msra.mxu0 %v3648_v24  ;;  %2061 = vmatpush1.bf16.msra.mxu1 %v3651_v7 }
 0x823   :  { %1989 = vmatprep.subr.bf16.mxu0 %v3656_v26  ;;  %2062 = vmatprep.subr.bf16.mxu1 %v3659_v22  ;;  %v5806_v26 = vld [vmem:[#allocation48_spill] sm:$0xff] }
 0x826   :  { %1990 = vmatpush1.bf16.msra.mxu0 %v3654_v18  ;;  %2063 = vmatpush1.bf16.msra.mxu1 %v3657_v19  ;;  %v5807_v18 = vld [vmem:[#allocation49_spill] sm:$0xff] }
 0x827   :  { %1991 = vmatprep.subr.bf16.mxu0 %v3662_v6  ;;  %2064 = vmatprep.subr.bf16.mxu1 %v3665_v8 }
 0x82a   :  { %1992 = vmatpush1.bf16.msra.mxu0 %v3660_v9  ;;  %2065 = vmatpush1.bf16.msra.mxu1 %v3663_v20 }
 0x82b   :  { %1993 = vmatprep.subr.bf16.mxu0 %v3668_v23  ;;  %2066 = vmatprep.subr.bf16.mxu1 %v3671_v12 }
 0x82e   :  { %1994 = vmatpush1.bf16.msra.mxu0 %v3666_v0  ;;  %2067 = vmatpush1.bf16.msra.mxu1 %v3669_v38 }
 0x82f   :  { %1995 = vmatprep.subr.bf16.mxu0 %v3674_v39  ;;  %2068 = vmatprep.subr.bf16.mxu1 %v3677_v40 }
 0x832   :  { %1996 = vmatpush1.bf16.msra.mxu0 %v3672_v41  ;;  %2069 = vmatpush1.bf16.msra.mxu1 %v3675_v42 }
 0x833   :  { %2330 = vmatprep.subr.bf16.mxu0 %v5068_v21  ;;  %2371 = vmatprep.subr.bf16.mxu1 %v5070_v48 }
 0x835   :  { %2014 = vmatmul.mubr.bf16.vlgmr.msra.gmra.mrb[48].mxu0 %v1796_v45  ;;  %2087 = vmatmul.mubr.bf16.vlgmr.msra.gmra.mrb[48].mxu1 %v1796_v45 }
 0x836   :  { %2023 = vmatprep.mubr.bf16.mxu0 %v5786_v30  ;;  %2096 = vmatprep.mubr.bf16.mxu1 %v5786_v30 }
 0x837   :  { %2331 = vmatpush1.bf16.msra.mxu0 %v5072_v10  ;;  %2372 = vmatpush1.bf16.msra.mxu1 %v5074_v14 }
 0x838   :  { %2332 = vmatprep.subr.bf16.mxu0 %v5080_v33  ;;  %2373 = vmatprep.subr.bf16.mxu1 %v5082_v32 }
 0x83b   :  { %2333 = vmatpush1.bf16.msra.mxu0 %v5084_v49  ;;  %2374 = vmatpush1.bf16.msra.mxu1 %v5086_v60 }
 0x83c   :  { %2334 = vmatprep.subr.bf16.mxu0 %v5092_v61  ;;  %2375 = vmatprep.subr.bf16.mxu1 %v5094_v50 }
 0x83d   :  { %2024 = vmatmul.mubr.bf16.gmra.mrb[52].mxu0 %v1797_v46  ;;  %2097 = vmatmul.mubr.bf16.gmra.mrb[52].mxu1 %v1797_v46 }
 0x83e   :  { %2033 = vmatprep.mubr.bf16.mxu0 %v5786_v30  ;;  %2106 = vmatprep.mubr.bf16.mxu1 %v5786_v30 }
 0x83f   :  { %2335 = vmatpush1.bf16.msra.mxu0 %v5096_v63  ;;  %2376 = vmatpush1.bf16.msra.mxu1 %v5098_v51 }
 0x840   :  { %2336 = vmatprep.subr.bf16.mxu0 %v5104_v1  ;;  %2377 = vmatprep.subr.bf16.mxu1 %v5106_v52 }
 0x843   :  { %2337 = vmatpush1.bf16.msra.mxu0 %v5108_v2  ;;  %2378 = vmatpush1.bf16.msra.mxu1 %v5110_v54 }
 0x844   :  { %2338 = vmatprep.subr.bf16.mxu0 %v5116_v28  ;;  %2379 = vmatprep.subr.bf16.mxu1 %v5118_v29 }
 0x845   :  { %2034 = vmatmul.mubr.bf16.gmra.mrb[56].mxu0 %v1798_v47  ;;  %2107 = vmatmul.mubr.bf16.gmra.mrb[56].mxu1 %v1798_v47 }
 0x846   :  { %2043 = vmatprep.mubr.bf16.mxu0 %v5786_v30  ;;  %2116 = vmatprep.mubr.bf16.mxu1 %v5786_v30 }
 0x847   :  { %2339 = vmatpush1.bf16.msra.mxu0 %v5120_v11  ;;  %2380 = vmatpush1.bf16.msra.mxu1 %v5122_v44 }
 0x848   :  { %2340 = vmatprep.subr.bf16.mxu0 %v5128_v13  ;;  %2381 = vmatprep.subr.bf16.mxu1 %v5130_v36 }
 0x84b   :  { %2341 = vmatpush1.bf16.msra.mxu0 %v5132_v37  ;;  %2382 = vmatpush1.bf16.msra.mxu1 %v5134_v62 }
 0x84c   :  { %2342 = vmatprep.subr.bf16.mxu0 %v5140_v53  ;;  %2383 = vmatprep.subr.bf16.mxu1 %v5142_v17 }
 0x84f   :  { %2343 = vmatpush1.bf16.msra.mxu0 %v5144_v16  ;;  %2384 = vmatpush1.bf16.msra.mxu1 %v5146_v58 }
 0x850   :  { %2344 = vmatprep.subr.bf16.mxu0 %v5148_v59  ;;  %2385 = vmatprep.subr.bf16.mxu1 %v5152_v34 }
 0x853   :  { %2345 = vmatpush1.bf16.msra.mxu0 %v5156_v55  ;;  %2386 = vmatpush1.bf16.msra.mxu1 %v5158_v4 }
 0x854   :  { %2449 = vmatprep.subr.bf16.mxu0 %v5068_v21  ;;  %2490 = vmatprep.subr.bf16.mxu1 %v5070_v48 }
 0x8e8   :  { %v1639_v56 = vpop.f32.mrb[44].mxu0  ;;  %v1680_v5 = vpop.f32.mrb[44].mxu1 }
 0x8e9   :  { %v1687_v27 = vadd.f32 %v1639_v56, %v5804_v57  ;;  %v1689_v35 = vadd.f32 %v1680_v5, %v5805_v31  ;;  %v1641_v24 = vpop.f32.mrb[45].mxu0  ;;  %v1682_v7 = vpop.f32.mrb[45].mxu1 }
 0x8ea   :  { %v1688_v22 = vadd.f32 %v1641_v24, %v5806_v26  ;;  %v1690_v19 = vadd.f32 %v1682_v7, %v5807_v18  ;;  %v1643_v6 = vpop.f32.mrb[46].mxu0  ;;  %v1684_v8 = vpop.f32.mrb[46].mxu1 }
 0x8eb   :  { %v1691_v9 = vmul.f32 1.442695, %v1687_v27  ;;  %v1644_v20 = vpop.f32.mrb[47].mxu0  ;;  %v1685_v23 = vpop.f32.mrb[47].mxu1  ;;  %3824 = vtanh.f32 %v1689_v35 }
 0x8ec   :  { %v3429_v12 = vmul.f32 -1.442695, %v1688_v22  ;;  %v3430_v0 = vmul.f32 -1.442695, %v1690_v19 }
 0x8ed   :  { %3826 = vpow2.f32 %v1691_v9 }
 0x8ee   :  { %3828 = vpow2.f32 %v3429_v12 }
 0x8ef   :  { %3830 = vpow2.f32 %v3430_v0 }
 0x8f5   :  { %v3825_v38 = vpop.eup %3824 }
 0x8f7   :  { %v3827_v39 = vpop.eup %3826 }
 0x8f8   :  { %v3829_v40 = vpop.eup %3828  ;;  %v1709_v41 = vmul.f32 %v3827_v39, %v3825_v38 }
 0x8f9   :  { %v3831_v42 = vpop.eup %3830  ;;  %v1696_v43 = vadd.f32 1.0, %v3829_v40 }
 0x8fa   :  { %v1703_v45 = vadd.f32 1.0, %v3831_v42 }
 0x8fb   :  { %3832 = vrcp.f32 %v1696_v43 }
 0x8fc   :  { %3834 = vrcp.f32 %v1703_v45 }
 0x905   :  { %v3833_v46 = vpop.eup %3832 }
 0x906   :  { %v1706_v47 = vmul.f32 %v3833_v46, %v5045_v3  ;;  %v1708_v56 = vmul.f32 %v3833_v46, %v5047_v25  ;;  %v3835_v35 = vpop.eup %3834 }
 0x908   :  { %v1707_v5 = vadd.f32 %v3827_v39, %v1706_v47  ;;  %v1710_v57 = vadd.f32 %v1709_v41, %v1708_v56  ;;  %v5172_v27 = vpop.f32.mrb[48].mxu0  ;;  %v5174_v31 = vpop.f32.mrb[48].mxu1 }
 0x909   :  { %v5176_v24 = vpop.f32.mrb[49].mxu0  ;;  %v5178_v7 = vpop.f32.mrb[49].mxu1 }
 0x90a   :  { %v1711_v26 = vadd.f32 1e-08, %v1707_v5  ;;  %1722 = vst [vmem:[#allocation19] sm:$0xff] %v1707_v5  ;;  %v1716_v22 = vmul.f32 %v3835_v35, %v1710_v57  ;;  %1721 = vst [vmem:[#allocation18] sm:$0xff] %v1710_v57  ;;  %v5180_v18 = vpop.f32.mrb[50].mxu0  ;;  %v5182_v3 = vpop.f32.mrb[50].mxu1 }
 0x90b   :  { %v5184_v25 = vpop.f32.mrb[51].mxu0  ;;  %v5186_v19 = vpop.f32.mrb[51].mxu1 }
 0x90c   :  { %3836 = vrcp.f32 %v1711_v26 }
 0x910   :  { %v5188_v6 = vpop.f32.mrb[52].mxu0  ;;  %v5190_v8 = vpop.f32.mrb[52].mxu1 }
 0x911   :  { %5808 = vst [vmem:[#allocation29_spill] sm:$0xff] %v5188_v6  ;;  %5809 = vst [vmem:[#allocation30_spill] sm:$0xff] %v5190_v8  ;;  %v5192_v9 = vpop.f32.mrb[53].mxu0  ;;  %v5194_v20 = vpop.f32.mrb[53].mxu1 }
 0x912   :  { %5810 = vst [vmem:[#allocation31_spill] sm:$0xff] %v5192_v9  ;;  %5811 = vst [vmem:[#allocation32_spill] sm:$0xff] %v5194_v20  ;;  %v5196_v23 = vpop.f32.mrb[54].mxu0  ;;  %v5198_v12 = vpop.f32.mrb[54].mxu1 }
 0x913   :  { %5812 = vst [vmem:[#allocation33_spill] sm:$0xff] %v5196_v23  ;;  %5813 = vst [vmem:[#allocation34_spill] sm:$0xff] %v5198_v12  ;;  %v5200_v0 = vpop.f32.mrb[55].mxu0  ;;  %v5202_v38 = vpop.f32.mrb[55].mxu1 }
 0x914   :  { %5814 = vst [vmem:[#allocation35_spill] sm:$0xff] %v5200_v0  ;;  %5815 = vst [vmem:[#allocation36_spill] sm:$0xff] %v5202_v38 }
 0x916   :  { %v3837_v39 = vpop.eup %3836 }
 0x917   :  { %v1713_v40 = vmul.f32 %v3837_v39, %v1711_v26 }
 0x918   :  { %v5204_v41 = vpop.f32.mrb[56].mxu0  ;;  %v5206_v42 = vpop.f32.mrb[56].mxu1 }
 0x919   :  { %5816 = vst [vmem:[#allocation37_spill] sm:$0xff] %v5204_v41  ;;  %5817 = vst [vmem:[#allocation38_spill] sm:$0xff] %v5206_v42  ;;  %v1714_v43 = vsub.f32 2.0, %v1713_v40  ;;  %v5208_v45 = vpop.f32.mrb[57].mxu0  ;;  %v5210_v46 = vpop.f32.mrb[57].mxu1  ;;  %v5824_v40 = vmov 0.0|0.0  }
 0x91a   :  { %5818 = vst [vmem:[#allocation39_spill] sm:$0xff] %v5208_v45  ;;  %5819 = vst [vmem:[#allocation40_spill] sm:$0xff] %v5210_v46  ;;  %v5212_v47 = vpop.f32.mrb[58].mxu0  ;;  %v5214_v56 = vpop.f32.mrb[58].mxu1 }
 0x91b   :  { %5820 = vst [vmem:[#allocation41_spill] sm:$0xff] %v5212_v47  ;;  %5821 = vst [vmem:[#allocation42_spill] sm:$0xff] %v5214_v56  ;;  %v1715_v5 = vmul.f32 %v3837_v39, %v1714_v43  ;;  %v5216_v57 = vpop.f32.mrb[59].mxu0  ;;  %v5218_v35 = vpop.f32.mrb[59].mxu1 }
 0x91c   :  { %5822 = vst [vmem:[#allocation43_spill] sm:$0xff] %v5216_v57  ;;  %5823 = vst [vmem:[#allocation44_spill] sm:$0xff] %v5218_v35 }
 0x91d   :  { %v1717_v38 = vmul.f32 %v1716_v22, %v1715_v5 }
 0x91f   :  { %1720 = vst [vmem:[#allocation16] sm:$0xff] %v1717_v38  ;;  %v1799_v26 = vpack.c.bf16 %v1717_v38, %v5051_v15  ;;  %v1787_v15 = vld [vmem:[#allocation14] sm:$0xf] }
 0x921   :  { %2044 = vmatmul.mubr.bf16.gmra.mrb[60].mxu0 %v1799_v26  ;;  %2117 = vmatmul.mubr.bf16.gmra.mrb[60].mxu1 %v1799_v26 }
 0x922   :  { %2362 = vmatprep.mubr.bf16.mxu0 %v5786_v30  ;;  %2403 = vmatprep.mubr.bf16.mxu1 %v5786_v30 }
 0x929   :  { %2363 = vmatmul.mubr.bf16.vlgmr.msra.gmra.mrb[64].mxu0 %v5824_v40  ;;  %2404 = vmatmul.mubr.bf16.vlgmr.msra.gmra.mrb[64].mxu1 %v5824_v40  ;;  %v5831_v40 = vld [vmem:[#allocation28_spill] sm:$0xff] }
 0x92a   :  { %2450 = vmatpush1.bf16.msra.mxu0 %v5072_v10  ;;  %2491 = vmatpush1.bf16.msra.mxu1 %v5074_v14  ;;  %v5832_v35 = vsub.s32 0, %v5831_v40  ;;  %v5833_v56 = vsub.s32 2, %v5831_v40 }
 0x92b   :  { %2451 = vmatprep.subr.bf16.mxu0 %v5080_v33  ;;  %2492 = vmatprep.subr.bf16.mxu1 %v5082_v32 }
 0x92c   :  { %2481 = vmatprep.mubr.bf16.mxu0 %v5786_v30  ;;  %2522 = vmatprep.mubr.bf16.mxu1 %v5786_v30  ;;  %v5273_v57 = vrot.slane %v1787_v15, %v5832_v35  ;;  %v5277_v47 = vrot.slane %v1787_v15, %v5833_v56 }
 0x92e   :  { %2452 = vmatpush1.bf16.msra.mxu0 %v5084_v49  ;;  %2493 = vmatpush1.bf16.msra.mxu1 %v5086_v60  ;;  %v2016_v35 = vadd.f32 %v5172_v27, %v5273_v57 }
 0x92f   :  { %2453 = vmatprep.subr.bf16.mxu0 %v5092_v61  ;;  %2494 = vmatprep.subr.bf16.mxu1 %v5094_v50 }
 0x932   :  { %2454 = vmatpush1.bf16.msra.mxu0 %v5096_v63  ;;  %2495 = vmatpush1.bf16.msra.mxu1 %v5098_v51 }
 0x933   :  { %2455 = vmatprep.subr.bf16.mxu0 %v5104_v1  ;;  %2496 = vmatprep.subr.bf16.mxu1 %v5106_v52 }
 0x936   :  { %2456 = vmatpush1.bf16.msra.mxu0 %v5108_v2  ;;  %2497 = vmatpush1.bf16.msra.mxu1 %v5110_v54 }
 0x937   :  { %2457 = vmatprep.subr.bf16.mxu0 %v5116_v28  ;;  %2498 = vmatprep.subr.bf16.mxu1 %v5118_v29 }
 0x93a   :  { %2458 = vmatpush1.bf16.msra.mxu0 %v5120_v11  ;;  %2499 = vmatpush1.bf16.msra.mxu1 %v5122_v44 }
 0x93b   :  { %2459 = vmatprep.subr.bf16.mxu0 %v5128_v13  ;;  %2500 = vmatprep.subr.bf16.mxu1 %v5130_v36 }
 0x93e   :  { %2460 = vmatpush1.bf16.msra.mxu0 %v5132_v37  ;;  %2501 = vmatpush1.bf16.msra.mxu1 %v5134_v62 }
 0x93f   :  { %2461 = vmatprep.subr.bf16.mxu0 %v5140_v53  ;;  %2502 = vmatprep.subr.bf16.mxu1 %v5142_v17 }
 0x942   :  { %2462 = vmatpush1.bf16.msra.mxu0 %v5144_v16  ;;  %2503 = vmatpush1.bf16.msra.mxu1 %v5146_v58 }
 0x943   :  { %2463 = vmatprep.subr.bf16.mxu0 %v5148_v59  ;;  %2504 = vmatprep.subr.bf16.mxu1 %v5152_v34 }
 0x946   :  { %2464 = vmatpush1.bf16.msra.mxu0 %v5156_v55  ;;  %2505 = vmatpush1.bf16.msra.mxu1 %v5158_v4 }
 0x947   :  { %2568 = vmatprep.subr.bf16.mxu0 %v5068_v21  ;;  %2609 = vmatprep.subr.bf16.mxu1 %v5070_v48 }
 0x9f4   :  { %v5259_v22 = vpop.f32.mrb[60].mxu0  ;;  %v5261_v38 = vpop.f32.mrb[60].mxu1 }
 0x9f5   :  { %5825 = vst [vmem:[#allocation45_spill] sm:$0xff] %v5259_v22  ;;  %5826 = vst [vmem:[#allocation46_spill] sm:$0xff] %v5261_v38  ;;  %v5263_v39 = vpop.f32.mrb[61].mxu0  ;;  %v5265_v43 = vpop.f32.mrb[61].mxu1 }
 0x9f6   :  { %5827 = vst [vmem:[#allocation47_spill] sm:$0xff] %v5263_v39  ;;  %5828 = vst [vmem:[#allocation48_spill] sm:$0xff] %v5265_v43  ;;  %v5267_v5 = vpop.f32.mrb[62].mxu0  ;;  %v5269_v26 = vpop.f32.mrb[62].mxu1  ;;  %v5836_v39 = vsub.s32 1, %v5831_v40 }
 0x9f7   :  { %5829 = vst [vmem:[#allocation49_spill] sm:$0xff] %v5267_v5  ;;  %5830 = vst [vmem:[#allocation50_spill] sm:$0xff] %v5269_v26  ;;  %v5279_v46 = vpop.f32.mrb[63].mxu0  ;;  %v5281_v22 = vpop.f32.mrb[63].mxu1  ;;  %v5837_v5 = vsub.s32 3, %v5831_v40  ;;  %v2089_v26 = vadd.f32 %v5174_v31, %v5277_v47 }
 0x9f8   :  { %5834 = vst [vmem:[#allocation28_spill] sm:$0xff] %v5279_v46  ;;  %5835 = vst [vmem:[#allocation51_spill] sm:$0xff] %v5281_v22  ;;  %v5285_v38 = vrot.slane %v1787_v15, %v5836_v39 }
 0x9f9   :  { %v5289_v43 = vrot.slane %v1787_v15, %v5837_v5 }
 0x9fa   :  { %v2018_v56 = vadd.f32 %v5176_v24, %v5285_v38 }
 0x9fb   :  { %v2091_v22 = vadd.f32 %v5178_v7, %v5289_v43 }
 0x9fc   :  { %v2364_v46 = vpop.f32.mrb[64].mxu0  ;;  %v2405_v45 = vpop.f32.mrb[64].mxu1 }
 0x9fd   :  { %v2412_v39 = vadd.f32 %v2364_v46, %v2016_v35  ;;  %v2414_v42 = vadd.f32 %v2405_v45, %v2089_v26  ;;  %v2366_v41 = vpop.f32.mrb[65].mxu0  ;;  %v2407_v40 = vpop.f32.mrb[65].mxu1 }
 0x9fe   :  { %v2413_v15 = vadd.f32 %v2366_v41, %v2018_v56  ;;  %v2415_v5 = vadd.f32 %v2407_v40, %v2091_v22  ;;  %v2368_v0 = vpop.f32.mrb[66].mxu0  ;;  %v2409_v12 = vpop.f32.mrb[66].mxu1 }
 0x9ff   :  { %v2416_v27 = vmul.f32 1.442695, %v2412_v39  ;;  %v2369_v23 = vpop.f32.mrb[67].mxu0  ;;  %v2410_v20 = vpop.f32.mrb[67].mxu1  ;;  %3838 = vtanh.f32 %v2414_v42 }
 0xa00   :  { %v3495_v31 = vmul.f32 -1.442695, %v2413_v15  ;;  %v3496_v45 = vmul.f32 -1.442695, %v2415_v5  ;;  %v2022_v5 = vadd.f32 %v5184_v25, %v5285_v38 }
 0xa01   :  { %3840 = vpow2.f32 %v2416_v27  ;;  %v2095_v27 = vadd.f32 %v5186_v19, %v5289_v43 }
 0xa02   :  { %3842 = vpow2.f32 %v3495_v31 }
 0xa09   :  { %v3839_v24 = vpop.eup %3838 }
 0xa0b   :  { %v3841_v9 = vpop.eup %3840 }
 0xa0c   :  { %v3843_v7 = vpop.eup %3842  ;;  %v2434_v8 = vmul.f32 %v3841_v9, %v3839_v24 }
 0xa0d   :  { %v2421_v6 = vadd.f32 1.0, %v3843_v7 }
 0xa0f   :  { %3844 = vrcp.f32 %v2421_v6 }
 0xa10   :  { %3846 = vpow2.f32 %v3496_v45 }
 0xa19   :  { %v3845_v46 = vpop.eup %3844 }
 0xa1a   :  { %v2431_v41 = vmul.f32 0.0, %v3845_v46  ;;  %v3847_v23 = vpop.eup %3846 }
 0xa1b   :  { %v2428_v0 = vadd.f32 1.0, %v3847_v23 }
 0xa1c   :  { %v5299_v22 = vadd.f32 %v3841_v9, %v2431_v41  ;;  %v5301_v12 = vadd.f32 %v2434_v8, %v2431_v41  ;;  %v2020_v8 = vadd.f32 %v5180_v18, %v5273_v57  ;;  %v2093_v9 = vadd.f32 %v5182_v3, %v5277_v47 }
 0xa1e   :  { %v2436_v20 = vadd.f32 1e-08, %v5299_v22 }
 0xa20   :  { %3848 = vrcp.f32 %v2436_v20 }
 0xa21   :  { %3850 = vrcp.f32 %v2428_v0 }
 0xa2a   :  { %v3849_v42 = vpop.eup %3848 }
 0xa2b   :  { %v2438_v26 = vmul.f32 %v3849_v42, %v2436_v20  ;;  %v3851_v56 = vpop.eup %3850 }
 0xa2c   :  { %v2441_v6 = vmul.f32 %v3851_v56, %v5301_v12 }
 0xa2d   :  { %v2439_v35 = vsub.f32 2.0, %v2438_v26 }
 0xa2f   :  { %v2440_v39 = vmul.f32 %v3849_v42, %v2439_v35 }
 0xa31   :  { %v2442_v40 = vmul.f32 %v2441_v6, %v2440_v39 }
 0xa33   :  { %2443 = vst [vmem:[#allocation15] sm:$0xff] %v2442_v40  ;;  %v2448_v15 = vpack.c.bf16 %v2442_v40, %v2442_v40 }
 0xa35   :  { %2482 = vmatmul.mubr.bf16.vlgmr.msra.gmra.mrb[68].mxu0 %v2448_v15  ;;  %2523 = vmatmul.mubr.bf16.vlgmr.msra.gmra.mrb[68].mxu1 %v2448_v15 }
 0xa36   :  { %2569 = vmatpush1.bf16.msra.mxu0 %v5072_v10  ;;  %2610 = vmatpush1.bf16.msra.mxu1 %v5074_v14 }
 0xa37   :  { %2570 = vmatprep.subr.bf16.mxu0 %v5080_v33  ;;  %2611 = vmatprep.subr.bf16.mxu1 %v5082_v32 }
 0xa38   :  { %2600 = vmatprep.mubr.bf16.mxu0 %v5786_v30  ;;  %2641 = vmatprep.mubr.bf16.mxu1 %v5786_v30 }
 0xa3a   :  { %2571 = vmatpush1.bf16.msra.mxu0 %v5084_v49  ;;  %2612 = vmatpush1.bf16.msra.mxu1 %v5086_v60 }
 0xa3b   :  { %2572 = vmatprep.subr.bf16.mxu0 %v5092_v61  ;;  %2613 = vmatprep.subr.bf16.mxu1 %v5094_v50 }
 0xa3e   :  { %2573 = vmatpush1.bf16.msra.mxu0 %v5096_v63  ;;  %2614 = vmatpush1.bf16.msra.mxu1 %v5098_v51 }
 0xa3f   :  { %2574 = vmatprep.subr.bf16.mxu0 %v5104_v1  ;;  %2615 = vmatprep.subr.bf16.mxu1 %v5106_v52 }
 0xa42   :  { %2575 = vmatpush1.bf16.msra.mxu0 %v5108_v2  ;;  %2616 = vmatpush1.bf16.msra.mxu1 %v5110_v54 }
 0xa43   :  { %2576 = vmatprep.subr.bf16.mxu0 %v5116_v28  ;;  %2617 = vmatprep.subr.bf16.mxu1 %v5118_v29 }
 0xa46   :  { %2577 = vmatpush1.bf16.msra.mxu0 %v5120_v11  ;;  %2618 = vmatpush1.bf16.msra.mxu1 %v5122_v44 }
 0xa47   :  { %2578 = vmatprep.subr.bf16.mxu0 %v5128_v13  ;;  %2619 = vmatprep.subr.bf16.mxu1 %v5130_v36 }
 0xa4a   :  { %2579 = vmatpush1.bf16.msra.mxu0 %v5132_v37  ;;  %2620 = vmatpush1.bf16.msra.mxu1 %v5134_v62 }
 0xa4b   :  { %2580 = vmatprep.subr.bf16.mxu0 %v5140_v53  ;;  %2621 = vmatprep.subr.bf16.mxu1 %v5142_v17 }
 0xa4e   :  { %2581 = vmatpush1.bf16.msra.mxu0 %v5144_v16  ;;  %2622 = vmatpush1.bf16.msra.mxu1 %v5146_v58 }
 0xa4f   :  { %2582 = vmatprep.subr.bf16.mxu0 %v5148_v59  ;;  %2623 = vmatprep.subr.bf16.mxu1 %v5152_v34 }
 0xa52   :  { %2583 = vmatpush1.bf16.msra.mxu0 %v5156_v55  ;;  %2624 = vmatpush1.bf16.msra.mxu1 %v5158_v4 }
 0xa53   :  { %2687 = vmatprep.subr.bf16.mxu0 %v5068_v21  ;;  %2728 = vmatprep.subr.bf16.mxu1 %v5070_v48 }
 0xb08   :  { %v2483_v31 = vpop.f32.mrb[68].mxu0  ;;  %v2524_v24 = vpop.f32.mrb[68].mxu1 }
 0xb09   :  { %v2531_v7 = vadd.f32 %v2483_v31, %v2020_v8  ;;  %v2533_v45 = vadd.f32 %v2524_v24, %v2093_v9  ;;  %v2485_v46 = vpop.f32.mrb[69].mxu0  ;;  %v2526_v41 = vpop.f32.mrb[69].mxu1 }
 0xb0a   :  { %v2532_v23 = vadd.f32 %v2485_v46, %v2022_v5  ;;  %v2534_v20 = vadd.f32 %v2526_v41, %v2095_v27  ;;  %v2487_v0 = vpop.f32.mrb[70].mxu0  ;;  %v2528_v42 = vpop.f32.mrb[70].mxu1 }
 0xb0b   :  { %v2535_v18 = vmul.f32 1.442695, %v2531_v7  ;;  %v2488_v26 = vpop.f32.mrb[71].mxu0  ;;  %v2529_v35 = vpop.f32.mrb[71].mxu1  ;;  %3852 = vtanh.f32 %v2533_v45  ;;  %v5838_v42 = vld [vmem:[#allocation29_spill] sm:$0xff] }
 0xb0c   :  { %v3497_v3 = vmul.f32 -1.442695, %v2532_v23  ;;  %v3498_v40 = vmul.f32 -1.442695, %v2534_v20  ;;  %v5839_v26 = vld [vmem:[#allocation30_spill] sm:$0xff] }
 0xb0d   :  { %3854 = vpow2.f32 %v2535_v18  ;;  %v2026_v18 = vadd.f32 %v5838_v42, %v5273_v57  ;;  %v2099_v35 = vadd.f32 %v5839_v26, %v5277_v47 }
 0xb0e   :  { %3856 = vpow2.f32 %v3497_v3  ;;  %v5840_v3 = vld [vmem:[#allocation31_spill] sm:$0xff] }
 0xb15   :  { %v3853_v25 = vpop.eup %3852 }
 0xb17   :  { %v3855_v56 = vpop.eup %3854 }
 0xb18   :  { %v3857_v19 = vpop.eup %3856  ;;  %v2553_v39 = vmul.f32 %v3855_v56, %v3853_v25  ;;  %v2028_v25 = vadd.f32 %v5840_v3, %v5285_v38 }
 0xb19   :  { %v2540_v6 = vadd.f32 1.0, %v3857_v19 }
 0xb1b   :  { %3858 = vrcp.f32 %v2540_v6 }
 0xb1c   :  { %3860 = vpow2.f32 %v3498_v40 }
 0xb25   :  { %v3859_v15 = vpop.eup %3858 }
 0xb26   :  { %v2550_v8 = vmul.f32 %v3859_v15, %v5299_v22  ;;  %v2552_v9 = vmul.f32 %v3859_v15, %v5301_v12  ;;  %v3861_v31 = vpop.eup %3860 }
 0xb27   :  { %v2547_v7 = vadd.f32 1.0, %v3861_v31 }
 0xb28   :  { %v5349_v5 = vadd.f32 %v3855_v56, %v2550_v8  ;;  %v5351_v27 = vadd.f32 %v2553_v39, %v2552_v9  ;;  %v5841_v56 = vld [vmem:[#allocation32_spill] sm:$0xff] }
 0xb29   :  { %v2101_v19 = vadd.f32 %v5841_v56, %v5289_v43 }
 0xb2a   :  { %v2555_v24 = vadd.f32 1e-08, %v5349_v5 }
 0xb2c   :  { %3862 = vrcp.f32 %v2555_v24 }
 0xb2d   :  { %3864 = vrcp.f32 %v2547_v7 }
 0xb36   :  { %v3863_v45 = vpop.eup %3862 }
 0xb37   :  { %v2557_v46 = vmul.f32 %v3863_v45, %v2555_v24  ;;  %v3865_v23 = vpop.eup %3864 }
 0xb38   :  { %v2560_v0 = vmul.f32 %v3865_v23, %v5351_v27 }
 0xb39   :  { %v2558_v41 = vsub.f32 2.0, %v2557_v46 }
 0xb3b   :  { %v2559_v20 = vmul.f32 %v3863_v45, %v2558_v41 }
 0xb3d   :  { %v2561_v22 = vmul.f32 %v2560_v0, %v2559_v20 }
 0xb3f   :  { %2562 = vst [vmem:[#allocation15 + $0x8] sm:$0xff] %v2561_v22  ;;  %v2567_v12 = vpack.c.bf16 %v2561_v22, %v2561_v22 }
 0xb41   :  { %2601 = vmatmul.mubr.bf16.vlgmr.msra.gmra.mrb[72].mxu0 %v2567_v12  ;;  %2642 = vmatmul.mubr.bf16.vlgmr.msra.gmra.mrb[72].mxu1 %v2567_v12 }
 0xb42   :  { %2688 = vmatpush1.bf16.msra.mxu0 %v5072_v10  ;;  %2729 = vmatpush1.bf16.msra.mxu1 %v5074_v14 }
 0xb43   :  { %2689 = vmatprep.subr.bf16.mxu0 %v5080_v33  ;;  %2730 = vmatprep.subr.bf16.mxu1 %v5082_v32 }
 0xb44   :  { %2719 = vmatprep.mubr.bf16.mxu0 %v5786_v30  ;;  %2760 = vmatprep.mubr.bf16.mxu1 %v5786_v30 }
 0xb46   :  { %2690 = vmatpush1.bf16.msra.mxu0 %v5084_v49  ;;  %2731 = vmatpush1.bf16.msra.mxu1 %v5086_v60 }
 0xb47   :  { %2691 = vmatprep.subr.bf16.mxu0 %v5092_v61  ;;  %2732 = vmatprep.subr.bf16.mxu1 %v5094_v50 }
 0xb4a   :  { %2692 = vmatpush1.bf16.msra.mxu0 %v5096_v63  ;;  %2733 = vmatpush1.bf16.msra.mxu1 %v5098_v51 }
 0xb4b   :  { %2693 = vmatprep.subr.bf16.mxu0 %v5104_v1  ;;  %2734 = vmatprep.subr.bf16.mxu1 %v5106_v52 }
 0xb4e   :  { %2694 = vmatpush1.bf16.msra.mxu0 %v5108_v2  ;;  %2735 = vmatpush1.bf16.msra.mxu1 %v5110_v54 }
 0xb4f   :  { %2695 = vmatprep.subr.bf16.mxu0 %v5116_v28  ;;  %2736 = vmatprep.subr.bf16.mxu1 %v5118_v29 }
 0xb52   :  { %2696 = vmatpush1.bf16.msra.mxu0 %v5120_v11  ;;  %2737 = vmatpush1.bf16.msra.mxu1 %v5122_v44 }
 0xb53   :  { %2697 = vmatprep.subr.bf16.mxu0 %v5128_v13  ;;  %2738 = vmatprep.subr.bf16.mxu1 %v5130_v36 }
 0xb56   :  { %2698 = vmatpush1.bf16.msra.mxu0 %v5132_v37  ;;  %2739 = vmatpush1.bf16.msra.mxu1 %v5134_v62 }
 0xb57   :  { %2699 = vmatprep.subr.bf16.mxu0 %v5140_v53  ;;  %2740 = vmatprep.subr.bf16.mxu1 %v5142_v17 }
 0xb5a   :  { %2700 = vmatpush1.bf16.msra.mxu0 %v5144_v16  ;;  %2741 = vmatpush1.bf16.msra.mxu1 %v5146_v58 }
 0xb5b   :  { %2701 = vmatprep.subr.bf16.mxu0 %v5148_v59  ;;  %2742 = vmatprep.subr.bf16.mxu1 %v5152_v34 }
 0xb5e   :  { %2702 = vmatpush1.bf16.msra.mxu0 %v5156_v55  ;;  %2743 = vmatpush1.bf16.msra.mxu1 %v5158_v4 }
 0xb5f   :  { %2806 = vmatprep.subr.bf16.mxu0 %v5068_v21  ;;  %2847 = vmatprep.subr.bf16.mxu1 %v5070_v48 }
 0xc14   :  { %v2602_v39 = vpop.f32.mrb[72].mxu0  ;;  %v2643_v6 = vpop.f32.mrb[72].mxu1 }
 0xc15   :  { %v2650_v40 = vadd.f32 %v2602_v39, %v2026_v18  ;;  %v2652_v15 = vadd.f32 %v2643_v6, %v2099_v35  ;;  %v2604_v8 = vpop.f32.mrb[73].mxu0  ;;  %v2645_v9 = vpop.f32.mrb[73].mxu1 }
 0xc16   :  { %v2651_v31 = vadd.f32 %v2604_v8, %v2028_v25  ;;  %v2653_v24 = vadd.f32 %v2645_v9, %v2101_v19  ;;  %v2606_v7 = vpop.f32.mrb[74].mxu0  ;;  %v2647_v45 = vpop.f32.mrb[74].mxu1 }
 0xc17   :  { %v2654_v46 = vmul.f32 1.442695, %v2650_v40  ;;  %v2607_v41 = vpop.f32.mrb[75].mxu0  ;;  %v2648_v23 = vpop.f32.mrb[75].mxu1  ;;  %3866 = vtanh.f32 %v2652_v15  ;;  %v5842_v45 = vld [vmem:[#allocation33_spill] sm:$0xff] }
 0xc18   :  { %v3499_v20 = vmul.f32 -1.442695, %v2651_v31  ;;  %v3500_v18 = vmul.f32 -1.442695, %v2653_v24  ;;  %v5843_v41 = vld [vmem:[#allocation34_spill] sm:$0xff] }
 0xc19   :  { %3868 = vpow2.f32 %v2654_v46  ;;  %v2030_v46 = vadd.f32 %v5842_v45, %v5273_v57  ;;  %v2103_v23 = vadd.f32 %v5843_v41, %v5277_v47 }
 0xc1a   :  { %3870 = vpow2.f32 %v3499_v20  ;;  %v5844_v20 = vld [vmem:[#allocation35_spill] sm:$0xff] }
 0xc21   :  { %v3867_v0 = vpop.eup %3866 }
 0xc23   :  { %v3869_v22 = vpop.eup %3868 }
 0xc24   :  { %v3871_v12 = vpop.eup %3870  ;;  %v2672_v42 = vmul.f32 %v3869_v22, %v3867_v0  ;;  %v2032_v0 = vadd.f32 %v5844_v20, %v5285_v38 }
 0xc25   :  { %v2659_v26 = vadd.f32 1.0, %v3871_v12 }
 0xc27   :  { %3872 = vrcp.f32 %v2659_v26 }
 0xc28   :  { %3874 = vpow2.f32 %v3500_v18 }
 0xc31   :  { %v3873_v35 = vpop.eup %3872 }
 0xc32   :  { %v2669_v3 = vmul.f32 %v3873_v35, %v5349_v5  ;;  %v2671_v25 = vmul.f32 %v3873_v35, %v5351_v27  ;;  %v3875_v39 = vpop.eup %3874 }
 0xc33   :  { %v2666_v40 = vadd.f32 1.0, %v3875_v39 }
 0xc34   :  { %v5399_v56 = vadd.f32 %v3869_v22, %v2669_v3  ;;  %v5401_v19 = vadd.f32 %v2672_v42, %v2671_v25  ;;  %v5845_v22 = vld [vmem:[#allocation36_spill] sm:$0xff] }
 0xc35   :  { %v2105_v12 = vadd.f32 %v5845_v22, %v5289_v43 }
 0xc36   :  { %v2674_v6 = vadd.f32 1e-08, %v5399_v56 }
 0xc38   :  { %3876 = vrcp.f32 %v2674_v6 }
 0xc39   :  { %3878 = vrcp.f32 %v2666_v40 }
 0xc42   :  { %v3877_v15 = vpop.eup %3876 }
 0xc43   :  { %v2676_v8 = vmul.f32 %v3877_v15, %v2674_v6  ;;  %v3879_v31 = vpop.eup %3878 }
 0xc44   :  { %v2679_v7 = vmul.f32 %v3879_v31, %v5401_v19 }
 0xc45   :  { %v2677_v9 = vsub.f32 2.0, %v2676_v8 }
 0xc47   :  { %v2678_v24 = vmul.f32 %v3877_v15, %v2677_v9 }
 0xc49   :  { %v2680_v5 = vmul.f32 %v2679_v7, %v2678_v24 }
 0xc4b   :  { %2681 = vst [vmem:[#allocation15 + $0x10] sm:$0xff] %v2680_v5  ;;  %v2686_v27 = vpack.c.bf16 %v2680_v5, %v2680_v5 }
 0xc4d   :  { %2720 = vmatmul.mubr.bf16.vlgmr.msra.gmra.mrb[76].mxu0 %v2686_v27  ;;  %2761 = vmatmul.mubr.bf16.vlgmr.msra.gmra.mrb[76].mxu1 %v2686_v27 }
 0xc4e   :  { %2807 = vmatpush1.bf16.msra.mxu0 %v5072_v10  ;;  %2848 = vmatpush1.bf16.msra.mxu1 %v5074_v14 }
 0xc4f   :  { %2808 = vmatprep.subr.bf16.mxu0 %v5080_v33  ;;  %2849 = vmatprep.subr.bf16.mxu1 %v5082_v32 }
 0xc50   :  { %2838 = vmatprep.mubr.bf16.mxu0 %v5786_v30  ;;  %2879 = vmatprep.mubr.bf16.mxu1 %v5786_v30 }
 0xc52   :  { %2809 = vmatpush1.bf16.msra.mxu0 %v5084_v49  ;;  %2850 = vmatpush1.bf16.msra.mxu1 %v5086_v60 }
 0xc53   :  { %2810 = vmatprep.subr.bf16.mxu0 %v5092_v61  ;;  %2851 = vmatprep.subr.bf16.mxu1 %v5094_v50 }
 0xc56   :  { %2811 = vmatpush1.bf16.msra.mxu0 %v5096_v63  ;;  %2852 = vmatpush1.bf16.msra.mxu1 %v5098_v51 }
 0xc57   :  { %2812 = vmatprep.subr.bf16.mxu0 %v5104_v1  ;;  %2853 = vmatprep.subr.bf16.mxu1 %v5106_v52 }
 0xc5a   :  { %2813 = vmatpush1.bf16.msra.mxu0 %v5108_v2  ;;  %2854 = vmatpush1.bf16.msra.mxu1 %v5110_v54 }
 0xc5b   :  { %2814 = vmatprep.subr.bf16.mxu0 %v5116_v28  ;;  %2855 = vmatprep.subr.bf16.mxu1 %v5118_v29 }
 0xc5e   :  { %2815 = vmatpush1.bf16.msra.mxu0 %v5120_v11  ;;  %2856 = vmatpush1.bf16.msra.mxu1 %v5122_v44 }
 0xc5f   :  { %2816 = vmatprep.subr.bf16.mxu0 %v5128_v13  ;;  %2857 = vmatprep.subr.bf16.mxu1 %v5130_v36 }
 0xc62   :  { %2817 = vmatpush1.bf16.msra.mxu0 %v5132_v37  ;;  %2858 = vmatpush1.bf16.msra.mxu1 %v5134_v62 }
 0xc63   :  { %2818 = vmatprep.subr.bf16.mxu0 %v5140_v53  ;;  %2859 = vmatprep.subr.bf16.mxu1 %v5142_v17 }
 0xc66   :  { %2819 = vmatpush1.bf16.msra.mxu0 %v5144_v16  ;;  %2860 = vmatpush1.bf16.msra.mxu1 %v5146_v58 }
 0xc67   :  { %2820 = vmatprep.subr.bf16.mxu0 %v5148_v59  ;;  %2861 = vmatprep.subr.bf16.mxu1 %v5152_v34 }
 0xc6a   :  { %2821 = vmatpush1.bf16.msra.mxu0 %v5156_v55  ;;  %2862 = vmatpush1.bf16.msra.mxu1 %v5158_v4 }
 0xc6b   :  { %2925 = vmatprep.subr.bf16.mxu0 %v5068_v21  ;;  %2966 = vmatprep.subr.bf16.mxu1 %v5070_v48 }
 0xd20   :  { %v2721_v42 = vpop.f32.mrb[76].mxu0  ;;  %v2762_v26 = vpop.f32.mrb[76].mxu1 }
 0xd21   :  { %v2769_v18 = vadd.f32 %v2721_v42, %v2030_v46  ;;  %v2771_v35 = vadd.f32 %v2762_v26, %v2103_v23  ;;  %v2723_v3 = vpop.f32.mrb[77].mxu0  ;;  %v2764_v21 = vpop.f32.mrb[77].mxu1 }
 0xd22   :  { %v2770_v25 = vadd.f32 %v2723_v3, %v2032_v0  ;;  %v2772_v48 = vadd.f32 %v2764_v21, %v2105_v12  ;;  %v2725_v39 = vpop.f32.mrb[78].mxu0  ;;  %v2766_v6 = vpop.f32.mrb[78].mxu1 }
 0xd23   :  { %v2773_v40 = vmul.f32 1.442695, %v2769_v18  ;;  %v2726_v15 = vpop.f32.mrb[79].mxu0  ;;  %v2767_v8 = vpop.f32.mrb[79].mxu1  ;;  %3880 = vtanh.f32 %v2771_v35 }
 0xd24   :  { %v3501_v9 = vmul.f32 -1.442695, %v2770_v25  ;;  %v3502_v45 = vmul.f32 -1.442695, %v2772_v48 }
 0xd25   :  { %3882 = vpow2.f32 %v2773_v40 }
 0xd26   :  { %3884 = vpow2.f32 %v3501_v9 }
 0xd2d   :  { %v3881_v31 = vpop.eup %3880 }
 0xd2f   :  { %v3883_v24 = vpop.eup %3882 }
 0xd30   :  { %v3885_v7 = vpop.eup %3884  ;;  %v2791_v5 = vmul.f32 %v3883_v24, %v3881_v31 }
 0xd31   :  { %v2778_v27 = vadd.f32 1.0, %v3885_v7 }
 0xd33   :  { %3886 = vrcp.f32 %v2778_v27 }
 0xd34   :  { %3888 = vpow2.f32 %v3502_v45 }
 0xd3d   :  { %v3887_v46 = vpop.eup %3886 }
 0xd3e   :  { %v2788_v41 = vmul.f32 %v3887_v46, %v5399_v56  ;;  %v2790_v23 = vmul.f32 %v3887_v46, %v5401_v19  ;;  %v3889_v22 = vpop.eup %3888 }
 0xd3f   :  { %v2785_v42 = vadd.f32 1.0, %v3889_v22  ;;  %v5515_v22 = vld [vmem:[#allocation12 + $0x24] ss:$16 sps:$4 sm:$0xff]  }
 0xd40   :  { %v5449_v20 = vadd.f32 %v3883_v24, %v2788_v41  ;;  %v5451_v0 = vadd.f32 %v2791_v5, %v2790_v23 }
 0xd42   :  { %v2793_v12 = vadd.f32 1e-08, %v5449_v20 }
 0xd44   :  { %3890 = vrcp.f32 %v2793_v12 }
 0xd45   :  { %3892 = vrcp.f32 %v2785_v42  ;;  %v5523_v42 = vld [vmem:[#allocation12 + $0x20] ss:$16 sps:$4 sm:$0xff]  }
 0xd4e   :  { %v3891_v26 = vpop.eup %3890 }
 0xd4f   :  { %v2795_v18 = vmul.f32 %v3891_v26, %v2793_v12  ;;  %v3893_v3 = vpop.eup %3892  ;;  %v5518_v12 = vld [vmem:[#allocation12 + $0x2c] ss:$16 sps:$4 sm:$0xff]  }
 0xd50   :  { %v2798_v25 = vmul.f32 %v3893_v3, %v5451_v0  ;;  %v5535_v3 = vld [vmem:[#allocation12 + $0x40] ss:$16 sps:$4 sm:$0xff]  }
 0xd51   :  { %v2796_v35 = vsub.f32 2.0, %v2795_v18  ;;  %v5529_v18 = vld [vmem:[#allocation12 + $0x44] ss:$16 sps:$4 sm:$0xff]  }
 0xd53   :  { %v2797_v21 = vmul.f32 %v3891_v26, %v2796_v35  ;;  %v5526_v26 = vld [vmem:[#allocation12 + $0x28] ss:$16 sps:$4 sm:$0xff]   ;;  %v5532_v35 = vld [vmem:[#allocation12 + $0x4c] ss:$16 sps:$4 sm:$0xff]  }
 0xd55   :  { %v2799_v56 = vmul.f32 %v2798_v25, %v2797_v21  ;;  %v5538_v21 = vld [vmem:[#allocation12 + $0x48] ss:$16 sps:$4 sm:$0xff]   ;;  %v5541_v25 = vld [vmem:[#allocation12 + $0x64] ss:$16 sps:$4 sm:$0xff]  }
 0xd57   :  { %2800 = vst [vmem:[#allocation15 + $0x18] sm:$0xff] %v2799_v56  ;;  %v2805_v19 = vpack.c.bf16 %v2799_v56, %v2799_v56  ;;  %v5544_v56 = vld [vmem:[#allocation12 + $0x6c] ss:$16 sps:$4 sm:$0xff]  }
 0xd59   :  { %2839 = vmatmul.mubr.bf16.vlgmr.msra.gmra.mrb[80].mxu0 %v2805_v19  ;;  %2880 = vmatmul.mubr.bf16.vlgmr.msra.gmra.mrb[80].mxu1 %v2805_v19  ;;  %v5547_v19 = vld [vmem:[#allocation12 + $0x60] ss:$16 sps:$4 sm:$0xff]  }
 0xd5a   :  { %2926 = vmatpush1.bf16.msra.mxu0 %v5072_v10  ;;  %2967 = vmatpush1.bf16.msra.mxu1 %v5074_v14  ;;  %v5487_v10 = vld [vmem:[#allocation12 + $0x4] ss:$16 sps:$4 sm:$0xff]   ;;  %v5490_v14 = vld [vmem:[#allocation12 + $0xc] ss:$16 sps:$4 sm:$0xff]  }
 0xd5b   :  { %2927 = vmatprep.subr.bf16.mxu0 %v5080_v33  ;;  %2968 = vmatprep.subr.bf16.mxu1 %v5082_v32  ;;  %v5846_v33 = vld [vmem:[#allocation37_spill] sm:$0xff] }
 0xd5c   :  { %2957 = vmatprep.mubr.bf16.mxu0 %v5786_v30  ;;  %2998 = vmatprep.mubr.bf16.mxu1 %v5786_v30  ;;  %v2036_v32 = vadd.f32 %v5846_v33, %v5273_v57  ;;  %v5550_v33 = vld [vmem:[#allocation12 + $0x68] ss:$16 sps:$4 sm:$0xff]  }
 0xd5e   :  { %2928 = vmatpush1.bf16.msra.mxu0 %v5084_v49  ;;  %2969 = vmatpush1.bf16.msra.mxu1 %v5086_v60  ;;  %v5847_v49 = vld [vmem:[#allocation38_spill] sm:$0xff] }
 0xd5f   :  { %2929 = vmatprep.subr.bf16.mxu0 %v5092_v61  ;;  %2970 = vmatprep.subr.bf16.mxu1 %v5094_v50  ;;  %v2109_v60 = vadd.f32 %v5847_v49, %v5277_v47  ;;  %v5848_v61 = vld [vmem:[#allocation39_spill] sm:$0xff] }
 0xd60   :  { %v2038_v50 = vadd.f32 %v5848_v61, %v5285_v38  ;;  %v5556_v49 = vld [vmem:[#allocation12 + $0x8c] ss:$16 sps:$4 sm:$0xff]   ;;  %v5562_v61 = vld [vmem:[#allocation12 + $0x88] ss:$16 sps:$4 sm:$0xff]  }
 0xd62   :  { %2930 = vmatpush1.bf16.msra.mxu0 %v5096_v63  ;;  %2971 = vmatpush1.bf16.msra.mxu1 %v5098_v51  ;;  %v5849_v63 = vld [vmem:[#allocation40_spill] sm:$0xff] }
 0xd63   :  { %2931 = vmatprep.subr.bf16.mxu0 %v5104_v1  ;;  %2972 = vmatprep.subr.bf16.mxu1 %v5106_v52  ;;  %v2111_v51 = vadd.f32 %v5849_v63, %v5289_v43  ;;  %v5568_v63 = vld [vmem:[#allocation12 + $0xac] ss:$16 sps:$4 sm:$0xff]  }
 0xd66   :  { %2932 = vmatpush1.bf16.msra.mxu0 %v5108_v2  ;;  %2973 = vmatpush1.bf16.msra.mxu1 %v5110_v54 }
 0xd67   :  { %2933 = vmatprep.subr.bf16.mxu0 %v5116_v28  ;;  %2974 = vmatprep.subr.bf16.mxu1 %v5118_v29 }
 0xd6a   :  { %2934 = vmatpush1.bf16.msra.mxu0 %v5120_v11  ;;  %2975 = vmatpush1.bf16.msra.mxu1 %v5122_v44 }
 0xd6b   :  { %2935 = vmatprep.subr.bf16.mxu0 %v5128_v13  ;;  %2976 = vmatprep.subr.bf16.mxu1 %v5130_v36 }
 0xd6e   :  { %2936 = vmatpush1.bf16.msra.mxu0 %v5132_v37  ;;  %2977 = vmatpush1.bf16.msra.mxu1 %v5134_v62 }
 0xd6f   :  { %2937 = vmatprep.subr.bf16.mxu0 %v5140_v53  ;;  %2978 = vmatprep.subr.bf16.mxu1 %v5142_v17 }
 0xd72   :  { %2938 = vmatpush1.bf16.msra.mxu0 %v5144_v16  ;;  %2979 = vmatpush1.bf16.msra.mxu1 %v5146_v58 }
 0xd73   :  { %2939 = vmatprep.subr.bf16.mxu0 %v5148_v59  ;;  %2980 = vmatprep.subr.bf16.mxu1 %v5152_v34 }
 0xd76   :  { %2940 = vmatpush1.bf16.msra.mxu0 %v5156_v55  ;;  %2981 = vmatpush1.bf16.msra.mxu1 %v5158_v4 }
 0xd77   :  { %3044 = vmatprep.subr.bf16.mxu0 %v5487_v10  ;;  %3085 = vmatprep.subr.bf16.mxu1 %v5490_v14 }
 0xe2c   :  { %v2840_v1 = vpop.f32.mrb[80].mxu0  ;;  %v2881_v52 = vpop.f32.mrb[80].mxu1 }
 0xe2d   :  { %v2888_v2 = vadd.f32 %v2840_v1, %v2036_v32  ;;  %v2890_v54 = vadd.f32 %v2881_v52, %v2109_v60  ;;  %v2842_v28 = vpop.f32.mrb[81].mxu0  ;;  %v2883_v29 = vpop.f32.mrb[81].mxu1  ;;  %v5553_v32 = vld [vmem:[#allocation12 + $0x84] ss:$16 sps:$4 sm:$0xff]   ;;  %v5559_v60 = vld [vmem:[#allocation12 + $0x80] ss:$16 sps:$4 sm:$0xff]  }
 0xe2e   :  { %v2889_v11 = vadd.f32 %v2842_v28, %v2038_v50  ;;  %v2891_v44 = vadd.f32 %v2883_v29, %v2111_v51  ;;  %v2844_v13 = vpop.f32.mrb[82].mxu0  ;;  %v2885_v36 = vpop.f32.mrb[82].mxu1  ;;  %v5565_v50 = vld [vmem:[#allocation12 + $0xa4] ss:$16 sps:$4 sm:$0xff]   ;;  %v5571_v51 = vld [vmem:[#allocation12 + $0xa0] ss:$16 sps:$4 sm:$0xff]  }
 0xe2f   :  { %v2892_v37 = vmul.f32 1.442695, %v2888_v2  ;;  %v2845_v62 = vpop.f32.mrb[83].mxu0  ;;  %v2886_v53 = vpop.f32.mrb[83].mxu1  ;;  %3894 = vtanh.f32 %v2890_v54  ;;  %v5574_v1 = vld [vmem:[#allocation12 + $0xa8] ss:$16 sps:$4 sm:$0xff]  }
 0xe30   :  { %v3503_v17 = vmul.f32 -1.442695, %v2889_v11  ;;  %v3504_v4 = vmul.f32 -1.442695, %v2891_v44  ;;  %v5577_v52 = vld [vmem:[#allocation12 + $0xc4] ss:$16 sps:$4 sm:$0xff]  }
 0xe31   :  { %3896 = vpow2.f32 %v2892_v37  ;;  %v5580_v2 = vld [vmem:[#allocation12 + $0xcc] ss:$16 sps:$4 sm:$0xff]   ;;  %v5583_v54 = vld [vmem:[#allocation12 + $0xc0] ss:$16 sps:$4 sm:$0xff]   ;;  %v5586_v28 = vld [vmem:[#allocation12 + $0xc8] ss:$16 sps:$4 sm:$0xff]  }
 0xe32   :  { %3898 = vpow2.f32 %v3503_v17  ;;  %v5589_v29 = vld [vmem:[#allocation12 + $0xe4] ss:$16 sps:$4 sm:$0xff]   ;;  %v5592_v11 = vld [vmem:[#allocation12 + $0xec] ss:$16 sps:$4 sm:$0xff]   ;;  %v5595_v44 = vld [vmem:[#allocation12 + $0xe0] ss:$16 sps:$4 sm:$0xff]  }
 0xe33   :  { %v5598_v13 = vld [vmem:[#allocation12 + $0xe8] ss:$16 sps:$4 sm:$0xff]   ;;  %v5850_v36 = vld [vmem:[#allocation41_spill] sm:$0xff]  ;;  %v5852_v17 = vld [vmem:[#allocation43_spill] sm:$0xff] }
 0xe34   :  { %v2040_v37 = vadd.f32 %v5850_v36, %v5273_v57  ;;  %v5851_v62 = vld [vmem:[#allocation42_spill] sm:$0xff] }
 0xe35   :  { %v2113_v53 = vadd.f32 %v5851_v62, %v5277_v47 }
 0xe39   :  { %v3895_v16 = vpop.eup %3894 }
 0xe3b   :  { %v3897_v58 = vpop.eup %3896 }
 0xe3c   :  { %v3899_v59 = vpop.eup %3898  ;;  %v2910_v34 = vmul.f32 %v3897_v58, %v3895_v16  ;;  %v2042_v16 = vadd.f32 %v5852_v17, %v5285_v38 }
 0xe3d   :  { %v2897_v55 = vadd.f32 1.0, %v3899_v59 }
 0xe3f   :  { %3900 = vrcp.f32 %v2897_v55 }
 0xe40   :  { %3902 = vpow2.f32 %v3504_v4 }
 0xe49   :  { %v3901_v48 = vpop.eup %3900 }
 0xe4a   :  { %v2907_v39 = vmul.f32 %v3901_v48, %v5449_v20  ;;  %v2909_v6 = vmul.f32 %v3901_v48, %v5451_v0  ;;  %v3903_v8 = vpop.eup %3902  ;;  %v5509_v20 = vld [vmem:[#allocation12] ss:$16 sps:$4 sm:$0xff]   ;;  %v5512_v0 = vld [vmem:[#allocation12 + $0x8] ss:$16 sps:$4 sm:$0xff]  }
 0xe4b   :  { %v2904_v31 = vadd.f32 1.0, %v3903_v8 }
 0xe4c   :  { %v5503_v40 = vadd.f32 %v3897_v58, %v2907_v39  ;;  %v5505_v15 = vadd.f32 %v2910_v34, %v2909_v6  ;;  %v5853_v58 = vld [vmem:[#allocation44_spill] sm:$0xff] }
 0xe4d   :  { %v2115_v59 = vadd.f32 %v5853_v58, %v5289_v43 }
 0xe4e   :  { %v2912_v9 = vadd.f32 1e-08, %v5503_v40 }
 0xe50   :  { %3904 = vrcp.f32 %v2912_v9 }
 0xe51   :  { %3906 = vrcp.f32 %v2904_v31 }
 0xe5a   :  { %v3905_v24 = vpop.eup %3904 }
 0xe5b   :  { %v2914_v7 = vmul.f32 %v3905_v24, %v2912_v9  ;;  %v3907_v27 = vpop.eup %3906 }
 0xe5c   :  { %v2917_v46 = vmul.f32 %v3907_v27, %v5505_v15 }
 0xe5d   :  { %v2915_v5 = vsub.f32 2.0, %v2914_v7 }
 0xe5f   :  { %v2916_v45 = vmul.f32 %v3905_v24, %v2915_v5 }
 0xe61   :  { %v2918_v41 = vmul.f32 %v2917_v46, %v2916_v45 }
 0xe63   :  { %2919 = vst [vmem:[#allocation15 + $0x20] sm:$0xff] %v2918_v41  ;;  %v2924_v23 = vpack.c.bf16 %v2918_v41, %v2918_v41 }
 0xe65   :  { %2958 = vmatmul.mubr.bf16.vlgmr.msra.gmra.mrb[84].mxu0 %v2924_v23  ;;  %2999 = vmatmul.mubr.bf16.vlgmr.msra.gmra.mrb[84].mxu1 %v2924_v23 }
 0xe66   :  { %3045 = vmatpush1.bf16.msra.mxu0 %v5509_v20  ;;  %3086 = vmatpush1.bf16.msra.mxu1 %v5512_v0 }
 0xe67   :  { %3046 = vmatprep.subr.bf16.mxu0 %v5515_v22  ;;  %3087 = vmatprep.subr.bf16.mxu1 %v5518_v12 }
 0xe68   :  { %3076 = vmatprep.mubr.bf16.mxu0 %v5786_v30  ;;  %3117 = vmatprep.mubr.bf16.mxu1 %v5786_v30 }
 0xe6a   :  { %3047 = vmatpush1.bf16.msra.mxu0 %v5523_v42  ;;  %3088 = vmatpush1.bf16.msra.mxu1 %v5526_v26 }
 0xe6b   :  { %3048 = vmatprep.subr.bf16.mxu0 %v5529_v18  ;;  %3089 = vmatprep.subr.bf16.mxu1 %v5532_v35 }
 0xe6e   :  { %3049 = vmatpush1.bf16.msra.mxu0 %v5535_v3  ;;  %3090 = vmatpush1.bf16.msra.mxu1 %v5538_v21 }
 0xe6f   :  { %3050 = vmatprep.subr.bf16.mxu0 %v5541_v25  ;;  %3091 = vmatprep.subr.bf16.mxu1 %v5544_v56 }
 0xe72   :  { %3051 = vmatpush1.bf16.msra.mxu0 %v5547_v19  ;;  %3092 = vmatpush1.bf16.msra.mxu1 %v5550_v33 }
 0xe73   :  { %3052 = vmatprep.subr.bf16.mxu0 %v5553_v32  ;;  %3093 = vmatprep.subr.bf16.mxu1 %v5556_v49 }
 0xe76   :  { %3053 = vmatpush1.bf16.msra.mxu0 %v5559_v60  ;;  %3094 = vmatpush1.bf16.msra.mxu1 %v5562_v61 }
 0xe77   :  { %3054 = vmatprep.subr.bf16.mxu0 %v5565_v50  ;;  %3095 = vmatprep.subr.bf16.mxu1 %v5568_v63 }
 0xe7a   :  { %3055 = vmatpush1.bf16.msra.mxu0 %v5571_v51  ;;  %3096 = vmatpush1.bf16.msra.mxu1 %v5574_v1 }
 0xe7b   :  { %3056 = vmatprep.subr.bf16.mxu0 %v5577_v52  ;;  %3097 = vmatprep.subr.bf16.mxu1 %v5580_v2 }
 0xe7e   :  { %3057 = vmatpush1.bf16.msra.mxu0 %v5583_v54  ;;  %3098 = vmatpush1.bf16.msra.mxu1 %v5586_v28 }
 0xe7f   :  { %3058 = vmatprep.subr.bf16.mxu0 %v5589_v29  ;;  %3099 = vmatprep.subr.bf16.mxu1 %v5592_v11 }
 0xe82   :  { %3059 = vmatpush1.bf16.msra.mxu0 %v5595_v44  ;;  %3100 = vmatpush1.bf16.msra.mxu1 %v5598_v13 }
 0xe83   :  { %3163 = vmatprep.subr.bf16.mxu0 %v5487_v10  ;;  %3204 = vmatprep.subr.bf16.mxu1 %v5490_v14 }
 0xf38   :  { %v2959_v34 = vpop.f32.mrb[84].mxu0  ;;  %v3000_v55 = vpop.f32.mrb[84].mxu1 }
 0xf39   :  { %v3007_v4 = vadd.f32 %v2959_v34, %v2040_v37  ;;  %v3009_v48 = vadd.f32 %v3000_v55, %v2113_v53  ;;  %v2961_v39 = vpop.f32.mrb[85].mxu0  ;;  %v3002_v10 = vpop.f32.mrb[85].mxu1 }
 0xf3a   :  { %v3008_v6 = vadd.f32 %v2961_v39, %v2042_v16  ;;  %v3010_v14 = vadd.f32 %v3002_v10, %v2115_v59  ;;  %v2963_v8 = vpop.f32.mrb[86].mxu0  ;;  %v3004_v9 = vpop.f32.mrb[86].mxu1 }
 0xf3b   :  { %v3011_v31 = vmul.f32 1.442695, %v3007_v4  ;;  %v2964_v24 = vpop.f32.mrb[87].mxu0  ;;  %v3005_v7 = vpop.f32.mrb[87].mxu1  ;;  %3908 = vtanh.f32 %v3009_v48 }
 0xf3c   :  { %v3505_v5 = vmul.f32 -1.442695, %v3008_v6  ;;  %v3506_v36 = vmul.f32 -1.442695, %v3010_v14 }
 0xf3d   :  { %3910 = vpow2.f32 %v3011_v31 }
 0xf3e   :  { %3912 = vpow2.f32 %v3505_v5 }
 0xf45   :  { %v3909_v27 = vpop.eup %3908 }
 0xf47   :  { %v3911_v45 = vpop.eup %3910 }
 0xf48   :  { %v3913_v46 = vpop.eup %3912  ;;  %v3029_v41 = vmul.f32 %v3911_v45, %v3909_v27 }
 0xf49   :  { %v3016_v23 = vadd.f32 1.0, %v3913_v46 }
 0xf4b   :  { %3914 = vrcp.f32 %v3016_v23 }
 0xf4c   :  { %3916 = vpow2.f32 %v3506_v36 }
 0xf55   :  { %v3915_v37 = vpop.eup %3914 }
 0xf56   :  { %v3026_v62 = vmul.f32 %v3915_v37, %v5503_v40  ;;  %v3028_v53 = vmul.f32 %v3915_v37, %v5505_v15  ;;  %v3917_v58 = vpop.eup %3916  ;;  %v5858_v37 = vld [vmem:[#allocation49_spill] sm:$0xff] }
 0xf57   :  { %v3023_v34 = vadd.f32 1.0, %v3917_v58 }
 0xf58   :  { %v5613_v17 = vadd.f32 %v3911_v45, %v3026_v62  ;;  %v5615_v16 = vadd.f32 %v3029_v41, %v3028_v53  ;;  %v2050_v62 = vadd.f32 %v5858_v37, %v5273_v57  ;;  %v5859_v53 = vld [vmem:[#allocation50_spill] sm:$0xff] }
 0xf5a   :  { %v3031_v59 = vadd.f32 1e-08, %v5613_v17 }
 0xf5c   :  { %3918 = vrcp.f32 %v3031_v59 }
 0xf5d   :  { %3920 = vrcp.f32 %v3023_v34 }
 0xf66   :  { %v3919_v55 = vpop.eup %3918 }
 0xf67   :  { %v3033_v4 = vmul.f32 %v3919_v55, %v3031_v59  ;;  %v3921_v39 = vpop.eup %3920  ;;  %v5861_v59 = vld [vmem:[#allocation51_spill] sm:$0xff] }
 0xf68   :  { %v3036_v6 = vmul.f32 %v3921_v39, %v5615_v16  ;;  %v2125_v34 = vadd.f32 %v5861_v59, %v5289_v43 }
 0xf69   :  { %v3034_v48 = vsub.f32 2.0, %v3033_v4 }
 0xf6b   :  { %v3035_v10 = vmul.f32 %v3919_v55, %v3034_v48 }
 0xf6d   :  { %v3037_v40 = vmul.f32 %v3036_v6, %v3035_v10 }
 0xf6f   :  { %3038 = vst [vmem:[#allocation15 + $0x28] sm:$0xff] %v3037_v40  ;;  %v3043_v15 = vpack.c.bf16 %v3037_v40, %v3037_v40 }
 0xf71   :  { %3077 = vmatmul.mubr.bf16.vlgmr.msra.gmra.mrb[88].mxu0 %v3043_v15  ;;  %3118 = vmatmul.mubr.bf16.vlgmr.msra.gmra.mrb[88].mxu1 %v3043_v15 }
 0xf72   :  { %3164 = vmatpush1.bf16.msra.mxu0 %v5509_v20  ;;  %3205 = vmatpush1.bf16.msra.mxu1 %v5512_v0  ;;  %v5855_v0 = vld [vmem:[#allocation46_spill] sm:$0xff] }
 0xf73   :  { %3165 = vmatprep.subr.bf16.mxu0 %v5515_v22  ;;  %3206 = vmatprep.subr.bf16.mxu1 %v5518_v12  ;;  %v2119_v22 = vadd.f32 %v5855_v0, %v5277_v47  ;;  %v5856_v12 = vld [vmem:[#allocation47_spill] sm:$0xff] }
 0xf74   :  { %3195 = vmatprep.mubr.bf16.mxu0 %v5786_v30  ;;  %3236 = vmatprep.mubr.bf16.mxu1 %v5786_v30  ;;  %v5854_v30 = vld [vmem:[#allocation45_spill] sm:$0xff] }
 0xf75   :  { %v2046_v20 = vadd.f32 %v5854_v30, %v5273_v57 }
 0xf76   :  { %3166 = vmatpush1.bf16.msra.mxu0 %v5523_v42  ;;  %3207 = vmatpush1.bf16.msra.mxu1 %v5526_v26  ;;  %v2048_v42 = vadd.f32 %v5856_v12, %v5285_v38  ;;  %v5857_v26 = vld [vmem:[#allocation48_spill] sm:$0xff] }
 0xf77   :  { %3167 = vmatprep.subr.bf16.mxu0 %v5529_v18  ;;  %3208 = vmatprep.subr.bf16.mxu1 %v5532_v35  ;;  %v2121_v18 = vadd.f32 %v5857_v26, %v5289_v43 }
 0xf7a   :  { %3168 = vmatpush1.bf16.msra.mxu0 %v5535_v3  ;;  %3209 = vmatpush1.bf16.msra.mxu1 %v5538_v21 }
 0xf7b   :  { %3169 = vmatprep.subr.bf16.mxu0 %v5541_v25  ;;  %3210 = vmatprep.subr.bf16.mxu1 %v5544_v56 }
 0xf7e   :  { %3170 = vmatpush1.bf16.msra.mxu0 %v5547_v19  ;;  %3211 = vmatpush1.bf16.msra.mxu1 %v5550_v33 }
 0xf7f   :  { %3171 = vmatprep.subr.bf16.mxu0 %v5553_v32  ;;  %3212 = vmatprep.subr.bf16.mxu1 %v5556_v49 }
 0xf82   :  { %3172 = vmatpush1.bf16.msra.mxu0 %v5559_v60  ;;  %3213 = vmatpush1.bf16.msra.mxu1 %v5562_v61 }
 0xf83   :  { %3173 = vmatprep.subr.bf16.mxu0 %v5565_v50  ;;  %3214 = vmatprep.subr.bf16.mxu1 %v5568_v63 }
 0xf86   :  { %3174 = vmatpush1.bf16.msra.mxu0 %v5571_v51  ;;  %3215 = vmatpush1.bf16.msra.mxu1 %v5574_v1 }
 0xf87   :  { %3175 = vmatprep.subr.bf16.mxu0 %v5577_v52  ;;  %3216 = vmatprep.subr.bf16.mxu1 %v5580_v2 }
 0xf8a   :  { %3176 = vmatpush1.bf16.msra.mxu0 %v5583_v54  ;;  %3217 = vmatpush1.bf16.msra.mxu1 %v5586_v28 }
 0xf8b   :  { %3177 = vmatprep.subr.bf16.mxu0 %v5589_v29  ;;  %3218 = vmatprep.subr.bf16.mxu1 %v5592_v11 }
 0xf8e   :  { %3178 = vmatpush1.bf16.msra.mxu0 %v5595_v44  ;;  %3219 = vmatpush1.bf16.msra.mxu1 %v5598_v13 }
0x1044   :  { %v3078_v35 = vpop.f32.mrb[88].mxu0  ;;  %v3119_v3 = vpop.f32.mrb[88].mxu1 }
0x1045   :  { %v3126_v21 = vadd.f32 %v3078_v35, %v2046_v20  ;;  %v3128_v25 = vadd.f32 %v3119_v3, %v2119_v22  ;;  %v3080_v56 = vpop.f32.mrb[89].mxu0  ;;  %v3121_v19 = vpop.f32.mrb[89].mxu1 }
0x1046   :  { %v3127_v33 = vadd.f32 %v3080_v56, %v2048_v42  ;;  %v3129_v32 = vadd.f32 %v3121_v19, %v2121_v18  ;;  %v3082_v49 = vpop.f32.mrb[90].mxu0  ;;  %v3123_v60 = vpop.f32.mrb[90].mxu1 }
0x1047   :  { %v3130_v61 = vmul.f32 1.442695, %v3126_v21  ;;  %v3083_v50 = vpop.f32.mrb[91].mxu0  ;;  %v3124_v63 = vpop.f32.mrb[91].mxu1  ;;  %3922 = vtanh.f32 %v3128_v25 }
0x1048   :  { %v3507_v51 = vmul.f32 -1.442695, %v3127_v33  ;;  %v3508_v29 = vmul.f32 -1.442695, %v3129_v32 }
0x1049   :  { %3924 = vpow2.f32 %v3130_v61 }
0x104a   :  { %3926 = vpow2.f32 %v3507_v51 }
0x1051   :  { %v3923_v1 = vpop.eup %3922 }
0x1053   :  { %v3925_v52 = vpop.eup %3924 }
0x1054   :  { %v3927_v2 = vpop.eup %3926  ;;  %v3148_v54 = vmul.f32 %v3925_v52, %v3923_v1 }
0x1055   :  { %v3135_v28 = vadd.f32 1.0, %v3927_v2 }
0x1057   :  { %3928 = vrcp.f32 %v3135_v28 }
0x1058   :  { %3930 = vpow2.f32 %v3508_v29 }
0x1061   :  { %v3929_v11 = vpop.eup %3928 }
0x1062   :  { %v3145_v44 = vmul.f32 %v3929_v11, %v5613_v17  ;;  %v3147_v13 = vmul.f32 %v3929_v11, %v5615_v16  ;;  %v3931_v9 = vpop.eup %3930  ;;  %v2123_v17 = vadd.f32 %v5859_v53, %v5277_v47  ;;  %v5860_v16 = vld [vmem:[#allocation28_spill] sm:$0xff] }
0x1063   :  { %v3142_v24 = vadd.f32 1.0, %v3931_v9  ;;  %v2052_v58 = vadd.f32 %v5860_v16, %v5285_v38 }
0x1064   :  { %v3146_v14 = vadd.f32 %v3925_v52, %v3145_v44  ;;  %v3149_v8 = vadd.f32 %v3148_v54, %v3147_v13 }
0x1066   :  { %v3150_v31 = vadd.f32 1e-08, %v3146_v14 }
0x1068   :  { %3932 = vrcp.f32 %v3150_v31 }
0x1069   :  { %3934 = vrcp.f32 %v3142_v24 }
0x1072   :  { %v3933_v7 = vpop.eup %3932 }
0x1073   :  { %v3152_v5 = vmul.f32 %v3933_v7, %v3150_v31  ;;  %v3935_v45 = vpop.eup %3934 }
0x1074   :  { %v3155_v41 = vmul.f32 %v3935_v45, %v3149_v8 }
0x1075   :  { %v3153_v27 = vsub.f32 2.0, %v3152_v5 }
0x1077   :  { %v3154_v46 = vmul.f32 %v3933_v7, %v3153_v27 }
0x1079   :  { %v3156_v23 = vmul.f32 %v3155_v41, %v3154_v46 }
0x107b   :  { %3157 = vst [vmem:[#allocation15 + $0x30] sm:$0xff] %v3156_v23  ;;  %v3162_v36 = vpack.c.bf16 %v3156_v23, %v3156_v23 }
0x107d   :  { %3196 = vmatmul.mubr.bf16.vlgmr.msra.gmra.mrb[92].mxu0 %v3162_v36  ;;  %3237 = vmatmul.mubr.bf16.vlgmr.msra.gmra.mrb[92].mxu1 %v3162_v36 }
0x1150   :  { %v3197_v55 = vpop.f32.mrb[92].mxu0  ;;  %v3238_v4 = vpop.f32.mrb[92].mxu1 }
0x1151   :  { %v3245_v48 = vadd.f32 %v3197_v55, %v2050_v62  ;;  %v3247_v39 = vadd.f32 %v3238_v4, %v2123_v17  ;;  %v3199_v10 = vpop.f32.mrb[93].mxu0  ;;  %v3240_v6 = vpop.f32.mrb[93].mxu1 }
0x1152   :  { %v3246_v40 = vadd.f32 %v3199_v10, %v2052_v58  ;;  %v3248_v15 = vadd.f32 %v3240_v6, %v2125_v34  ;;  %v3201_v30 = vpop.f32.mrb[94].mxu0  ;;  %v3242_v20 = vpop.f32.mrb[94].mxu1 }
0x1153   :  { %v3249_v57 = vmul.f32 1.442695, %v3245_v48  ;;  %v3202_v0 = vpop.f32.mrb[95].mxu0  ;;  %v3243_v22 = vpop.f32.mrb[95].mxu1  ;;  %3936 = vtanh.f32 %v3247_v39 }
0x1154   :  { %v3509_v47 = vmul.f32 -1.442695, %v3246_v40  ;;  %v3510_v12 = vmul.f32 -1.442695, %v3248_v15 }
0x1155   :  { %3938 = vpow2.f32 %v3249_v57 }
0x1156   :  { %3940 = vpow2.f32 %v3509_v47 }
0x1157   :  { %3942 = vpow2.f32 %v3510_v12 }
0x115d   :  { %v3937_v38 = vpop.eup %3936 }
0x115f   :  { %v3939_v43 = vpop.eup %3938 }
0x1160   :  { %v3941_v42 = vpop.eup %3940  ;;  %v3267_v26 = vmul.f32 %v3939_v43, %v3937_v38 }
0x1161   :  { %v3943_v18 = vpop.eup %3942  ;;  %v3254_v35 = vadd.f32 1.0, %v3941_v42 }
0x1162   :  { %v3261_v3 = vadd.f32 1.0, %v3943_v18 }
0x1163   :  { %3944 = vrcp.f32 %v3254_v35 }
0x1164   :  { %3946 = vrcp.f32 %v3261_v3 }
0x116d   :  { %v3945_v21 = vpop.eup %3944 }
0x116e   :  { %v3264_v25 = vmul.f32 %v3945_v21, %v3146_v14  ;;  %v3266_v56 = vmul.f32 %v3945_v21, %v3149_v8  ;;  %v3947_v32 = vpop.eup %3946 }
0x1170   :  { %v3265_v19 = vadd.f32 %v3939_v43, %v3264_v25  ;;  %v3268_v33 = vadd.f32 %v3267_v26, %v3266_v56 }
0x1172   :  { %v3269_v49 = vadd.f32 1e-08, %v3265_v19  ;;  %3279 = vst [vmem:[#allocation19 + $0x8] sm:$0xff] %v3265_v19  ;;  %v3274_v60 = vmul.f32 %v3947_v32, %v3268_v33  ;;  %3278 = vst [vmem:[#allocation18 + $0x8] sm:$0xff] %v3268_v33 }
0x1173   :  { %4179 = shalt.err (!%p4176_p4)
}
0x1174   :  { %s4180_s1 = scalar_lea.hbm %s5753_s10, 256 }
0x1175   :  { %p4181_p5 = scmp.ne.s32.totalorder %s5753_s10, %s4180_s1  ;;  %p4184_p6 = scmp.lt.u32.totalorder %s4180_s1, %s5753_s10 }
0x1177   :  { %p4186_p7 = pnand %p4184_p6, %p4181_p5 }
0x1179   :  { %4189 = shalt.err (!%p4186_p7)
}
0x117a   :  { %s4284_s30 = smov 128   ;;  %s4285_s21 = smov 8   ;;  %3948 = vrcp.f32 %v3269_v49 }
0x117b   :  { %3327 = dma.vmem_to_hbm [thread:$0]  %s3322_s24, 256, %s5753_s10, [#allocation20], %s4284_s30, %s4284_s30, %s4285_s21  }
0x117c   :  { %s4286_s25 = smov [#allocation16]   ;;  %s4287_s27 = smov [#allocation15]  }
0x117d   :  { %s3297_s26 = sshll.u32 %s4286_s25, 4  ;;  %s3285_s11 = sshll.u32 %s4287_s27, 4  ;;  %s3298_s26 = int_to_ptr.vmem [resolvable:$true] %s3297_s26  ;;  %s5684_s11 = int_to_ptr.vmem [resolvable:$true] %s3285_s11 }
0x117e   :  { %s4288_s3 = smov [#allocation18]   ;;  %s4190_s10 = scalar_lea.vmem %s3298_s26, 256 }
0x117f   :  { %s3309_s28 = sshll.u32 %s4288_s3, 4  ;;  %p4191_p8 = scmp.ne.s32.totalorder %s3298_s26, %s4190_s10  ;;  %s5686_s28 = int_to_ptr.vmem [resolvable:$true] %s3309_s28 }
0x1180   :  { %p4195_p9 = scmp.lt.s32.totalorder %s3298_s26, %s3298_s26  ;;  %p4196_p10 = scmp.lt.s32.totalorder %s4190_s10, %s4190_s10 }
0x1182   :  { %p4197_p11 = por %p4196_p10, %p4195_p9 }
0x1184   :  { %v3949_v61 = vpop.eup %3948  ;;  %p4198_p12 = pnand %p4197_p11, %p4191_p8 }
0x1185   :  { %v3271_v50 = vmul.f32 %v3949_v61, %v3269_v49 }
0x1187   :  { %v3272_v63 = vsub.f32 2.0, %v3271_v50 }
0x1189   :  { %v3273_v51 = vmul.f32 %v3949_v61, %v3272_v63 }
0x118b   :  { %v3275_v1 = vmul.f32 %v3274_v60, %v3273_v51 }
0x118d   :  { %3276 = vst [vmem:[#allocation15 + $0x38] sm:$0xff] %v3275_v1  ;;  %3277 = vst [vmem:[#allocation16 + $0x8] sm:$0xff] %v3275_v1 }
0x118e   :  { %4201 = shalt.err (!%p4198_p12)
}
0x118f   :  { %s4202_s16 = scalar_lea.hbm %s5751_s8, 256 }
0x1190   :  { %p4203_p13 = scmp.ne.s32.totalorder %s5751_s8, %s4202_s16  ;;  %p4206_p0 = scmp.lt.u32.totalorder %s4202_s16, %s5751_s8 }
0x1192   :  { %p4208_p1 = pnand %p4206_p0, %p4203_p13 }
0x1194   :  { %4211 = shalt.err (!%p4208_p1)
}
0x1195   :  { %3303 = dma.vmem_to_hbm [thread:$0]  %s3298_s26, 256, %s5751_s8, [#allocation17], %s4284_s30, %s4284_s30, %s4285_s21  }
0x1196   :  { %s4212_s29 = scalar_lea.vmem %s5684_s11, 1024  ;;  %p4217_p3 = scmp.lt.s32.totalorder %s5684_s11, %s5684_s11 }
0x1197   :  { %p4213_p2 = scmp.ne.s32.totalorder %s5684_s11, %s4212_s29  ;;  %p4218_p4 = scmp.lt.s32.totalorder %s4212_s29, %s4212_s29 }
0x1199   :  { %p4219_p5 = por %p4218_p4, %p4217_p3 }
0x119b   :  { %p4220_p6 = pnand %p4219_p5, %p4213_p2 }
0x119d   :  { %4223 = shalt.err (!%p4220_p6)
}
0x119e   :  { %s4224_s1 = scalar_lea.hbm %s5750_s7, 1024 }
0x119f   :  { %p4225_p7 = scmp.ne.s32.totalorder %s5750_s7, %s4224_s1  ;;  %p4228_p8 = scmp.lt.u32.totalorder %s4224_s1, %s5750_s7 }
0x11a1   :  { %p4230_p9 = pnand %p4228_p8, %p4225_p7 }
0x11a3   :  { %4233 = shalt.err (!%p4230_p9)
}
0x11a4   :  { %3291 = dma.vmem_to_hbm [thread:$0]  %s5684_s11, 1024, %s5750_s7, [#allocation5], %s4284_s30, %s4284_s30, %s4285_s21  }
0x11a5   :  { %s4234_s2 = scalar_lea.vmem %s5686_s28, 256  ;;  %p4239_p11 = scmp.lt.s32.totalorder %s5686_s28, %s5686_s28 }
0x11a6   :  { %p4235_p10 = scmp.ne.s32.totalorder %s5686_s28, %s4234_s2  ;;  %p4240_p12 = scmp.lt.s32.totalorder %s4234_s2, %s4234_s2 }
0x11a8   :  { %p4241_p13 = por %p4240_p12, %p4239_p11 }
0x11aa   :  { %p4242_p0 = pnand %p4241_p13, %p4235_p10 }
0x11ac   :  { %4245 = shalt.err (!%p4242_p0)
}
0x11ad   :  { %s4246_s27 = scalar_lea.hbm %s5752_s9, 256 }
0x11ae   :  { %p4247_p1 = scmp.ne.s32.totalorder %s5752_s9, %s4246_s27  ;;  %p4250_p2 = scmp.lt.u32.totalorder %s4246_s27, %s5752_s9 }
0x11b0   :  { %p4252_p3 = pnand %p4250_p2, %p4247_p1 }
0x11b2   :  { %4255 = shalt.err (!%p4252_p3)
}
0x11b3   :  { %3315 = dma.vmem_to_hbm [thread:$0]  %s5686_s28, 256, %s5752_s9, [#allocation17], %s4284_s30, %s4284_s30, %s4285_s21  }
0x11b4   :  { %4264 = dma.done.wait [#allocation5], 1024  }
0x11b5   :  { %4265 = vsyncadd [#allocation5], 4294966272 }
0x11b6   :  { %4266 = dma.done.wait [#allocation17], 512  }
0x11b7   :  { %4267 = vsyncadd [#allocation17], 4294966784 }
0x11b8   :  { %4268 = dma.done.wait [#allocation20], 256  }
0x11b9   :  { %4269 = vsyncadd [#allocation20], 4294967040 }
0x11ba   :  { %3340 = vsyncpa [#allocation4], 1 }
0x11bb   :  { %3341 = vsyncpa [#allocation7], 1 }
0x11bc   :  { %3342 = vsyncpa [#allocation10], 1 }
0x11bd   :  { %3343 = vsyncpa [#allocation13], 1 }
0x11be   :  { %3344 = vsyncpa [#allocation5], 1 }
0x11bf   :  { %3345 = vsyncpa [#allocation17], 1 }
0x11c0   :  { %3346 = vsyncpa [#allocation20], 1 }

</bundles_post_ra>
